<compile_context>
chip_gen: v6e
topology: v6e:2x2x1
jax: 0.10.0
libtpu: 0.0.40
codegen_flags: <defaults>
</compile_context>

<pallas_src>
import jax
import jax.numpy as jnp
from jax.experimental import pallas as pl
from jax.experimental.pallas import tpu as pltpu

B = 2
H, W = 128, 2
C_IN, C_MID = 64, 32
HW = H * W                    # 256 flattened (h*W + w) positions per image
N_LANES = B * HW              # 512: both images concatenated along lanes
FC4_OUT = C_IN * HW           # 16384
TCHUNK = 8192                 # fc4 output-column chunk streamed per grid step
EPS = 1e-5


# ----------------------------- Kernel 1: fc3 -> relu -> fc4 -> relu ----------

def _fc_kernel(x_ref, w3_ref, b3_ref, w4_ref, b4_ref, o_ref):
    # fc3 is tiny (256x128 bf16); recomputing it per grid step keeps the two
    # steps independent ("parallel") so v7x's 2 TensorCores take one each.
    h3 = jnp.dot(x_ref[...].astype(jnp.bfloat16), w3_ref[...],
                 preferred_element_type=jnp.float32) + b3_ref[...]
    h3 = jnp.maximum(h3, 0.0)
    # fc4 chunk: bf16 weights streamed from HBM, f32 accumulation.
    h4 = jnp.dot(h3.astype(jnp.bfloat16), w4_ref[...],
                 preferred_element_type=jnp.float32) + b4_ref[...]
    o_ref[...] = jnp.maximum(h4, 0.0).astype(o_ref.dtype)


# ------------- Kernel 2: conv_t1 -> batchnorm -> relu -> conv_t2 -> tanh -----

def _deconv_kernel(x_ref, w1_ref, b1_ref, g_ref, be_ref,
                   w2m_ref, w2c_ref, w2p_ref, b2_ref, o_ref):
    # Channels-on-sublanes layout with both images side by side on lanes:
    # xc[c, b*HW + h*W + w]  ->  (64, 512).
    xc = jnp.concatenate([x_ref[0].astype(jnp.float32),
                          x_ref[1].astype(jnp.float32)], axis=1)

    # Per-image edge masks (hw = lane mod 256).  They also zero the roll
    # wrap-around across the image boundary / array ends.
    pos = jax.lax.broadcasted_iota(jnp.int32, (1, N_LANES), 1)
    hw = jnp.bitwise_and(pos, HW - 1)
    keep_m = (hw >= W).astype(jnp.float32)            # (h-1) tap exists
    keep_p = (hw < HW - W).astype(jnp.float32)        # (h+1) tap exists

    def taps(v):
        vm = pltpu.roll(v, shift=W, axis=1) * keep_m            # v at h-1
        vp = pltpu.roll(v, shift=N_LANES - W, axis=1) * keep_p  # v at h+1
        return vm, vp

    # --- ConvTranspose2d(64->32, k=(3,1), pad=(1,0)): one fused MXU call
    #     (32,192) @ (192,512) instead of 6 small per-tap/per-image matmuls.
    xm, xp = taps(xc)
    xs = jnp.concatenate([xm, xc, xp], axis=0)                  # (192, 512)
    c1 = jnp.dot(w1_ref[...], xs,
                 preferred_element_type=jnp.float32) + b1_ref[...]   # (32, 512)

    # --- BatchNorm2d(32), training mode: per-channel stats over (B,H,W),
    #     biased variance (matches PyTorch's normalization in train()).
    mean = jnp.mean(c1, axis=1, keepdims=True)                  # (32, 1)
    var = jnp.mean((c1 - mean) ** 2, axis=1, keepdims=True)     # (32, 1)
    scale = jax.lax.rsqrt(var + EPS) * g_ref[...]
    a1 = jnp.maximum((c1 - mean) * scale + be_ref[...], 0.0)    # (32, 512)

    # --- relu -> ConvTranspose2d(32->1): VPU broadcast-mul + sublane reduce,
    #     then tanh, written as a single dense lane-major (1, 512) store.
    am, ap = taps(a1)
    t = am * w2m_ref[...] + a1 * w2c_ref[...] + ap * w2p_ref[...]    # (32, 512)
    o_ref[...] = jnp.tanh(jnp.sum(t, axis=0, keepdims=True) + b2_ref[...])


# ----------------------------------- wrapper ---------------------------------

def decoder_forward(x, params):
    (w3, b3, w4, b4, w1, b1, gamma, beta, w2m, w2c, w2p, b2) = params

    # Kernel 1: 2 parallel grid steps over fc4 output columns; w4/b4/out blocks
    # stream, the tiny x/w3/b3 blocks keep a constant index (no re-DMA).
    n_chunks = FC4_OUT // TCHUNK
    h4 = pl.pallas_call(
        _fc_kernel,
        out_shape=jax.ShapeDtypeStruct((B, FC4_OUT), jnp.bfloat16),
        grid=(n_chunks,),
        in_specs=[
            pl.BlockSpec((B, 256), lambda j: (0, 0)),        # x      (f32)
            pl.BlockSpec((256, 128), lambda j: (0, 0)),      # w3     (bf16, tiny)
            pl.BlockSpec((1, 128), lambda j: (0, 0)),        # b3     (f32)
            pl.BlockSpec((128, TCHUNK), lambda j: (0, j)),   # w4     (bf16, streamed)
            pl.BlockSpec((1, TCHUNK), lambda j: (0, j)),     # b4     (f32)
        ],
        out_specs=pl.BlockSpec((B, TCHUNK), lambda j: (0, j)),
        compiler_params=pltpu.CompilerParams(
            dimension_semantics=("parallel",),
            vmem_limit_bytes=32 * 1024 * 1024),
    )(x, w3, b3, w4, b4)

    # glue: free row-major reshape to (B, C_in, H*W) — matches the NCHW view.
    xin = h4.reshape(B, C_IN, HW)

    # Kernel 2: everything resident in VMEM (total footprint ~1 MiB).
    # TODO(synk): could be fused into kernel 1's last grid step to save one
    # launch + the 128 KiB h4 round-trip, at the cost of the v7x 2-TC split.
    vmem = pl.BlockSpec(memory_space=pltpu.MemorySpace.VMEM)
    out = pl.pallas_call(
        _deconv_kernel,
        out_shape=jax.ShapeDtypeStruct((1, N_LANES), jnp.float32),
        in_specs=[vmem] * 9,
        out_specs=vmem,
        compiler_params=pltpu.CompilerParams(vmem_limit_bytes=32 * 1024 * 1024),
    )(xin, w1, b1, gamma, beta, w2m, w2c, w2p, b2)

    # lane index = b*HW + h*W + w  ==  row-major NCHW (B, 1, H, W): pure reshape.
    return out.reshape(B, 1, H, W)


# ----------------------------------- params ----------------------------------

def make_params(key):
    ks = jax.random.split(key, 10)

    def u(k, shape, fan_in):
        bound = 1.0 / jnp.sqrt(float(fan_in))
        return jax.random.uniform(k, shape, jnp.float32, -bound, bound)

    # fc3: Linear(256 -> 128), stored (in, out), bf16 for the MXU path.
    w3 = u(ks[0], (256, 128), 256).astype(jnp.bfloat16)
    b3 = u(ks[1], (1, 128), 256)

    # fc4: Linear(128 -> 16384), stored (in, out); bf16 halves the dominant
    # HBM weight stream (accumulation stays f32 in the kernel).
    # TODO(synk): optional int8 (v5e/v6e) / fp8 (v7x) w4 with per-column scales
    # would halve the stream again; left out to keep numerics close to f32.
    w4 = u(ks[2], (128, FC4_OUT), 128).astype(jnp.bfloat16)
    b4 = u(ks[3], (1, FC4_OUT), 128)

    # t_conv1: ConvTranspose2d weight (in=64, out=32, 3, 1).  Kernel rows
    # (2, 1, 0) pair with the (h-1, h, h+1) taps of the transposed conv;
    # transposed to (out, in) and fused into one (32, 192) matrix matching the
    # in-kernel [xm; xc; xp] stack.
    w_t1 = u(ks[4], (C_IN, C_MID, 3, 1), C_MID * 3)
    b1 = u(ks[5], (C_MID, 1), C_MID * 3)
    w1m = jnp.transpose(w_t1[:, :, 2, 0])            # (32, 64) pairs with x[h-1]
    w1c = jnp.transpose(w_t1[:, :, 1, 0])            # (32, 64) pairs with x[h]
    w1p = jnp.transpose(w_t1[:, :, 0, 0])            # (32, 64) pairs with x[h+1]
    w1 = jnp.concatenate([w1m, w1c, w1p], axis=1)    # (32, 192)

    # t_conv2: ConvTranspose2d weight (in=32, out=1, 3, 1) -> per-tap columns.
    w_t2 = u(ks[6], (C_MID, 1, 3, 1), 1 * 3)
    b2 = u(ks[7], (1, 1), 1 * 3)
    w2m = w_t2[:, 0, 2, 0].reshape(C_MID, 1)         # pairs with a[h-1]
    w2c = w_t2[:, 0, 1, 0].reshape(C_MID, 1)         # pairs with a[h]
    w2p = w_t2[:, 0, 0, 0].reshape(C_MID, 1)         # pairs with a[h+1]

    # BatchNorm2d(32) affine params (deterministic, non-trivial).
    gamma = 1.0 + 0.1 * jax.random.normal(ks[8], (C_MID, 1), jnp.float32)
    beta = 0.1 * jax.random.normal(ks[9], (C_MID, 1), jnp.float32)
    # TODO(synk): BatchNorm2d running_mean/var updates are a training-time side
    # effect and do not influence this forward output; not implemented.

    return (w3, b3, w4, b4, w1, b1, gamma, beta, w2m, w2c, w2p, b2)


if __name__ == "__main__":
    key = jax.random.PRNGKey(0)
    kp, kx = jax.random.split(key)
    params = make_params(kp)
    x = jax.random.normal(kx, (B, 256), jnp.float32)

    fwd = jax.jit(decoder_forward)
    out = jax.block_until_ready(fwd(x, params))
    assert out.shape == (B, 1, H, W)
    assert bool(jnp.all(jnp.isfinite(out)))
    print("KERNEL_OK")
</pallas_src>

<mosaic_0001>
module attributes {stable_mosaic.version = 11 : i64} {
  func.func @_deconv_kernel(%arg0: memref<2x64x256xbf16, #tpu.memory_space<vmem>>, %arg1: memref<32x192xf32, #tpu.memory_space<vmem>>, %arg2: memref<32x1xf32, #tpu.memory_space<vmem>>, %arg3: memref<32x1xf32, #tpu.memory_space<vmem>>, %arg4: memref<32x1xf32, #tpu.memory_space<vmem>>, %arg5: memref<32x1xf32, #tpu.memory_space<vmem>>, %arg6: memref<32x1xf32, #tpu.memory_space<vmem>>, %arg7: memref<32x1xf32, #tpu.memory_space<vmem>>, %arg8: memref<1x1xf32, #tpu.memory_space<vmem>>, %arg9: memref<1x512xf32, #tpu.memory_space<vmem>>) attributes {dimension_semantics = [], scalar_prefetch = 0 : i64, scratch_operands = 0 : i64, tpu.core_type = #tpu.core_type<tc>} {
    %c0 = arith.constant 0 : index
    %c0_0 = arith.constant 0 : index
    %c0_1 = arith.constant 0 : index
    %0 = vector.load %arg0[%c0, %c0_0, %c0_1] : memref<2x64x256xbf16, #tpu.memory_space<vmem>>, vector<1x64x256xbf16>
    %1 = vector.shape_cast %0 : vector<1x64x256xbf16> to vector<64x256xbf16>
    %2 = arith.extf %1 : vector<64x256xbf16> to vector<64x256xf32>
    %c1 = arith.constant 1 : index
    %c0_2 = arith.constant 0 : index
    %c0_3 = arith.constant 0 : index
    %3 = vector.load %arg0[%c1, %c0_2, %c0_3] : memref<2x64x256xbf16, #tpu.memory_space<vmem>>, vector<1x64x256xbf16>
    %4 = vector.shape_cast %3 : vector<1x64x256xbf16> to vector<64x256xbf16>
    %5 = arith.extf %4 : vector<64x256xbf16> to vector<64x256xf32>
    %6 = tpu.concatenate %2, %5 in 1 : vector<64x256xf32>, vector<64x256xf32> -> vector<64x512xf32>
    %7 = tpu.iota {dimensions = array<i32: 1>} : vector<1x512xi32>
    %c255_i32 = arith.constant 255 : i32
    %8 = vector.broadcast %c255_i32 : i32 to vector<1x512xi32>
    %9 = arith.andi %7, %8 : vector<1x512xi32>
    %c2_i32 = arith.constant 2 : i32
    %10 = vector.broadcast %c2_i32 : i32 to vector<1x512xi32>
    %11 = arith.cmpi sge, %9, %10 : vector<1x512xi32>
    %12 = arith.extui %11 : vector<1x512xi1> to vector<1x512xi32>
    %13 = arith.sitofp %12 : vector<1x512xi32> to vector<1x512xf32>
    %c254_i32 = arith.constant 254 : i32
    %14 = vector.broadcast %c254_i32 : i32 to vector<1x512xi32>
    %15 = arith.cmpi slt, %9, %14 : vector<1x512xi32>
    %16 = arith.extui %15 : vector<1x512xi1> to vector<1x512xi32>
    %17 = arith.sitofp %16 : vector<1x512xi32> to vector<1x512xf32>
    %c2_i32_4 = arith.constant 2 : i32
    %18 = tpu.dynamic_rotate %6 by %c2_i32_4 dim 1 : vector<64x512xf32>, i32 -> vector<64x512xf32>
    %19 = vector.broadcast %13 : vector<1x512xf32> to vector<64x512xf32>
    %20 = arith.mulf %18, %19 : vector<64x512xf32>
    %c510_i32 = arith.constant 510 : i32
    %21 = tpu.dynamic_rotate %6 by %c510_i32 dim 1 : vector<64x512xf32>, i32 -> vector<64x512xf32>
    %22 = vector.broadcast %17 : vector<1x512xf32> to vector<64x512xf32>
    %23 = arith.mulf %21, %22 : vector<64x512xf32>
    %24 = tpu.concatenate %20, %6, %23 in 0 : vector<64x512xf32>, vector<64x512xf32>, vector<64x512xf32> -> vector<192x512xf32>
    %c0_5 = arith.constant 0 : index
    %c0_6 = arith.constant 0 : index
    %25 = vector.load %arg1[%c0_5, %c0_6] : memref<32x192xf32, #tpu.memory_space<vmem>>, vector<32x192xf32>
    %cst = arith.constant dense<0.000000e+00> : vector<32x512xf32>
    %26 = tpu.matmul %25, %24, %cst {dimension_numbers = #tpu.dot_dimension_numbers<[1], [0], [0], [1], [0, 0, 1, 1], [], []>} : vector<32x192xf32>, vector<192x512xf32>, vector<32x512xf32> -> vector<32x512xf32>
    %c0_7 = arith.constant 0 : index
    %c0_8 = arith.constant 0 : index
    %27 = vector.load %arg2[%c0_7, %c0_8] : memref<32x1xf32, #tpu.memory_space<vmem>>, vector<32x1xf32>
    %28 = vector.broadcast %27 : vector<32x1xf32> to vector<32x512xf32>
    %29 = arith.addf %26, %28 : vector<32x512xf32>
    %cst_9 = arith.constant dense<0.000000e+00> : vector<32xf32>
    %30 = vector.multi_reduction <add>, %29, %cst_9 [1] : vector<32x512xf32> to vector<32xf32>
    %31 = vector.shape_cast %30 : vector<32xf32> to vector<32x1xf32>
    %cst_10 = arith.constant 5.120000e+02 : f32
    %32 = vector.broadcast %cst_10 : f32 to vector<32x1xf32>
    %33 = arith.divf %31, %32 : vector<32x1xf32>
    %34 = vector.broadcast %33 : vector<32x1xf32> to vector<32x512xf32>
    %35 = arith.subf %29, %34 : vector<32x512xf32>
    %36 = arith.mulf %35, %35 : vector<32x512xf32>
    %cst_11 = arith.constant dense<0.000000e+00> : vector<32xf32>
    %37 = vector.multi_reduction <add>, %36, %cst_11 [1] : vector<32x512xf32> to vector<32xf32>
    %38 = vector.shape_cast %37 : vector<32xf32> to vector<32x1xf32>
    %cst_12 = arith.constant 5.120000e+02 : f32
    %39 = vector.broadcast %cst_12 : f32 to vector<32x1xf32>
    %40 = arith.divf %38, %39 : vector<32x1xf32>
    %cst_13 = arith.constant 9.99999974E-6 : f32
    %41 = vector.broadcast %cst_13 : f32 to vector<32x1xf32>
    %42 = arith.addf %40, %41 : vector<32x1xf32>
    %43 = math.rsqrt %42 : vector<32x1xf32>
    %c0_14 = arith.constant 0 : index
    %c0_15 = arith.constant 0 : index
    %44 = vector.load %arg3[%c0_14, %c0_15] : memref<32x1xf32, #tpu.memory_space<vmem>>, vector<32x1xf32>
    %45 = arith.mulf %43, %44 : vector<32x1xf32>
    %46 = vector.broadcast %33 : vector<32x1xf32> to vector<32x512xf32>
    %47 = arith.subf %29, %46 : vector<32x512xf32>
    %48 = vector.broadcast %45 : vector<32x1xf32> to vector<32x512xf32>
    %49 = arith.mulf %47, %48 : vector<32x512xf32>
    %c0_16 = arith.constant 0 : index
    %c0_17 = arith.constant 0 : index
    %50 = vector.load %arg4[%c0_16, %c0_17] : memref<32x1xf32, #tpu.memory_space<vmem>>, vector<32x1xf32>
    %51 = vector.broadcast %50 : vector<32x1xf32> to vector<32x512xf32>
    %52 = arith.addf %49, %51 : vector<32x512xf32>
    %cst_18 = arith.constant 0.000000e+00 : f32
    %53 = vector.broadcast %cst_18 : f32 to vector<32x512xf32>
    %54 = arith.maximumf %52, %53 : vector<32x512xf32>
    %c2_i32_19 = arith.constant 2 : i32
    %55 = tpu.dynamic_rotate %54 by %c2_i32_19 dim 1 : vector<32x512xf32>, i32 -> vector<32x512xf32>
    %56 = vector.broadcast %13 : vector<1x512xf32> to vector<32x512xf32>
    %57 = arith.mulf %55, %56 : vector<32x512xf32>
    %c510_i32_20 = arith.constant 510 : i32
    %58 = tpu.dynamic_rotate %54 by %c510_i32_20 dim 1 : vector<32x512xf32>, i32 -> vector<32x512xf32>
    %59 = vector.broadcast %17 : vector<1x512xf32> to vector<32x512xf32>
    %60 = arith.mulf %58, %59 : vector<32x512xf32>
    %c0_21 = arith.constant 0 : index
    %c0_22 = arith.constant 0 : index
    %61 = vector.load %arg5[%c0_21, %c0_22] : memref<32x1xf32, #tpu.memory_space<vmem>>, vector<32x1xf32>
    %62 = vector.broadcast %61 : vector<32x1xf32> to vector<32x512xf32>
    %63 = arith.mulf %57, %62 : vector<32x512xf32>
    %c0_23 = arith.constant 0 : index
    %c0_24 = arith.constant 0 : index
    %64 = vector.load %arg6[%c0_23, %c0_24] : memref<32x1xf32, #tpu.memory_space<vmem>>, vector<32x1xf32>
    %65 = vector.broadcast %64 : vector<32x1xf32> to vector<32x512xf32>
    %66 = arith.mulf %54, %65 : vector<32x512xf32>
    %67 = arith.addf %63, %66 : vector<32x512xf32>
    %c0_25 = arith.constant 0 : index
    %c0_26 = arith.constant 0 : index
    %68 = vector.load %arg7[%c0_25, %c0_26] : memref<32x1xf32, #tpu.memory_space<vmem>>, vector<32x1xf32>
    %69 = vector.broadcast %68 : vector<32x1xf32> to vector<32x512xf32>
    %70 = arith.mulf %60, %69 : vector<32x512xf32>
    %71 = arith.addf %67, %70 : vector<32x512xf32>
    %cst_27 = arith.constant dense<0.000000e+00> : vector<512xf32>
    %72 = vector.multi_reduction <add>, %71, %cst_27 [0] : vector<32x512xf32> to vector<512xf32>
    %73 = vector.shape_cast %72 : vector<512xf32> to vector<1x512xf32>
    %c0_28 = arith.constant 0 : index
    %c0_29 = arith.constant 0 : index
    %74 = vector.load %arg8[%c0_28, %c0_29] : memref<1x1xf32, #tpu.memory_space<vmem>>, vector<1x1xf32>
    %75 = vector.broadcast %74 : vector<1x1xf32> to vector<1x512xf32>
    %76 = arith.addf %73, %75 : vector<1x512xf32>
    %77 = math.tanh %76 : vector<1x512xf32>
    %c0_30 = arith.constant 0 : index
    %c0_31 = arith.constant 0 : index
    %78 = vector.load %arg9[%c0_30, %c0_31] : memref<1x512xf32, #tpu.memory_space<vmem>>, vector<1x512xf32>
    tpu.vector_store %arg9[%c0_30, %c0_31], %77 {strides = array<i32>} : memref<1x512xf32, #tpu.memory_space<vmem>>, vector<1x512xf32>,
    return
  }
}

module attributes {stable_mosaic.version = 11 : i64} {
  func.func @_fc_kernel(%arg0: i32, %arg1: memref<2x256xf32, #tpu.memory_space<vmem>>, %arg2: memref<256x128xbf16, #tpu.memory_space<vmem>>, %arg3: memref<1x128xf32, #tpu.memory_space<vmem>>, %arg4: memref<128x8192xbf16, #tpu.memory_space<vmem>>, %arg5: memref<1x8192xf32, #tpu.memory_space<vmem>>, %arg6: memref<2x8192xbf16, #tpu.memory_space<vmem>>) attributes {dimension_semantics = [#tpu.dimension_semantics<parallel>], iteration_bounds = array<i64: 2>, scalar_prefetch = 0 : i64, scratch_operands = 0 : i64, tpu.core_type = #tpu.core_type<tc>, window_params = [{pipeline_mode = #tpu.pipeline_mode<synchronous>, transform_indices = @transform_0, window_bounds = array<i64: 2, 256>}, {pipeline_mode = #tpu.pipeline_mode<synchronous>, transform_indices = @transform_1, window_bounds = array<i64: 256, 128>}, {pipeline_mode = #tpu.pipeline_mode<synchronous>, transform_indices = @transform_2, window_bounds = array<i64: 1, 128>}, {transform_indices = @transform_3, window_bounds = array<i64: 128, 8192>}, {transform_indices = @transform_4, window_bounds = array<i64: 1, 8192>}, {transform_indices = @transform_5, window_bounds = array<i64: 2, 8192>}]} {
    %c0 = arith.constant 0 : index
    %c0_0 = arith.constant 0 : index
    %0 = vector.load %arg1[%c0, %c0_0] : memref<2x256xf32, #tpu.memory_space<vmem>>, vector<2x256xf32>
    %1 = arith.truncf %0 : vector<2x256xf32> to vector<2x256xbf16>
    %c0_1 = arith.constant 0 : index
    %c0_2 = arith.constant 0 : index
    %2 = vector.load %arg2[%c0_1, %c0_2] : memref<256x128xbf16, #tpu.memory_space<vmem>>, vector<256x128xbf16>
    %cst = arith.constant dense<0.000000e+00> : vector<2x128xf32>
    %3 = tpu.matmul %1, %2, %cst {dimension_numbers = #tpu.dot_dimension_numbers<[1], [0], [0], [1], [0, 0, 1, 1], [], []>} : vector<2x256xbf16>, vector<256x128xbf16>, vector<2x128xf32> -> vector<2x128xf32>
    %c0_3 = arith.constant 0 : index
    %c0_4 = arith.constant 0 : index
    %4 = vector.load %arg3[%c0_3, %c0_4] : memref<1x128xf32, #tpu.memory_space<vmem>>, vector<1x128xf32>
    %5 = vector.broadcast %4 : vector<1x128xf32> to vector<2x128xf32>
    %6 = arith.addf %3, %5 : vector<2x128xf32>
    %cst_5 = arith.constant 0.000000e+00 : f32
    %7 = vector.broadcast %cst_5 : f32 to vector<2x128xf32>
    %8 = arith.maximumf %6, %7 : vector<2x128xf32>
    %9 = arith.truncf %8 : vector<2x128xf32> to vector<2x128xbf16>
    %c0_6 = arith.constant 0 : index
    %c0_7 = arith.constant 0 : index
    %10 = vector.load %arg4[%c0_6, %c0_7] : memref<128x8192xbf16, #tpu.memory_space<vmem>>, vector<128x8192xbf16>
    %cst_8 = arith.constant dense<0.000000e+00> : vector<2x8192xf32>
    %11 = tpu.matmul %9, %10, %cst_8 {dimension_numbers = #tpu.dot_dimension_numbers<[1], [0], [0], [1], [0, 0, 1, 1], [], []>} : vector<2x128xbf16>, vector<128x8192xbf16>, vector<2x8192xf32> -> vector<2x8192xf32>
    %c0_9 = arith.constant 0 : index
    %c0_10 = arith.constant 0 : index
    %12 = vector.load %arg5[%c0_9, %c0_10] : memref<1x8192xf32, #tpu.memory_space<vmem>>, vector<1x8192xf32>
    %13 = vector.broadcast %12 : vector<1x8192xf32> to vector<2x8192xf32>
    %14 = arith.addf %11, %13 : vector<2x8192xf32>
    %cst_11 = arith.constant 0.000000e+00 : f32
    %15 = vector.broadcast %cst_11 : f32 to vector<2x8192xf32>
    %16 = arith.maximumf %14, %15 : vector<2x8192xf32>
    %17 = arith.truncf %16 : vector<2x8192xf32> to vector<2x8192xbf16>
    %c0_12 = arith.constant 0 : index
    %c0_13 = arith.constant 0 : index
    %18 = vector.load %arg6[%c0_12, %c0_13] : memref<2x8192xbf16, #tpu.memory_space<vmem>>, vector<2x8192xbf16>
    tpu.vector_store %arg6[%c0_12, %c0_13], %17 {strides = array<i32>} : memref<2x8192xbf16, #tpu.memory_space<vmem>>, vector<2x8192xbf16>,
    return
  }
  func.func @transform_0(%arg0: i32) -> (i32, i32) {
    %c0_i32 = arith.constant 0 : i32
    %c0_i32_0 = arith.constant 0 : i32
    %c0_i32_1 = arith.constant 0 : i32
    return %c0_i32, %c0_i32_0 : i32, i32
  }
  func.func @transform_1(%arg0: i32) -> (i32, i32) {
    %c0_i32 = arith.constant 0 : i32
    %c0_i32_0 = arith.constant 0 : i32
    %c0_i32_1 = arith.constant 0 : i32
    return %c0_i32, %c0_i32_0 : i32, i32
  }
  func.func @transform_2(%arg0: i32) -> (i32, i32) {
    %c0_i32 = arith.constant 0 : i32
    %c0_i32_0 = arith.constant 0 : i32
    %c0_i32_1 = arith.constant 0 : i32
    return %c0_i32, %c0_i32_0 : i32, i32
  }
  func.func @transform_3(%arg0: i32) -> (i32, i32) {
    %c0_i32 = arith.constant 0 : i32
    %c0_i32_0 = arith.constant 0 : i32
    return %c0_i32, %arg0 : i32, i32
  }
  func.func @transform_4(%arg0: i32) -> (i32, i32) {
    %c0_i32 = arith.constant 0 : i32
    %c0_i32_0 = arith.constant 0 : i32
    return %c0_i32, %arg0 : i32, i32
  }
  func.func @transform_5(%arg0: i32) -> (i32, i32) {
    %c0_i32 = arith.constant 0 : i32
    %c0_i32_0 = arith.constant 0 : i32
    return %c0_i32, %arg0 : i32, i32
  }
}

</mosaic_0001>

<bundles_post_ra>
// kernel: decoder_forward.3
= control target key start
LH: loop header
LB: loop body
LE: loop exit
PB: predicated region body
PF: predicated region fallthrough
CT: control target
= control target key end

     0   :  { %s1361_s23 = smov 2   ;;  %vm406_vm0 = vcmask 523264   ;;  %s2227_s0 = inlined_call_operand.vmem [shape: bf16[2,64,256], index: 0, kind: input, shape index: {}]   ;;  %s2228_s1 = inlined_call_operand.vmem [shape: f32[32,192], index: 1, kind: input, shape index: {}]   ;;  %s2229_s2 = inlined_call_operand.vmem [shape: f32[32,1], index: 2, kind: input, shape index: {}]   ;;  %s2230_s4 = inlined_call_operand.vmem [shape: f32[32,1], index: 4, kind: input, shape index: {}]   ;;  %s2231_s5 = inlined_call_operand.vmem [shape: f32[32,1], index: 5, kind: input, shape index: {}]   ;;  %s2232_s6 = inlined_call_operand.vmem [shape: f32[32,1], index: 6, kind: input, shape index: {}]   ;;  %s2233_s7 = inlined_call_operand.vmem [shape: f32[32,1], index: 7, kind: input, shape index: {}]   ;;  %s2234_s3 = inlined_call_operand.vmem [shape: f32[32,1], index: 3, kind: input, shape index: {}]   ;;  %s2235_s8 = inlined_call_operand.<no memory space> [shape: f32[1,1], index: 8, kind: input, shape index: {}]   ;;  %s2236_s9 = inlined_call_operand.vmem [shape: f32[1,512], index: 9, kind: output, shape index: {}]  }
   0x1   :  { %v41_v0 = vld [vmem:[%s2227_s0 + $0x38] sm:$0xff]  ;;  %v40_v2 = vld [vmem:[%s2227_s0 + $0x30] sm:$0xff]  ;;  %v39_v7 = vld [vmem:[%s2227_s0 + $0x28] sm:$0xff] }
   0x2   :  { %v1165_v1 = vld [vmem:[%s2227_s0 + $0x78] sm:$0xff]  ;;  %v1425_v3 = vunpack.c.l.bf16 %v41_v0  ;;  %v1427_v4 = vunpack.c.h.bf16 %v41_v0  ;;  %v1164_v6 = vld [vmem:[%s2227_s0 + $0x70] sm:$0xff]  ;;  %v1439_v9 = vunpack.c.h.bf16 %v40_v2  ;;  %v1443_v11 = vunpack.c.l.bf16 %v40_v2  ;;  %v1163_v12 = vld [vmem:[%s2227_s0 + $0x68] sm:$0xff] }
   0x3   :  { %v1429_v5 = vunpack.c.h.bf16 %v1165_v1  ;;  %v1437_v8 = vunpack.c.l.bf16 %v1165_v1  ;;  %v1441_v10 = vunpack.c.h.bf16 %v1164_v6  ;;  %v1450_v14 = vunpack.c.l.bf16 %v39_v7  ;;  %v38_v15 = vld [vmem:[%s2227_s0 + $0x20] sm:$0xff]  ;;  %v37_v24 = vld [vmem:[%s2227_s0 + $0x18] sm:$0xff]  ;;  %v36_v33 = vld [vmem:[%s2227_s0 + $0x10] sm:$0xff] }
   0x4   :  { %419 = vmatprep.subr.mxu0 %v1427_v4  ;;  %v1462_v17 = vunpack.c.l.bf16 %v1164_v6  ;;  %v1188_v18 = vpack.i.bf16 %v1443_v11, %v1427_v4  ;;  %v1466_v19 = vunpack.c.h.bf16 %v39_v7  ;;  %v1468_v20 = vunpack.c.h.bf16 %v1163_v12  ;;  %v1162_v23 = vld [vmem:[%s2227_s0 + $0x60] sm:$0xff]  ;;  %v1161_v31 = vld [vmem:[%s2227_s0 + $0x58] sm:$0xff]  ;;  %v1160_v39 = vld [vmem:[%s2227_s0 + $0x50] sm:$0xff] }
   0x5   :  { %v1183_v13 = vpack.i.bf16 %v1429_v5, %v1425_v3  ;;  %508 = vmatprep.subr.mxu1 %v1429_v5  ;;  %v1193_v16 = vpack.i.bf16 %v1439_v9, %v1441_v10  ;;  %420 = vmatpush1.msra.mxu0 %v1425_v3  ;;  %v1198_v21 = vpack.i.bf16 %v1437_v8, %v1450_v14  ;;  %v1474_v22 = vunpack.c.l.bf16 %v38_v15  ;;  %v35_v40 = vld [vmem:[%s2227_s0 + $0x8] sm:$0xff]  ;;  %v34_v50 = vld [vmem:[%s2227_s0] sm:$0xff] }
   0x6   :  { %509 = vmatpush1.msra.mxu1 %v1437_v8  ;;  %421 = vmatprep.subr.mxu0 %v1439_v9  ;;  %v1485_v25 = vunpack.c.l.bf16 %v1163_v12  ;;  %v1203_v26 = vpack.i.bf16 %v1466_v19, %v1468_v20  ;;  %v1492_v27 = vunpack.c.h.bf16 %v38_v15  ;;  %v1494_v28 = vunpack.c.h.bf16 %v1162_v23  ;;  %v1159_v42 = vld [vmem:[%s2227_s0 + $0x48] sm:$0xff]  ;;  %v1158_v51 = vld [vmem:[%s2227_s0 + $0x40] sm:$0xff]  ;;  %s1362_s0 = smov 126  }
   0x7   :  { %1184 = vrot.lane.b32.xlu0 %v1183_v13, %s1361_s23  ;;  %1194 = vrot.lane.b32.xlu1 %v1193_v16, %s1361_s23  ;;  %v1208_v29 = vpack.i.bf16 %v1462_v17, %v1474_v22  ;;  %v1500_v30 = vunpack.c.l.bf16 %v37_v24  ;;  %v1505_v32 = vunpack.c.l.bf16 %v1162_v23  ;;  %v1518_v35 = vunpack.c.h.bf16 %v37_v24  ;;  %v375_v13 = vld [vmem:[%s2228_s1 + $0x8] sm:$0xff] }
   0x8   :  { %510 = vmatprep.subr.mxu1 %v1441_v10  ;;  %422 = vmatpush1.msra.mxu0 %v1443_v11  ;;  %v1213_v34 = vpack.i.bf16 %v1492_v27, %v1494_v28  ;;  %v1520_v36 = vunpack.c.h.bf16 %v1161_v31  ;;  %v1525_v38 = vunpack.c.l.bf16 %v36_v33  ;;  %v1534_v41 = vunpack.c.l.bf16 %v1161_v31 }
   0x9   :  { %511 = vmatpush1.msra.mxu1 %v1462_v17  ;;  %423 = vmatprep.subr.mxu0 %v1466_v19  ;;  %v1218_v37 = vpack.i.bf16 %v1485_v25, %v1500_v30  ;;  %v47_v44 = vunpack.c.h.bf16 %v36_v33  ;;  %v1543_v45 = vunpack.c.h.bf16 %v1160_v39  ;;  %v1549_v47 = vunpack.c.l.bf16 %v35_v40 }
   0xa   :  { %512 = vmatprep.subr.mxu1 %v1468_v20  ;;  %424 = vmatpush1.msra.mxu0 %v1450_v14  ;;  %v1223_v43 = vpack.i.bf16 %v1518_v35, %v1520_v36  ;;  %v1228_v46 = vpack.i.bf16 %v1505_v32, %v1525_v38  ;;  %v71_v48 = vunpack.c.l.bf16 %v1160_v39  ;;  %v1552_v49 = vunpack.c.h.bf16 %v1159_v42 }
   0xb   :  { %1189 = vrot.lane.b32.xlu0 %v1188_v18, %s1361_s23  ;;  %1199 = vrot.lane.b32.xlu1 %v1198_v21, %s1361_s23  ;;  %v45_v52 = vunpack.c.h.bf16 %v35_v40  ;;  %v1233_v53 = vpack.i.bf16 %v47_v44, %v1543_v45  ;;  %v69_v54 = vunpack.c.l.bf16 %v1159_v42  ;;  %v1238_v55 = vpack.i.bf16 %v1534_v41, %v1549_v47  ;;  %v382_v18 = vld [vmem:[%s2229_s2] sm:$0xff]  ;;  %v384_v21 = vld [vmem:[%s2229_s2 + $0x10] sm:$0xff] }
   0xc   :  { %513 = vmatpush1.msra.mxu1 %v1485_v25  ;;  %425 = vmatprep.subr.mxu0 %v1492_v27  ;;  %v42_v56 = vunpack.c.l.bf16 %v34_v50  ;;  %v43_v57 = vunpack.c.h.bf16 %v34_v50  ;;  %v68_v58 = vunpack.c.h.bf16 %v1158_v51  ;;  %v67_v59 = vunpack.c.l.bf16 %v1158_v51 }
   0xd   :  { %514 = vmatprep.subr.mxu1 %v1494_v28  ;;  %426 = vmatpush1.msra.mxu0 %v1474_v22  ;;  %v1243_v60 = vpack.i.bf16 %v45_v52, %v1552_v49  ;;  %v1258_v63 = vpack.i.bf16 %v1437_v8, %v1427_v4  ;;  %v1268_v1 = vpack.i.bf16 %v1462_v17, %v1439_v9  ;;  %v1363_v17 = vmov 0  }
   0xe   :  { %515 = vmatpush1.msra.mxu1 %v1505_v32  ;;  %427 = vmatprep.subr.mxu0 %v1518_v35  ;;  %v1248_v61 = vpack.i.bf16 %v71_v48, %v42_v56  ;;  %v1253_v62 = vpack.i.bf16 %v43_v57, %v68_v58  ;;  %v1263_v0 = vpack.i.bf16 %v67_v59, %v69_v54 }
   0xf   :  { %1204 = vrot.lane.b32.xlu0 %v1203_v26, %s1361_s23  ;;  %1209 = vrot.lane.b32.xlu1 %v1208_v29, %s1361_s23  ;;  %v1273_v2 = vpack.i.bf16 %v1466_v19, %v1425_v3  ;;  %v1278_v6 = vpack.i.bf16 %v1429_v5, %v1485_v25  ;;  %v1283_v4 = vpack.i.bf16 %v1492_v27, %v1443_v11  ;;  %v383_v19 = vld [vmem:[%s2229_s2 + $0x8] sm:$0xff] }
  0x10   :  { %516 = vmatprep.subr.mxu1 %v1520_v36  ;;  %428 = vmatpush1.msra.mxu0 %v1500_v30  ;;  %v1288_v7 = vpack.i.bf16 %v1441_v10, %v1505_v32  ;;  %v1293_v3 = vpack.i.bf16 %v1518_v35, %v1450_v14  ;;  %v1298_v5 = vpack.i.bf16 %v1468_v20, %v1534_v41  ;;  %v385_v20 = vld [vmem:[%s2229_s2 + $0x18] sm:$0xff]  ;;  %v1364_v32 = vmov 0.0  }
  0x11   :  { %517 = vmatpush1.msra.mxu1 %v1534_v41  ;;  %429 = vmatprep.subr.mxu0 %v47_v44  ;;  %v1303_v8 = vpack.i.bf16 %v47_v44, %v1474_v22  ;;  %v1308_v9 = vpack.i.bf16 %v1494_v28, %v71_v48  ;;  %v1313_v10 = vpack.i.bf16 %v45_v52, %v1500_v30  ;;  %v83_v22 = vlaneseq }
  0x12   :  { %518 = vmatprep.subr.mxu1 %v1543_v45  ;;  %430 = vmatpush1.msra.mxu0 %v1525_v38  ;;  %v1318_v11 = vpack.i.bf16 %v1520_v36, %v69_v54  ;;  %v1323_v12 = vpack.i.bf16 %v43_v57, %v1525_v38  ;;  %v1328_v14 = vpack.i.bf16 %v1543_v45, %v67_v59 }
  0x13   :  { %1214 = vrot.lane.b32.xlu0 %v1213_v34, %s1361_s23  ;;  %1219 = vrot.lane.b32.xlu1 %v1218_v37, %s1361_s23  ;;  %v1333_v15 = vpack.i.bf16 %v1552_v49, %v1549_v47  ;;  %v1338_v16 = vpack.i.bf16 %v68_v58, %v42_v56  ;;  %v1634_v23 = vand.u32 127, %v83_v22  ;;  %vm1151_vm7 = vcmp.lt.s32.totalorder %v83_v22, 512 }
  0x14   :  { %519 = vmatpush1.msra.mxu1 %v71_v48  ;;  %431 = vmatprep.subr.mxu0 %v45_v52 }
  0x15   :  { %520 = vmatprep.subr.mxu1 %v1552_v49  ;;  %432 = vmatpush1.msra.mxu0 %v1549_v47  ;;  %v86_v24 = vadd.s32 256, %v1634_v23  ;;  %v88_v25 = vand.u32 255, %v1634_v23  ;;  %vm180_vm1 = vcmp.lt.s32.totalorder %v1634_v23, 2  ;;  %vm309_vm5 = vcmp.lt.s32.totalorder %v1634_v23, 126 }
  0x16   :  { %521 = vmatpush1.msra.mxu1 %v69_v54  ;;  %433 = vmatprep.subr.mxu0 %v43_v57 }
  0x17   :  { %1224 = vrot.lane.b32.xlu0 %v1223_v43, %s1361_s23  ;;  %1229 = vrot.lane.b32.xlu1 %v1228_v46, %s1361_s23  ;;  %v90_v26 = vand.u32 255, %v86_v24  ;;  %vm92_vm2 = vcmp.ge.s32.totalorder %v88_v25, 2 }
  0x18   :  { %522 = vmatprep.subr.mxu1 %v68_v58  ;;  %434 = vmatpush1.msra.mxu0 %v42_v56  ;;  %v1640_v33 = vsel %vm92_vm2, 1.0, %v1364_v32 }
  0x19   :  { %523 = vmatpush1.msra.mxu1 %v67_v59  ;;  %1170 = vmatprep.mubr.msk.f32.mxu0 %vm406_vm0, %v375_v13  ;;  %vm94_vm3 = vcmp.ge.s32.totalorder %v90_v26, 2 }
  0x1a   :  { %1174 = vmatprep.mubr.msk.f32.mxu1 %vm406_vm0, %v375_v13  ;;  %1343 = vset.pattern.permute.xlu0 %v1363_v17  ;;  %v1645_v40 = vsel %vm94_vm3, 1.0, %v1364_v32 }
  0x1b   :  { %1234 = vrot.lane.b32.xlu0 %v1233_v53, %s1361_s23  ;;  %1239 = vrot.lane.b32.xlu1 %v1238_v55, %s1361_s23 }
  0x1c   :  { %1344 = vset.pattern.permute.xlu1 %v1363_v17 }
  0x1f   :  { %1244 = vrot.lane.b32.xlu0 %v1243_v60, %s1361_s23  ;;  %1249 = vrot.lane.b32.xlu1 %v1248_v61, %s1361_s23 }
  0x23   :  { %1254 = vrot.lane.b32.xlu0 %v1253_v62, %s1361_s23  ;;  %1259 = vrot.lane.b32.xlu1 %v1258_v63, %s1362_s0 }
  0x27   :  { %1264 = vrot.lane.b32.xlu0 %v1263_v0, %s1361_s23  ;;  %1269 = vrot.lane.b32.xlu1 %v1268_v1, %s1362_s0 }
  0x2b   :  { %1274 = vrot.lane.b32.xlu0 %v1273_v2, %s1362_s0  ;;  %1279 = vrot.lane.b32.xlu1 %v1278_v6, %s1362_s0 }
  0x2f   :  { %1284 = vrot.lane.b32.xlu0 %v1283_v4, %s1362_s0  ;;  %1289 = vrot.lane.b32.xlu1 %v1288_v7, %s1362_s0 }
  0x33   :  { %1294 = vrot.lane.b32.xlu0 %v1293_v3, %s1362_s0  ;;  %1299 = vrot.lane.b32.xlu1 %v1298_v5, %s1362_s0 }
  0x37   :  { %1304 = vrot.lane.b32.xlu0 %v1303_v8, %s1362_s0  ;;  %1309 = vrot.lane.b32.xlu1 %v1308_v9, %s1362_s0 }
  0x3b   :  { %1314 = vrot.lane.b32.xlu0 %v1313_v10, %s1362_s0  ;;  %1319 = vrot.lane.b32.xlu1 %v1318_v11, %s1362_s0 }
  0x3f   :  { %1324 = vrot.lane.b32.xlu0 %v1323_v12, %s1362_s0  ;;  %1329 = vrot.lane.b32.xlu1 %v1328_v14, %s1362_s0 }
  0x43   :  { %1334 = vrot.lane.b32.xlu0 %v1333_v15, %s1362_s0  ;;  %1339 = vrot.lane.b32.xlu1 %v1338_v16, %s1362_s0 }
  0x47   :  { %388 = vperm.xlu0 %1343, %v382_v18   ;;  %393 = vperm.xlu1 %1344, %v383_v19   ;;  %v85_v18 = vadd.s32 128, %v1634_v23 }
  0x4b   :  { %403 = vperm.xlu0 %1343, %v385_v20   ;;  %398 = vperm.xlu1 %1344, %v384_v21  }
  0x79   :  { %v1185_v27 = vpop.permute.xlu0 %1184  ;;  %v1195_v30 = vpop.permute.xlu1 %1194 }
  0x7a   :  { %v1187_v28 = vunpack.i.h.bf16 %v1185_v27  ;;  %v1186_v29 = vunpack.i.l.bf16 %v1185_v27  ;;  %v1196_v35 = vunpack.i.l.bf16 %v1195_v30  ;;  %v1197_v41 = vunpack.i.h.bf16 %v1195_v30 }
  0x7c   :  { %v212_v34 = vsel %vm180_vm1, %v1187_v28, %v1186_v29 }
  0x7d   :  { %v1190_v31 = vpop.permute.xlu0 %1189  ;;  %v1200_v38 = vpop.permute.xlu1 %1199  ;;  %v241_v43 = vmul.f32 %v1640_v33, %v212_v34 }
  0x7e   :  { %v1192_v36 = vunpack.i.h.bf16 %v1190_v31  ;;  %v1191_v37 = vunpack.i.l.bf16 %v1190_v31  ;;  %v1202_v39 = vunpack.i.h.bf16 %v1200_v38  ;;  %v1201_v45 = vunpack.i.l.bf16 %v1200_v38 }
  0x80   :  { %v204_v42 = vsel %vm180_vm1, %v1186_v29, %v1191_v37  ;;  %v211_v44 = vsel %vm180_vm1, %v1196_v35, %v1192_v36  ;;  %v188_v47 = vsel %vm180_vm1, %v1202_v39, %v1187_v28  ;;  %v196_v48 = vsel %vm180_vm1, %v1191_v37, %v1202_v39 }
  0x81   :  { %v1205_v46 = vpop.permute.xlu0 %1204  ;;  %435 = vmatprep.subr.mxu0 %v204_v42  ;;  %v237_v49 = vmul.f32 %v1640_v33, %v211_v44  ;;  %524 = vmatprep.subr.mxu1 %v188_v47  ;;  %v1210_v52 = vpop.permute.xlu1 %1209  ;;  %v203_v53 = vsel %vm180_vm1, %v1192_v36, %v1197_v41  ;;  %v243_v54 = vmul.f32 %v1645_v40, %v196_v48  ;;  %v87_v47 = vadd.s32 384, %v1634_v23 }
  0x82   :  { %v1207_v50 = vunpack.i.h.bf16 %v1205_v46  ;;  %v1206_v51 = vunpack.i.l.bf16 %v1205_v46  ;;  %436 = vmatpush1.msra.mxu0 %v241_v43  ;;  %v1212_v55 = vunpack.i.h.bf16 %v1210_v52  ;;  %v1211_v62 = vunpack.i.l.bf16 %v1210_v52 }
  0x83   :  { %437 = vmatprep.subr.mxu0 %v203_v53  ;;  %525 = vmatpush1.msra.mxu1 %v243_v54 }
  0x84   :  { %438 = vmatpush1.msra.mxu0 %v237_v49  ;;  %v202_v56 = vsel %vm180_vm1, %v1201_v45, %v1207_v50  ;;  %v210_v57 = vsel %vm180_vm1, %v1206_v51, %v1201_v45  ;;  %v187_v59 = vsel %vm180_vm1, %v1212_v55, %v1196_v35  ;;  %v195_v61 = vsel %vm180_vm1, %v1197_v41, %v1212_v55 }
  0x85   :  { %v1215_v58 = vpop.permute.xlu0 %1214  ;;  %439 = vmatprep.subr.mxu0 %v202_v56  ;;  %v233_v60 = vmul.f32 %v1640_v33, %v210_v57  ;;  %526 = vmatprep.subr.mxu1 %v187_v59  ;;  %v1220_v1 = vpop.permute.xlu1 %1219  ;;  %v239_v2 = vmul.f32 %v1645_v40, %v195_v61  ;;  %v89_v35 = vand.u32 255, %v85_v18 }
  0x86   :  { %v1217_v63 = vunpack.i.h.bf16 %v1215_v58  ;;  %v1216_v0 = vunpack.i.l.bf16 %v1215_v58  ;;  %v1222_v6 = vunpack.i.h.bf16 %v1220_v1  ;;  %v1221_v10 = vunpack.i.l.bf16 %v1220_v1 }
  0x87   :  { %440 = vmatpush1.msra.mxu0 %v233_v60  ;;  %527 = vmatpush1.msra.mxu1 %v239_v2  ;;  %vm1706_vm4 = vcmp.lt.s32.totalorder %v89_v35, 254 }
  0x88   :  { %v201_v4 = vsel %vm180_vm1, %v1211_v62, %v1217_v63  ;;  %v209_v7 = vsel %vm180_vm1, %v1216_v0, %v1211_v62  ;;  %v186_v5 = vsel %vm180_vm1, %v1222_v6, %v1206_v51  ;;  %v194_v9 = vsel %vm180_vm1, %v1207_v50, %v1222_v6 }
  0x89   :  { %v1225_v3 = vpop.permute.xlu0 %1224  ;;  %441 = vmatprep.subr.mxu0 %v201_v4  ;;  %v229_v8 = vmul.f32 %v1640_v33, %v209_v7  ;;  %528 = vmatprep.subr.mxu1 %v186_v5  ;;  %v1230_v13 = vpop.permute.xlu1 %1229  ;;  %v235_v14 = vmul.f32 %v1645_v40, %v194_v9  ;;  %v1720_v62 = vsel %vm1706_vm4, 1.0, %v1364_v32 }
  0x8a   :  { %v1227_v11 = vunpack.i.h.bf16 %v1225_v3  ;;  %v1226_v12 = vunpack.i.l.bf16 %v1225_v3  ;;  %v1232_v15 = vunpack.i.h.bf16 %v1230_v13  ;;  %v1231_v25 = vunpack.i.l.bf16 %v1230_v13 }
  0x8b   :  { %442 = vmatpush1.msra.mxu0 %v229_v8  ;;  %529 = vmatpush1.msra.mxu1 %v235_v14 }
  0x8c   :  { %v200_v16 = vsel %vm180_vm1, %v1221_v10, %v1227_v11  ;;  %v208_v17 = vsel %vm180_vm1, %v1226_v12, %v1221_v10  ;;  %v185_v20 = vsel %vm180_vm1, %v1232_v15, %v1216_v0  ;;  %v193_v24 = vsel %vm180_vm1, %v1217_v63, %v1232_v15 }
  0x8d   :  { %v1235_v19 = vpop.permute.xlu0 %1234  ;;  %443 = vmatprep.subr.mxu0 %v200_v16  ;;  %v225_v21 = vmul.f32 %v1640_v33, %v208_v17  ;;  %530 = vmatprep.subr.mxu1 %v185_v20  ;;  %v1240_v28 = vpop.permute.xlu1 %1239  ;;  %v231_v29 = vmul.f32 %v1645_v40, %v193_v24  ;;  %v91_v63 = vand.u32 255, %v87_v47 }
  0x8e   :  { %v1237_v26 = vunpack.i.h.bf16 %v1235_v19  ;;  %v1236_v27 = vunpack.i.l.bf16 %v1235_v19  ;;  %v1242_v30 = vunpack.i.h.bf16 %v1240_v28  ;;  %v1241_v41 = vunpack.i.l.bf16 %v1240_v28 }
  0x8f   :  { %444 = vmatpush1.msra.mxu0 %v225_v21  ;;  %531 = vmatpush1.msra.mxu1 %v231_v29  ;;  %vm107_vm6 = vcmp.lt.s32.totalorder %v91_v63, 254 }
  0x90   :  { %v199_v31 = vsel %vm180_vm1, %v1231_v25, %v1237_v26  ;;  %v207_v34 = vsel %vm180_vm1, %v1236_v27, %v1231_v25  ;;  %v184_v37 = vsel %vm180_vm1, %v1242_v30, %v1226_v12  ;;  %v192_v39 = vsel %vm180_vm1, %v1227_v11, %v1242_v30 }
  0x91   :  { %v1245_v36 = vpop.permute.xlu0 %1244  ;;  %445 = vmatprep.subr.mxu0 %v199_v31  ;;  %v221_v38 = vmul.f32 %v1640_v33, %v207_v34  ;;  %532 = vmatprep.subr.mxu1 %v184_v37  ;;  %v1250_v44 = vpop.permute.xlu1 %1249  ;;  %v227_v45 = vmul.f32 %v1645_v40, %v192_v39  ;;  %v1741_v21 = vsel %vm107_vm6, 1.0, %v1364_v32 }
  0x92   :  { %v1247_v42 = vunpack.i.h.bf16 %v1245_v36  ;;  %v1246_v43 = vunpack.i.l.bf16 %v1245_v36  ;;  %v1252_v46 = vunpack.i.h.bf16 %v1250_v44  ;;  %v1251_v55 = vunpack.i.l.bf16 %v1250_v44 }
  0x93   :  { %446 = vmatpush1.msra.mxu0 %v221_v38  ;;  %533 = vmatpush1.msra.mxu1 %v227_v45 }
  0x94   :  { %v198_v48 = vsel %vm180_vm1, %v1241_v41, %v1247_v42  ;;  %v206_v49 = vsel %vm180_vm1, %v1246_v43, %v1241_v41  ;;  %v183_v52 = vsel %vm180_vm1, %v1252_v46, %v1236_v27  ;;  %v191_v54 = vsel %vm180_vm1, %v1237_v26, %v1252_v46 }
  0x95   :  { %v1255_v51 = vpop.permute.xlu0 %1254  ;;  %447 = vmatprep.subr.mxu0 %v198_v48  ;;  %v217_v53 = vmul.f32 %v1640_v33, %v206_v49  ;;  %v1260_v58 = vpop.permute.xlu1 %1259  ;;  %534 = vmatprep.subr.mxu1 %v183_v52  ;;  %v223_v59 = vmul.f32 %v1645_v40, %v191_v54 }
  0x96   :  { %v1257_v56 = vunpack.i.h.bf16 %v1255_v51  ;;  %v1256_v57 = vunpack.i.l.bf16 %v1255_v51  ;;  %v1262_v60 = vunpack.i.h.bf16 %v1260_v58  ;;  %v1261_v61 = vunpack.i.l.bf16 %v1260_v58 }
  0x97   :  { %448 = vmatpush1.msra.mxu0 %v217_v53  ;;  %535 = vmatpush1.msra.mxu1 %v223_v59 }
  0x98   :  { %v197_v0 = vsel %vm180_vm1, %v1251_v55, %v1257_v56  ;;  %v205_v1 = vsel %vm180_vm1, %v1256_v57, %v1251_v55  ;;  %v325_v4 = vsel %vm309_vm5, %v1261_v61, %v1262_v60 }
  0x99   :  { %v1265_v2 = vpop.permute.xlu0 %1264  ;;  %449 = vmatprep.subr.mxu0 %v197_v0  ;;  %v213_v6 = vmul.f32 %v1640_v33, %v205_v1  ;;  %v1270_v5 = vpop.permute.xlu1 %1269  ;;  %v371_v8 = vmul.f32 %v1720_v62, %v325_v4 }
  0x9a   :  { %v1267_v7 = vunpack.i.h.bf16 %v1265_v2  ;;  %v1266_v3 = vunpack.i.l.bf16 %v1265_v2  ;;  %v1272_v9 = vunpack.i.h.bf16 %v1270_v5  ;;  %v1271_v10 = vunpack.i.l.bf16 %v1270_v5 }
  0x9b   :  { %450 = vmatpush1.msra.mxu0 %v213_v6 }
  0x9c   :  { %467 = vmatprep.subr.mxu0 %v371_v8  ;;  %v182_v11 = vsel %vm180_vm1, %v1266_v3, %v1246_v43  ;;  %v190_v12 = vsel %vm180_vm1, %v1247_v42, %v1266_v3  ;;  %v189_v13 = vsel %vm180_vm1, %v1257_v56, %v1267_v7  ;;  %v324_v16 = vsel %vm309_vm5, %v1271_v10, %v1272_v9 }
  0x9d   :  { %v1275_v14 = vpop.permute.xlu0 %1274  ;;  %536 = vmatprep.subr.mxu1 %v182_v11  ;;  %v219_v15 = vmul.f32 %v1645_v40, %v190_v12  ;;  %v1280_v19 = vpop.permute.xlu1 %1279  ;;  %v367_v20 = vmul.f32 %v1720_v62, %v324_v16  ;;  %v181_v26 = vsel %vm180_vm1, %v1267_v7, %v1256_v57  ;;  %v215_v27 = vmul.f32 %v1645_v40, %v189_v13 }
  0x9e   :  { %v1277_v17 = vunpack.i.h.bf16 %v1275_v14  ;;  %v1276_v18 = vunpack.i.l.bf16 %v1275_v14  ;;  %v1282_v24 = vunpack.i.h.bf16 %v1280_v19  ;;  %v1281_v25 = vunpack.i.l.bf16 %v1280_v19 }
  0x9f   :  { %537 = vmatpush1.msra.mxu1 %v219_v15 }
  0xa0   :  { %538 = vmatprep.subr.mxu1 %v181_v26  ;;  %v333_v28 = vsel %vm309_vm5, %v1276_v18, %v1261_v61  ;;  %v341_v30 = vsel %vm309_vm5, %v1282_v24, %v1276_v18  ;;  %v323_v32 = vsel %vm309_vm5, %v1277_v17, %v1281_v25  ;;  %v317_v39 = vsel %vm309_vm5, %v1262_v60, %v1282_v24 }
  0xa1   :  { %v1285_v29 = vpop.permute.xlu0 %1284  ;;  %468 = vmatpush2.msra.mxu0 %v333_v28  ;;  %539 = vmatpush1.msra.mxu1 %v215_v27  ;;  %v1290_v35 = vpop.permute.xlu1 %1289  ;;  %v373_v36 = vmul.f32 %v1741_v21, %v341_v30  ;;  %v363_v42 = vmul.f32 %v1720_v62, %v323_v32 }
  0xa2   :  { %v1287_v31 = vunpack.i.h.bf16 %v1285_v29  ;;  %v1286_v34 = vunpack.i.l.bf16 %v1285_v29  ;;  %469 = vmatprep.subr.mxu0 %v367_v20  ;;  %v1292_v37 = vunpack.i.h.bf16 %v1290_v35  ;;  %v1291_v38 = vunpack.i.l.bf16 %v1290_v35 }
  0xa3   :  { %556 = vmatprep.subr.mxu1 %v373_v36 }
  0xa4   :  { %v332_v41 = vsel %vm309_vm5, %v1286_v34, %v1271_v10  ;;  %557 = vmatpush2.msra.mxu1 %v317_v39  ;;  %v340_v44 = vsel %vm309_vm5, %v1292_v37, %v1286_v34  ;;  %v322_v45 = vsel %vm309_vm5, %v1287_v31, %v1291_v38  ;;  %v316_v52 = vsel %vm309_vm5, %v1272_v9, %v1292_v37 }
  0xa5   :  { %v1295_v43 = vpop.permute.xlu0 %1294  ;;  %470 = vmatpush2.msra.mxu0 %v332_v41  ;;  %v1300_v48 = vpop.permute.xlu1 %1299  ;;  %v369_v49 = vmul.f32 %v1741_v21, %v340_v44  ;;  %v359_v54 = vmul.f32 %v1720_v62, %v322_v45 }
  0xa6   :  { %v1297_v46 = vunpack.i.h.bf16 %v1295_v43  ;;  %v1296_v47 = vunpack.i.l.bf16 %v1295_v43  ;;  %471 = vmatprep.subr.mxu0 %v363_v42  ;;  %v1302_v50 = vunpack.i.h.bf16 %v1300_v48  ;;  %v1301_v51 = vunpack.i.l.bf16 %v1300_v48 }
  0xa7   :  { %558 = vmatprep.subr.mxu1 %v369_v49 }
  0xa8   :  { %v331_v53 = vsel %vm309_vm5, %v1296_v47, %v1277_v17  ;;  %559 = vmatpush2.msra.mxu1 %v316_v52  ;;  %v339_v56 = vsel %vm309_vm5, %v1302_v50, %v1296_v47  ;;  %v321_v57 = vsel %vm309_vm5, %v1297_v46, %v1301_v51  ;;  %v315_v1 = vsel %vm309_vm5, %v1281_v25, %v1302_v50  ;;  %v374_v47 = vld [vmem:[%s2228_s1] sm:$0xff] }
  0xa9   :  { %v1305_v55 = vpop.permute.xlu0 %1304  ;;  %472 = vmatpush2.msra.mxu0 %v331_v53  ;;  %v1310_v60 = vpop.permute.xlu1 %1309  ;;  %v365_v61 = vmul.f32 %v1741_v21, %v339_v56  ;;  %v355_v6 = vmul.f32 %v1720_v62, %v321_v57  ;;  %v378_v56 = vld [vmem:[%s2228_s1 + $0x20] sm:$0xff]  ;;  %v381_v57 = vld [vmem:[%s2228_s1 + $0x38] sm:$0xff] }
  0xaa   :  { %v1307_v58 = vunpack.i.h.bf16 %v1305_v55  ;;  %v1306_v59 = vunpack.i.l.bf16 %v1305_v55  ;;  %473 = vmatprep.subr.mxu0 %v359_v54  ;;  %v1312_v63 = vunpack.i.h.bf16 %v1310_v60  ;;  %v1311_v0 = vunpack.i.l.bf16 %v1310_v60  ;;  %v376_v54 = vld [vmem:[%s2228_s1 + $0x10] sm:$0xff]  ;;  %v379_v55 = vld [vmem:[%s2228_s1 + $0x28] sm:$0xff] }
  0xab   :  { %560 = vmatprep.subr.mxu1 %v365_v61 }
  0xac   :  { %v330_v2 = vsel %vm309_vm5, %v1306_v59, %v1287_v31  ;;  %561 = vmatpush2.msra.mxu1 %v315_v1  ;;  %v338_v7 = vsel %vm309_vm5, %v1312_v63, %v1306_v59  ;;  %v320_v3 = vsel %vm309_vm5, %v1307_v58, %v1311_v0  ;;  %v314_v13 = vsel %vm309_vm5, %v1291_v38, %v1312_v63 }
  0xad   :  { %v1315_v4 = vpop.permute.xlu0 %1314  ;;  %474 = vmatpush2.msra.mxu0 %v330_v2  ;;  %v1320_v9 = vpop.permute.xlu1 %1319  ;;  %v361_v10 = vmul.f32 %v1741_v21, %v338_v7  ;;  %v351_v15 = vmul.f32 %v1720_v62, %v320_v3 }
  0xae   :  { %v1317_v5 = vunpack.i.h.bf16 %v1315_v4  ;;  %v1316_v8 = vunpack.i.l.bf16 %v1315_v4  ;;  %475 = vmatprep.subr.mxu0 %v355_v6  ;;  %v1322_v11 = vunpack.i.h.bf16 %v1320_v9  ;;  %v1321_v12 = vunpack.i.l.bf16 %v1320_v9 }
  0xaf   :  { %562 = vmatprep.subr.mxu1 %v361_v10 }
  0xb0   :  { %v329_v14 = vsel %vm309_vm5, %v1316_v8, %v1297_v46  ;;  %563 = vmatpush2.msra.mxu1 %v314_v13  ;;  %v337_v17 = vsel %vm309_vm5, %v1322_v11, %v1316_v8  ;;  %v319_v18 = vsel %vm309_vm5, %v1317_v5, %v1321_v12  ;;  %v313_v28 = vsel %vm309_vm5, %v1301_v51, %v1322_v11  ;;  %v377_v51 = vld [vmem:[%s2228_s1 + $0x18] sm:$0xff] }
  0xb1   :  { %v1325_v16 = vpop.permute.xlu0 %1324  ;;  %476 = vmatpush2.msra.mxu0 %v329_v14  ;;  %v1330_v24 = vpop.permute.xlu1 %1329  ;;  %v357_v25 = vmul.f32 %v1741_v21, %v337_v17  ;;  %v347_v30 = vmul.f32 %v1720_v62, %v319_v18 }
  0xb2   :  { %v1327_v19 = vunpack.i.h.bf16 %v1325_v16  ;;  %v1326_v20 = vunpack.i.l.bf16 %v1325_v16  ;;  %477 = vmatprep.subr.mxu0 %v351_v15  ;;  %v1332_v26 = vunpack.i.h.bf16 %v1330_v24  ;;  %v1331_v27 = vunpack.i.l.bf16 %v1330_v24 }
  0xb3   :  { %564 = vmatprep.subr.mxu1 %v357_v25 }
  0xb4   :  { %v328_v29 = vsel %vm309_vm5, %v1326_v20, %v1307_v58  ;;  %565 = vmatpush2.msra.mxu1 %v313_v28  ;;  %v336_v31 = vsel %vm309_vm5, %v1332_v26, %v1326_v20  ;;  %v318_v34 = vsel %vm309_vm5, %v1327_v19, %v1331_v27  ;;  %v312_v42 = vsel %vm309_vm5, %v1311_v0, %v1332_v26  ;;  %v380_v58 = vld [vmem:[%s2228_s1 + $0x30] sm:$0xff] }
  0xb5   :  { %v1335_v32 = vpop.permute.xlu0 %1334  ;;  %478 = vmatpush2.msra.mxu0 %v328_v29  ;;  %v1340_v37 = vpop.permute.xlu1 %1339  ;;  %v353_v38 = vmul.f32 %v1741_v21, %v336_v31  ;;  %v343_v44 = vmul.f32 %v1720_v62, %v318_v34 }
  0xb6   :  { %v1337_v35 = vunpack.i.h.bf16 %v1335_v32  ;;  %v1336_v36 = vunpack.i.l.bf16 %v1335_v32  ;;  %479 = vmatprep.subr.mxu0 %v347_v30  ;;  %v1342_v39 = vunpack.i.h.bf16 %v1340_v37  ;;  %v1341_v41 = vunpack.i.l.bf16 %v1340_v37 }
  0xb7   :  { %566 = vmatprep.subr.mxu1 %v353_v38 }
  0xb8   :  { %v327_v43 = vsel %vm309_vm5, %v1336_v36, %v1317_v5  ;;  %v335_v45 = vsel %vm309_vm5, %v1337_v35, %v1336_v36  ;;  %567 = vmatpush2.msra.mxu1 %v312_v42  ;;  %v334_v48 = vsel %vm309_vm5, %v1342_v39, %v1341_v41  ;;  %v326_v49 = vsel %vm309_vm5, %v1341_v41, %v1327_v19 }
  0xb9   :  { %480 = vmatpush2.msra.mxu0 %v327_v43  ;;  %v349_v46 = vmul.f32 %v1741_v21, %v335_v45  ;;  %v345_v50 = vmul.f32 %v1741_v21, %v334_v48  ;;  %v311_v52 = vsel %vm309_vm5, %v1321_v12, %v1337_v35  ;;  %v310_v53 = vsel %vm309_vm5, %v1331_v27, %v1342_v39 }
  0xba   :  { %481 = vmatprep.subr.mxu0 %v343_v44 }
  0xbb   :  { %482 = vmatpush2.msra.mxu0 %v326_v49  ;;  %568 = vmatprep.subr.mxu1 %v349_v46 }
  0xbc   :  { %484 = vmatmul.mubr.f32.vlgmr.msra.gmra.mxu0 %v374_v47  ;;  %569 = vmatpush2.msra.mxu1 %v311_v52 }
  0xbd   :  { %570 = vmatprep.subr.mxu1 %v345_v50  ;;  %1171 = vmatprep.mubr.msk.f32.mxu0 %vm406_vm0, %v377_v51 }
  0xbe   :  { %571 = vmatpush2.msra.mxu1 %v310_v53 }
  0xbf   :  { %573 = vmatmul.mubr.f32.vlgmr.msra.gmra.mxu1 %v374_v47 }
  0xc0   :  { %490 = vmatmul.mubr.f32.gmra.mxu0 %v376_v54  ;;  %1175 = vmatprep.mubr.msk.f32.mxu1 %vm406_vm0, %v377_v51 }
  0xc1   :  { %1172 = vmatprep.mubr.msk.f32.mxu0 %vm406_vm0, %v379_v55 }
  0xc2   :  { %v394_v60 = vpop.permute.xlu1 %393  ;;  %v389_v61 = vpop.permute.xlu0 %388 }
  0xc3   :  { %579 = vmatmul.mubr.f32.gmra.mxu1 %v376_v54 }
  0xc4   :  { %496 = vmatmul.mubr.f32.gmra.mxu0 %v378_v56  ;;  %1176 = vmatprep.mubr.msk.f32.mxu1 %vm406_vm0, %v379_v55 }
  0xc5   :  { %1173 = vmatprep.mubr.msk.f32.mxu0 %vm406_vm0, %v381_v57 }
  0xc6   :  { %v399_v10 = vpop.permute.xlu1 %398  ;;  %v404_v34 = vpop.permute.xlu0 %403 }
  0xc7   :  { %585 = vmatmul.mubr.f32.gmra.mxu1 %v378_v56 }
  0xc8   :  { %502 = vmatmul.mubr.f32.gmra.mxu0 %v380_v58  ;;  %1177 = vmatprep.mubr.msk.f32.mxu1 %vm406_vm0, %v381_v57 }
  0xcb   :  { %591 = vmatmul.mubr.f32.gmra.mxu1 %v380_v58 }
 0x17c   :  { %v485_v59 = vpop.f32.mrf.mxu0 }
 0x17d   :  { %v486_v0 = vadd.f32 %v485_v59, %v389_v61 }
 0x17e   :  { %v487_v63 = vpop.f32.mrf.mxu0 }
 0x17f   :  { %v488_v1 = vadd.f32 %v487_v63, %v389_v61  ;;  %v574_v2 = vpop.f32.mrf.mxu1 }
 0x180   :  { %v575_v6 = vadd.f32 %v574_v2, %v389_v61  ;;  %v491_v4 = vpop.f32.mrf.mxu0 }
 0x181   :  { %v597_v7 = vadd.f32 %v488_v1, %v486_v0  ;;  %v576_v3 = vpop.f32.mrf.mxu1  ;;  %v492_v5 = vadd.f32 %v491_v4, %v394_v60 }
 0x182   :  { %v577_v8 = vadd.f32 %v576_v3, %v389_v61  ;;  %v493_v9 = vpop.f32.mrf.mxu0 }
 0x183   :  { %v598_v11 = vadd.f32 %v597_v7, %v575_v6  ;;  %v494_v12 = vadd.f32 %v493_v9, %v394_v60  ;;  %v580_v13 = vpop.f32.mrf.mxu1 }
 0x184   :  { %v581_v14 = vadd.f32 %v580_v13, %v394_v60  ;;  %v497_v15 = vpop.f32.mrf.mxu0 }
 0x185   :  { %v602_v16 = vadd.f32 %v494_v12, %v492_v5  ;;  %v582_v17 = vpop.f32.mrf.mxu1  ;;  %v498_v18 = vadd.f32 %v497_v15, %v399_v10  ;;  %v599_v19 = vadd.f32 %v598_v11, %v577_v8 }
 0x186   :  { %v583_v20 = vadd.f32 %v582_v17, %v394_v60  ;;  %v499_v24 = vpop.f32.mrf.mxu0 }
 0x187   :  { %v603_v25 = vadd.f32 %v602_v16, %v581_v14  ;;  %v500_v26 = vadd.f32 %v499_v24, %v399_v10  ;;  %v586_v27 = vpop.f32.mrf.mxu1  ;;  %600 = vadd.xlane.f32.xlu1 %v599_v19 }
 0x188   :  { %v587_v28 = vadd.f32 %v586_v27, %v399_v10  ;;  %v503_v29 = vpop.f32.mrf.mxu0 }
 0x189   :  { %v607_v30 = vadd.f32 %v500_v26, %v498_v18  ;;  %v588_v32 = vpop.f32.mrf.mxu1  ;;  %v604_v31 = vadd.f32 %v603_v25, %v583_v20  ;;  %v504_v38 = vadd.f32 %v503_v29, %v404_v34 }
 0x18a   :  { %v589_v35 = vadd.f32 %v588_v32, %v399_v10  ;;  %v505_v36 = vpop.f32.mrf.mxu0 }
 0x18b   :  { %v608_v37 = vadd.f32 %v607_v30, %v587_v28  ;;  %v506_v39 = vadd.f32 %v505_v36, %v404_v34  ;;  %v592_v41 = vpop.f32.mrf.mxu1  ;;  %605 = vadd.xlane.f32.xlu0 %v604_v31 }
 0x18c   :  { %v593_v42 = vadd.f32 %v592_v41, %v404_v34 }
 0x18d   :  { %v612_v43 = vadd.f32 %v506_v39, %v504_v38  ;;  %v594_v44 = vpop.f32.mrf.mxu1  ;;  %v609_v45 = vadd.f32 %v608_v37, %v589_v35 }
 0x18e   :  { %v595_v46 = vadd.f32 %v594_v44, %v404_v34  ;;  %v730_v44 = vld [vmem:[%s2230_s4] sm:$0xff] }
 0x18f   :  { %v613_v47 = vadd.f32 %v612_v43, %v593_v42  ;;  %610 = vadd.xlane.f32.xlu0 %v609_v45  ;;  %v731_v43 = vld [vmem:[%s2230_s4 + $0x8] sm:$0xff]  ;;  %v732_v45 = vld [vmem:[%s2230_s4 + $0x10] sm:$0xff] }
 0x191   :  { %v614_v48 = vadd.f32 %v613_v47, %v595_v46  ;;  %v915_v47 = vld [vmem:[%s2231_s5 + $0x8] sm:$0xff] }
 0x193   :  { %615 = vadd.xlane.f32.xlu1 %v614_v48  ;;  %v914_v48 = vld [vmem:[%s2231_s5] sm:$0xff] }
 0x210   :  { %v601_v49 = vpop.xlane.xlu1 %600 }
 0x211   :  { %v618_v50 = vmul.f32 0.001953125, %v601_v49  ;;  %v955_v49 = vld [vmem:[%s2232_s6 + $0x8] sm:$0xff] }
 0x213   :  { %v1847_v51 = vsub.f32 %v486_v0, %v618_v50  ;;  %v1849_v52 = vsub.f32 %v488_v1, %v618_v50  ;;  %v1851_v53 = vsub.f32 %v575_v6, %v618_v50  ;;  %v1853_v55 = vsub.f32 %v577_v8, %v618_v50  ;;  %v954_v50 = vld [vmem:[%s2232_s6] sm:$0xff] }
 0x214   :  { %v606_v54 = vpop.xlane.xlu0 %605 }
 0x215   :  { %v619_v56 = vmul.f32 0.001953125, %v606_v54  ;;  %v638_v57 = vmul.f32 %v1847_v51, %v1847_v51  ;;  %v639_v58 = vmul.f32 %v1849_v52, %v1849_v52  ;;  %v640_v59 = vmul.f32 %v1851_v53, %v1851_v53  ;;  %v956_v54 = vld [vmem:[%s2232_s6 + $0x10] sm:$0xff] }
 0x216   :  { %v641_v2 = vmul.f32 %v1853_v55, %v1853_v55 }
 0x217   :  { %v1861_v60 = vsub.f32 %v492_v5, %v619_v56  ;;  %v1863_v61 = vsub.f32 %v494_v12, %v619_v56  ;;  %v654_v63 = vadd.f32 %v639_v58, %v638_v57  ;;  %v1865_v0 = vsub.f32 %v581_v14, %v619_v56  ;;  %v1010_v57 = vld [vmem:[%s2233_s7] sm:$0xff] }
 0x218   :  { %v611_v1 = vpop.xlane.xlu0 %610  ;;  %v1869_v6 = vsub.f32 %v583_v20, %v619_v56  ;;  %v916_v56 = vld [vmem:[%s2231_s5 + $0x10] sm:$0xff] }
 0x219   :  { %v620_v4 = vmul.f32 0.001953125, %v611_v1  ;;  %v655_v7 = vadd.f32 %v654_v63, %v640_v59  ;;  %v642_v3 = vmul.f32 %v1861_v60, %v1861_v60  ;;  %v643_v5 = vmul.f32 %v1863_v61, %v1863_v61 }
 0x21a   :  { %v644_v8 = vmul.f32 %v1865_v0, %v1865_v0  ;;  %v645_v14 = vmul.f32 %v1869_v6, %v1869_v6 }
 0x21b   :  { %v1877_v9 = vsub.f32 %v498_v18, %v620_v4  ;;  %v1879_v10 = vsub.f32 %v500_v26, %v620_v4  ;;  %v656_v11 = vadd.f32 %v655_v7, %v641_v2  ;;  %v659_v12 = vadd.f32 %v643_v5, %v642_v3 }
 0x21c   :  { %v616_v13 = vpop.xlane.xlu1 %615  ;;  %v1883_v15 = vsub.f32 %v587_v28, %v620_v4  ;;  %v1885_v16 = vsub.f32 %v589_v35, %v620_v4 }
 0x21d   :  { %v621_v17 = vmul.f32 0.001953125, %v616_v13  ;;  %657 = vadd.xlane.f32.xlu0 %v656_v11  ;;  %v660_v19 = vadd.f32 %v659_v12, %v644_v8  ;;  %v646_v20 = vmul.f32 %v1877_v9, %v1877_v9  ;;  %v647_v18 = vmul.f32 %v1879_v10, %v1879_v10  ;;  %v686_v13 = vld [vmem:[%s2234_s3] sm:$0xff] }
 0x21e   :  { %v648_v24 = vmul.f32 %v1883_v15, %v1883_v15  ;;  %v649_v29 = vmul.f32 %v1885_v16, %v1885_v16 }
 0x21f   :  { %v1893_v25 = vsub.f32 %v504_v38, %v621_v17  ;;  %v1895_v26 = vsub.f32 %v506_v39, %v621_v17  ;;  %v661_v27 = vadd.f32 %v660_v19, %v645_v14  ;;  %v664_v28 = vadd.f32 %v647_v18, %v646_v20  ;;  %v687_v19 = vld [vmem:[%s2234_s3 + $0x8] sm:$0xff]  ;;  %v957_v18 = vld [vmem:[%s2232_s6 + $0x18] sm:$0xff] }
 0x220   :  { %v1899_v30 = vsub.f32 %v593_v42, %v621_v17  ;;  %v1901_v31 = vsub.f32 %v595_v46, %v621_v17  ;;  %v733_v46 = vld [vmem:[%s2230_s4 + $0x18] sm:$0xff] }
 0x221   :  { %662 = vadd.xlane.f32.xlu1 %v661_v27  ;;  %v665_v32 = vadd.f32 %v664_v28, %v648_v24  ;;  %v650_v34 = vmul.f32 %v1893_v25, %v1893_v25  ;;  %v651_v35 = vmul.f32 %v1895_v26, %v1895_v26  ;;  %v688_v27 = vld [vmem:[%s2234_s3 + $0x10] sm:$0xff] }
 0x222   :  { %v652_v37 = vmul.f32 %v1899_v30, %v1899_v30  ;;  %v653_v39 = vmul.f32 %v1901_v31, %v1901_v31 }
 0x223   :  { %v666_v36 = vadd.f32 %v665_v32, %v649_v29  ;;  %v669_v38 = vadd.f32 %v651_v35, %v650_v34  ;;  %v689_v32 = vld [vmem:[%s2234_s3 + $0x18] sm:$0xff]  ;;  %v1011_v35 = vld [vmem:[%s2233_s7 + $0x8] sm:$0xff] }
 0x225   :  { %667 = vadd.xlane.f32.xlu0 %v666_v36  ;;  %v670_v41 = vadd.f32 %v669_v38, %v652_v37  ;;  %v917_v37 = vld [vmem:[%s2231_s5 + $0x18] sm:$0xff] }
 0x226   :  { %v1013_v38 = vld [vmem:[%s2233_s7 + $0x18] sm:$0xff] }
 0x227   :  { %v671_v42 = vadd.f32 %v670_v41, %v653_v39  ;;  %v1012_v39 = vld [vmem:[%s2233_s7 + $0x10] sm:$0xff]  ;;  %v14_v41 = vstv %s2235_s8 }
 0x228   :  { %15 = vst [vmem:[#allocation2] sm:$0x1] %v14_v41 }
 0x229   :  { %672 = vadd.xlane.f32.xlu1 %v671_v42 }
 0x23a   :  { %741 = vperm.xlu1 %1344, %v731_v43  }
 0x23b   :  { %736 = vperm.xlu0 %1343, %v730_v44  }
 0x23e   :  { %746 = vperm.xlu1 %1344, %v732_v45  }
 0x23f   :  { %751 = vperm.xlu0 %1343, %v733_v46  }
 0x242   :  { %925 = vperm.xlu1 %1344, %v915_v47  }
 0x243   :  { %920 = vperm.xlu0 %1343, %v914_v48  }
 0x246   :  { %965 = vperm.xlu1 %1344, %v955_v49  }
 0x247   :  { %960 = vperm.xlu0 %1343, %v954_v50  }
 0x24a   :  { %970 = vperm.xlu1 %1344, %v956_v54  }
 0x24b   :  { %930 = vperm.xlu0 %1343, %v916_v56  }
 0x24f   :  { %1016 = vperm.xlu0 %1343, %v1010_v57  }
 0x2a6   :  { %v658_v58 = vpop.xlane.xlu0 %657 }
 0x2a7   :  { %v674_v59 = vmul.f32 0.001953125, %v658_v58 }
 0x2a9   :  { %v678_v63 = vadd.f32 1e-05, %v674_v59 }
 0x2aa   :  { %v663_v1 = vpop.xlane.xlu1 %662 }
 0x2ab   :  { %1345 = vrsqrt.f32 %v678_v63  ;;  %v675_v2 = vmul.f32 0.001953125, %v663_v1 }
 0x2ad   :  { %v679_v4 = vadd.f32 1e-05, %v675_v2 }
 0x2ae   :  { %v668_v7 = vpop.xlane.xlu0 %667 }
 0x2af   :  { %1347 = vrsqrt.f32 %v679_v4  ;;  %v676_v3 = vmul.f32 0.001953125, %v668_v7 }
 0x2b1   :  { %v680_v5 = vadd.f32 1e-05, %v676_v3 }
 0x2b2   :  { %v673_v8 = vpop.xlane.xlu1 %672 }
 0x2b3   :  { %1349 = vrsqrt.f32 %v680_v5  ;;  %v677_v11 = vmul.f32 0.001953125, %v673_v8 }
 0x2b5   :  { %v681_v12 = vadd.f32 1e-05, %v677_v11 }
 0x2b6   :  { %v737_v42 = vpop.permute.xlu0 %736  ;;  %v1974_v44 = vpop.permute.xlu1 %741 }
 0x2b7   :  { %1351 = vrsqrt.f32 %v681_v12 }
 0x2b8   :  { %v1346_v14 = vpop.eup %1345 }
 0x2b9   :  { %v690_v17 = vmul.f32 %v1346_v14, %v686_v13 }
 0x2ba   :  { %v752_v43 = vpop.permute.xlu0 %751  ;;  %v747_v46 = vpop.permute.xlu1 %746 }
 0x2bb   :  { %696 = vperm.xlu0 %1343, %v690_v17  }
 0x2bc   :  { %v1348_v20 = vpop.eup %1347 }
 0x2bd   :  { %v691_v24 = vmul.f32 %v1348_v20, %v687_v19 }
 0x2be   :  { %v1976_v45 = vpop.permute.xlu0 %920  ;;  %v1980_v48 = vpop.permute.xlu1 %925 }
 0x2bf   :  { %975 = vperm.xlu0 %1343, %v957_v18   ;;  %701 = vperm.xlu1 %1344, %v691_v24  }
 0x2c0   :  { %v1350_v28 = vpop.eup %1349 }
 0x2c1   :  { %v692_v29 = vmul.f32 %v1350_v28, %v688_v27 }
 0x2c2   :  { %v1978_v47 = vpop.permute.xlu0 %960  ;;  %v1984_v50 = vpop.permute.xlu1 %965 }
 0x2c3   :  { %706 = vperm.xlu1 %1344, %v692_v29  }
 0x2c4   :  { %v1352_v34 = vpop.eup %1351 }
 0x2c5   :  { %v693_v36 = vmul.f32 %v1352_v34, %v689_v32 }
 0x2c6   :  { %v1982_v49 = vpop.permute.xlu0 %930  ;;  %v971_v56 = vpop.permute.xlu1 %970 }
 0x2c7   :  { %1021 = vperm.xlu1 %1344, %v1011_v35   ;;  %711 = vperm.xlu0 %1343, %v693_v36  }
 0x2ca   :  { %v1986_v54 = vpop.permute.xlu0 %1016 }
 0x2cb   :  { %935 = vperm.xlu1 %1344, %v917_v37   ;;  %1031 = vperm.xlu0 %1343, %v1013_v38  }
 0x2cf   :  { %1026 = vperm.xlu1 %1344, %v1012_v39  }
 0x336   :  { %v697_v57 = vpop.permute.xlu0 %696 }
 0x337   :  { %v714_v58 = vmul.f32 %v697_v57, %v1847_v51  ;;  %v715_v59 = vmul.f32 %v697_v57, %v1849_v52  ;;  %v716_v63 = vmul.f32 %v697_v57, %v1851_v53  ;;  %v717_v4 = vmul.f32 %v697_v57, %v1853_v55 }
 0x339   :  { %v754_v1 = vadd.f32 %v737_v42, %v714_v58  ;;  %v755_v2 = vadd.f32 %v737_v42, %v715_v59  ;;  %v756_v8 = vadd.f32 %v737_v42, %v716_v63  ;;  %v757_v52 = vadd.f32 %v737_v42, %v717_v4 }
 0x33a   :  { %v702_v7 = vpop.permute.xlu1 %701  ;;  %v976_v11 = vpop.permute.xlu0 %975 }
 0x33b   :  { %v1992_v3 = vmax.f32 %v754_v1, 0.0  ;;  %v1994_v5 = vmax.f32 %v755_v2, 0.0  ;;  %v718_v12 = vmul.f32 %v702_v7, %v1861_v60  ;;  %v2005_v17 = vmax.f32 %v756_v8, 0.0 }
 0x33d   :  { %786 = vrot.lane.b32.xlu1 %v1992_v3, %s1361_s23  ;;  %794 = vrot.lane.b32.xlu0 %v1994_v5, %s1361_s23 }
 0x33e   :  { %v707_v51 = vpop.permute.xlu1 %706 }
 0x33f   :  { %v722_v53 = vmul.f32 %v707_v51, %v1877_v9  ;;  %v723_v55 = vmul.f32 %v707_v51, %v1879_v10  ;;  %v724_v13 = vmul.f32 %v707_v51, %v1883_v15  ;;  %v725_v14 = vmul.f32 %v707_v51, %v1885_v16 }
 0x340   :  { %v2011_v9 = vmax.f32 %v757_v52, 0.0  ;;  %v758_v10 = vadd.f32 %v1974_v44, %v718_v12 }
 0x341   :  { %v763_v19 = vadd.f32 %v747_v46, %v723_v55  ;;  %v762_v60 = vadd.f32 %v747_v46, %v722_v53  ;;  %v765_v20 = vadd.f32 %v747_v46, %v725_v14  ;;  %v764_v18 = vadd.f32 %v747_v46, %v724_v13  ;;  %850 = vrot.lane.b32.xlu1 %v1992_v3, %s1362_s0 }
 0x342   :  { %802 = vrot.lane.b32.xlu0 %v2005_v17, %s1361_s23  ;;  %v712_v24 = vpop.permute.xlu0 %711  ;;  %v719_v46 = vmul.f32 %v702_v7, %v1863_v61  ;;  %v2027_v57 = vmax.f32 %v758_v10, 0.0  ;;  %v720_v61 = vmul.f32 %v702_v7, %v1865_v0 }
 0x343   :  { %v726_v15 = vmul.f32 %v712_v24, %v1893_v25  ;;  %v727_v16 = vmul.f32 %v712_v24, %v1895_v26  ;;  %v728_v27 = vmul.f32 %v712_v24, %v1899_v30  ;;  %v729_v28 = vmul.f32 %v712_v24, %v1901_v31 }
 0x344   :  { %v779_v29 = vmax.f32 %v763_v19, 0.0  ;;  %v778_v32 = vmax.f32 %v762_v60, 0.0  ;;  %v781_v34 = vmax.f32 %v765_v20, 0.0  ;;  %v780_v35 = vmax.f32 %v764_v18, 0.0 }
 0x345   :  { %v766_v36 = vadd.f32 %v752_v43, %v726_v15  ;;  %v767_v37 = vadd.f32 %v752_v43, %v727_v16  ;;  %v768_v38 = vadd.f32 %v752_v43, %v728_v27  ;;  %v769_v39 = vadd.f32 %v752_v43, %v729_v28  ;;  %858 = vrot.lane.b32.xlu1 %v1994_v5, %s1362_s0 }
 0x346   :  { %810 = vrot.lane.b32.xlu0 %v2011_v9, %s1361_s23  ;;  %v2022_v25 = vmul.f32 %v971_v56, %v778_v32  ;;  %v2024_v26 = vmul.f32 %v971_v56, %v780_v35  ;;  %v2029_v58 = vmul.f32 %v971_v56, %v779_v29  ;;  %v2031_v43 = vmul.f32 %v971_v56, %v781_v34  ;;  %v2084_v52 = vpop.permute.xlu0 %1031 }
 0x347   :  { %v782_v30 = vmax.f32 %v766_v36, 0.0  ;;  %v783_v31 = vmax.f32 %v767_v37, 0.0  ;;  %v784_v41 = vmax.f32 %v768_v38, 0.0  ;;  %v785_v42 = vmax.f32 %v769_v39, 0.0 }
 0x348   :  { %v759_v4 = vadd.f32 %v1974_v44, %v719_v46  ;;  %v721_v56 = vmul.f32 %v702_v7, %v1869_v6  ;;  %v1102_v6 = vld [vmem:[#allocation2] sm:$0x1]  ;;  %v978_v37 = vmul.f32 %v1978_v47, %v1992_v3  ;;  %v980_v38 = vmul.f32 %v1978_v47, %v2005_v17 }
 0x349   :  { %v2033_v59 = vmul.f32 %v976_v11, %v782_v30  ;;  %v2035_v63 = vmul.f32 %v976_v11, %v784_v41  ;;  %v2037_v1 = vmul.f32 %v976_v11, %v783_v31  ;;  %v2039_v2 = vmul.f32 %v976_v11, %v785_v42  ;;  %866 = vrot.lane.b32.xlu1 %v2005_v17, %s1362_s0 }
 0x34a   :  { %788 = vrot.lane.b32.xlu0 %v2027_v57, %s1361_s23  ;;  %v775_v8 = vmax.f32 %v759_v4, 0.0  ;;  %v760_v11 = vadd.f32 %v1974_v44, %v720_v61  ;;  %v761_v0 = vadd.f32 %v1974_v44, %v721_v56  ;;  %v2080_v44 = vpop.permute.xlu1 %1021  ;;  %v981_v46 = vmul.f32 %v1978_v47, %v2011_v9 }
 0x34c   :  { %v776_v12 = vmax.f32 %v760_v11, 0.0  ;;  %v2058_v51 = vmax.f32 %v761_v0, 0.0  ;;  %v983_v4 = vmul.f32 %v1984_v50, %v775_v8 }
 0x34d   :  { %874 = vrot.lane.b32.xlu1 %v2011_v9, %s1362_s0 }
 0x34e   :  { %852 = vrot.lane.b32.xlu0 %v2027_v57, %s1362_s0  ;;  %v2082_v7 = vpop.permute.xlu1 %935 }
 0x351   :  { %796 = vrot.lane.b32.xlu1 %v775_v8, %s1361_s23 }
 0x352   :  { %860 = vrot.lane.b32.xlu0 %v775_v8, %s1362_s0  ;;  %v2086_v53 = vpop.permute.xlu1 %1026  ;;  %v985_v8 = vmul.f32 %v1984_v50, %v2058_v51 }
 0x355   :  { %804 = vrot.lane.b32.xlu1 %v776_v12, %s1361_s23 }
 0x356   :  { %868 = vrot.lane.b32.xlu0 %v776_v12, %s1362_s0 }
 0x359   :  { %812 = vrot.lane.b32.xlu1 %v2058_v51, %s1361_s23 }
 0x35a   :  { %876 = vrot.lane.b32.xlu0 %v2058_v51, %s1362_s0 }
 0x35d   :  { %790 = vrot.lane.b32.xlu1 %v778_v32, %s1361_s23 }
 0x35e   :  { %798 = vrot.lane.b32.xlu0 %v779_v29, %s1361_s23 }
 0x361   :  { %806 = vrot.lane.b32.xlu1 %v780_v35, %s1361_s23 }
 0x362   :  { %814 = vrot.lane.b32.xlu0 %v781_v34, %s1361_s23 }
 0x365   :  { %862 = vrot.lane.b32.xlu1 %v779_v29, %s1362_s0 }
 0x366   :  { %854 = vrot.lane.b32.xlu0 %v778_v32, %s1362_s0 }
 0x369   :  { %878 = vrot.lane.b32.xlu1 %v781_v34, %s1362_s0 }
 0x36a   :  { %870 = vrot.lane.b32.xlu0 %v780_v35, %s1362_s0 }
 0x36d   :  { %800 = vrot.lane.b32.xlu1 %v783_v31, %s1361_s23 }
 0x36e   :  { %792 = vrot.lane.b32.xlu0 %v782_v30, %s1361_s23 }
 0x371   :  { %816 = vrot.lane.b32.xlu1 %v785_v42, %s1361_s23 }
 0x372   :  { %808 = vrot.lane.b32.xlu0 %v784_v41, %s1361_s23 }
 0x375   :  { %856 = vrot.lane.b32.xlu1 %v782_v30, %s1362_s0 }
 0x376   :  { %864 = vrot.lane.b32.xlu0 %v783_v31, %s1362_s0  ;;  %v982_v31 = vmul.f32 %v1984_v50, %v2027_v57 }
 0x379   :  { %872 = vrot.lane.b32.xlu1 %v784_v41, %s1362_s0  ;;  %v984_v41 = vmul.f32 %v1984_v50, %v776_v12 }
 0x37a   :  { %880 = vrot.lane.b32.xlu0 %v785_v42, %s1362_s0  ;;  %v979_v42 = vmul.f32 %v1978_v47, %v1994_v5 }
 0x37d   :  { %1105 = vperm.xlu1 %1344, %v1102_v6  }
 0x3af   :  { %v795_v55 = vpop.permute.xlu0 %794  ;;  %v787_v13 = vpop.permute.xlu1 %786 }
 0x3b0   :  { %v826_v28 = vsel %vm180_vm1, %v787_v13, %v795_v55 }
 0x3b1   :  { %v939_v39 = vmul.f32 %v1976_v45, %v826_v28 }
 0x3b3   :  { %v851_v19 = vpop.permute.xlu1 %850  ;;  %v995_v12 = vadd.f32 %v979_v42, %v939_v39 }
 0x3b4   :  { %v803_v14 = vpop.permute.xlu0 %802 }
 0x3b5   :  { %v822_v10 = vsel %vm180_vm1, %v795_v55, %v803_v14 }
 0x3b6   :  { %v836_v29 = vmul.f32 %v1645_v40, %v822_v10 }
 0x3b7   :  { %v859_v20 = vpop.permute.xlu1 %858 }
 0x3b8   :  { %v811_v60 = vpop.permute.xlu0 %810  ;;  %v940_v3 = vmul.f32 %v1976_v45, %v836_v29 }
 0x3b9   :  { %v830_v32 = vsel %vm180_vm1, %v811_v60, %v787_v13  ;;  %v818_v17 = vsel %vm180_vm1, %v803_v14, %v811_v60  ;;  %v890_v13 = vsel %vm309_vm5, %v851_v19, %v859_v20 }
 0x3ba   :  { %v834_v61 = vmul.f32 %v1640_v33, %v830_v32  ;;  %v941_v55 = vmul.f32 %v1976_v45, %v818_v17  ;;  %v996_v10 = vadd.f32 %v980_v38, %v940_v3 }
 0x3bb   :  { %v867_v24 = vpop.permute.xlu1 %866 }
 0x3bc   :  { %v789_v18 = vpop.permute.xlu0 %788  ;;  %v886_v27 = vsel %vm309_vm5, %v859_v20, %v867_v24 }
 0x3bd   :  { %v899_v34 = vmul.f32 %v1720_v62, %v886_v27 }
 0x3bf   :  { %v875_v16 = vpop.permute.xlu1 %874  ;;  %v1035_v56 = vmul.f32 %v1986_v54, %v899_v34 }
 0x3c0   :  { %v853_v15 = vpop.permute.xlu0 %852  ;;  %v882_v57 = vsel %vm309_vm5, %v867_v24, %v875_v16  ;;  %v894_v5 = vsel %vm309_vm5, %v875_v16, %v851_v19  ;;  %v938_v24 = vmul.f32 %v1976_v45, %v834_v61 }
 0x3c1   :  { %v901_v16 = vmul.f32 %v1741_v21, %v894_v5  ;;  %v1036_v27 = vmul.f32 %v1986_v54, %v882_v57  ;;  %v1051_v28 = vadd.f32 %v1035_v56, %v995_v12 }
 0x3c3   :  { %v797_v36 = vpop.permute.xlu1 %796  ;;  %v1037_v3 = vmul.f32 %v1986_v54, %v901_v16  ;;  %v1052_v17 = vadd.f32 %v1036_v27, %v996_v10 }
 0x3c4   :  { %v861_v35 = vpop.permute.xlu0 %860  ;;  %v827_v30 = vsel %vm180_vm1, %v789_v18, %v797_v36 }
 0x3c5   :  { %v943_v11 = vmul.f32 %v1980_v48, %v827_v30  ;;  %v891_v56 = vsel %vm309_vm5, %v853_v15, %v861_v35 }
 0x3c6   :  { %v1038_v10 = vmul.f32 %v2080_v44, %v891_v56 }
 0x3c7   :  { %v805_v9 = vpop.permute.xlu1 %804  ;;  %v999_v29 = vadd.f32 %v983_v4, %v943_v11 }
 0x3c8   :  { %v869_v47 = vpop.permute.xlu0 %868  ;;  %v823_v6 = vsel %vm180_vm1, %v797_v36, %v805_v9 }
 0x3c9   :  { %v887_v0 = vsel %vm309_vm5, %v861_v35, %v869_v47  ;;  %v840_v60 = vmul.f32 %v1645_v40, %v823_v6  ;;  %v1034_v6 = vmul.f32 %v1986_v54, %v890_v13 }
 0x3ca   :  { %v903_v14 = vmul.f32 %v1720_v62, %v887_v0 }
 0x3cb   :  { %v944_v51 = vmul.f32 %v1980_v48, %v840_v60  ;;  %v813_v34 = vpop.permute.xlu1 %812 }
 0x3cc   :  { %v1039_v50 = vmul.f32 %v2080_v44, %v903_v14  ;;  %v877_v32 = vpop.permute.xlu0 %876  ;;  %v819_v45 = vsel %vm180_vm1, %v805_v9, %v813_v34  ;;  %v831_v36 = vsel %vm180_vm1, %v813_v34, %v789_v18  ;;  %v997_v9 = vadd.f32 %v981_v46, %v941_v55 }
 0x3cd   :  { %v883_v19 = vsel %vm309_vm5, %v869_v47, %v877_v32  ;;  %v895_v20 = vsel %vm309_vm5, %v877_v32, %v853_v15  ;;  %v1000_v30 = vadd.f32 %v984_v41, %v944_v51  ;;  %v838_v61 = vmul.f32 %v1640_v33, %v831_v36 }
 0x3ce   :  { %v1055_v38 = vadd.f32 %v1039_v50, %v999_v29  ;;  %v905_v39 = vmul.f32 %v1741_v21, %v895_v20  ;;  %v1040_v42 = vmul.f32 %v2080_v44, %v883_v19  ;;  %v945_v4 = vmul.f32 %v1980_v48, %v819_v45 }
 0x3cf   :  { %v791_v47 = vpop.permute.xlu1 %790  ;;  %v994_v41 = vadd.f32 %v978_v37, %v938_v24  ;;  %v942_v12 = vmul.f32 %v1980_v48, %v838_v61  ;;  %v1053_v60 = vadd.f32 %v1037_v3, %v997_v9 }
 0x3d0   :  { %v1075_v57 = vadd.f32 %v1055_v38, %v1051_v28  ;;  %v1041_v5 = vmul.f32 %v2080_v44, %v905_v39  ;;  %v1056_v18 = vadd.f32 %v1040_v42, %v1000_v30  ;;  %v799_v11 = vpop.permute.xlu0 %798  ;;  %v1001_v0 = vadd.f32 %v985_v8, %v945_v4 }
 0x3d1   :  { %v998_v16 = vadd.f32 %v982_v31, %v942_v12  ;;  %v1050_v28 = vadd.f32 %v1034_v6, %v994_v41  ;;  %v828_v44 = vsel %vm180_vm1, %v791_v47, %v799_v11 }
 0x3d2   :  { %v1084_v14 = vadd.f32 %v1056_v18, %v1052_v17  ;;  %v1057_v27 = vadd.f32 %v1041_v5, %v1001_v0  ;;  %v947_v20 = vmul.f32 %v1982_v49, %v828_v44 }
 0x3d3   :  { %v807_v35 = vpop.permute.xlu1 %806  ;;  %v1054_v29 = vadd.f32 %v1038_v10, %v998_v16 }
 0x3d4   :  { %v815_v15 = vpop.permute.xlu0 %814  ;;  %v1093_v50 = vadd.f32 %v1057_v27, %v1053_v60  ;;  %v824_v48 = vsel %vm180_vm1, %v799_v11, %v807_v35  ;;  %v1003_v56 = vadd.f32 %v2029_v58, %v947_v20 }
 0x3d5   :  { %v832_v46 = vsel %vm180_vm1, %v815_v15, %v791_v47  ;;  %v844_v54 = vmul.f32 %v1645_v40, %v824_v48  ;;  %v1066_v8 = vadd.f32 %v1054_v29, %v1050_v28  ;;  %v820_v24 = vsel %vm180_vm1, %v807_v35, %v815_v15 }
 0x3d6   :  { %v842_v37 = vmul.f32 %v1640_v33, %v832_v46  ;;  %v949_v45 = vmul.f32 %v1982_v49, %v820_v24 }
 0x3d7   :  { %v863_v13 = vpop.permute.xlu1 %862  ;;  %v948_v51 = vmul.f32 %v1982_v49, %v844_v54 }
 0x3d8   :  { %v946_v31 = vmul.f32 %v1982_v49, %v842_v37  ;;  %v855_v55 = vpop.permute.xlu0 %854  ;;  %v1005_v5 = vadd.f32 %v2031_v43, %v949_v45 }
 0x3d9   :  { %v892_v32 = vsel %vm309_vm5, %v855_v55, %v863_v13  ;;  %v1004_v42 = vadd.f32 %v2024_v26, %v948_v51 }
 0x3da   :  { %v1002_v34 = vadd.f32 %v2022_v25, %v946_v31  ;;  %v1042_v19 = vmul.f32 %v2086_v53, %v892_v32 }
 0x3db   :  { %v879_v39 = vpop.permute.xlu1 %878 }
 0x3dc   :  { %v1058_v36 = vadd.f32 %v1042_v19, %v1002_v34  ;;  %v871_v38 = vpop.permute.xlu0 %870  ;;  %v896_v25 = vsel %vm309_vm5, %v879_v39, %v855_v55 }
 0x3dd   :  { %v888_v30 = vsel %vm309_vm5, %v863_v13, %v871_v38  ;;  %v884_v3 = vsel %vm309_vm5, %v871_v38, %v879_v39  ;;  %v909_v4 = vmul.f32 %v1741_v21, %v896_v25 }
 0x3de   :  { %v1067_v17 = vadd.f32 %v1066_v8, %v1058_v36  ;;  %v907_v61 = vmul.f32 %v1720_v62, %v888_v30  ;;  %v1044_v49 = vmul.f32 %v2086_v53, %v884_v3 }
 0x3df   :  { %v1045_v26 = vmul.f32 %v2086_v53, %v909_v4  ;;  %v801_v9 = vpop.permute.xlu1 %800 }
 0x3e0   :  { %v1043_v18 = vmul.f32 %v2086_v53, %v907_v61  ;;  %v1060_v11 = vadd.f32 %v1044_v49, %v1004_v42  ;;  %v793_v47 = vpop.permute.xlu0 %792 }
 0x3e1   :  { %v1061_v12 = vadd.f32 %v1045_v26, %v1005_v5  ;;  %v829_v15 = vsel %vm180_vm1, %v793_v47, %v801_v9 }
 0x3e2   :  { %v1059_v41 = vadd.f32 %v1043_v18, %v1003_v56  ;;  %v1085_v0 = vadd.f32 %v1084_v14, %v1060_v11 }
 0x3e3   :  { %v1094_v60 = vadd.f32 %v1093_v50, %v1061_v12  ;;  %v817_v16 = vpop.permute.xlu1 %816 }
 0x3e4   :  { %v1076_v6 = vadd.f32 %v1075_v57, %v1059_v41  ;;  %v809_v10 = vpop.permute.xlu0 %808  ;;  %v833_v58 = vsel %vm180_vm1, %v817_v16, %v793_v47 }
 0x3e5   :  { %v825_v27 = vsel %vm180_vm1, %v801_v9, %v809_v10  ;;  %v846_v53 = vmul.f32 %v1640_v33, %v833_v58  ;;  %v821_v14 = vsel %vm180_vm1, %v809_v10, %v817_v16  ;;  %v951_v33 = vmul.f32 %v2082_v7, %v829_v15 }
 0x3e6   :  { %v848_v43 = vmul.f32 %v1645_v40, %v825_v27  ;;  %v953_v37 = vmul.f32 %v2082_v7, %v821_v14  ;;  %v1365_v14 = vmov 1966171168  }
 0x3e7   :  { %v950_v57 = vmul.f32 %v2082_v7, %v846_v53  ;;  %v857_v28 = vpop.permute.xlu1 %856  ;;  %v1007_v32 = vadd.f32 %v2037_v1, %v951_v33 }
 0x3e8   :  { %v865_v35 = vpop.permute.xlu0 %864  ;;  %v952_v29 = vmul.f32 %v2082_v7, %v848_v43  ;;  %v1009_v34 = vadd.f32 %v2039_v2, %v953_v37 }
 0x3e9   :  { %v893_v50 = vsel %vm309_vm5, %v857_v28, %v865_v35  ;;  %v1006_v46 = vadd.f32 %v2033_v59, %v950_v57  ;;  %v1127_v57 = vunpack.c.l.s4 %v1365_v14 }
 0x3ea   :  { %v1046_v40 = vmul.f32 %v2084_v52, %v893_v50  ;;  %v1008_v31 = vadd.f32 %v2035_v63, %v952_v29 }
 0x3eb   :  { %v873_v8 = vpop.permute.xlu1 %872 }
 0x3ec   :  { %v1062_v48 = vadd.f32 %v1046_v40, %v1006_v46  ;;  %v881_v54 = vpop.permute.xlu0 %880  ;;  %v889_v59 = vsel %vm309_vm5, %v865_v35, %v873_v8  ;;  %v1128_v35 = vunpack.c.0.s8 %v1127_v57 }
 0x3ed   :  { %v897_v44 = vsel %vm309_vm5, %v881_v54, %v857_v28  ;;  %v885_v55 = vsel %vm309_vm5, %v873_v8, %v881_v54  ;;  %v911_v51 = vmul.f32 %v1720_v62, %v889_v59 }
 0x3ee   :  { %v1068_v13 = vadd.f32 %v1067_v17, %v1062_v48  ;;  %v913_v24 = vmul.f32 %v1741_v21, %v897_v44  ;;  %v1048_v7 = vmul.f32 %v2084_v52, %v885_v55  ;;  %v1109_v21 = vshrl.u32 %v83_v22, 7 }
 0x3ef   :  { %v1047_v20 = vmul.f32 %v2084_v52, %v911_v51 }
 0x3f0   :  { %v1069_v19 = vrot.slane %v1068_v13, 4  ;;  %v1049_v63 = vmul.f32 %v2084_v52, %v913_v24  ;;  %v1064_v45 = vadd.f32 %v1048_v7, %v1008_v31  ;;  %v1110_v61 = vsub.s32 0, %v1109_v21 }
 0x3f1   :  { %v1063_v38 = vadd.f32 %v1047_v20, %v1007_v32  ;;  %v1131_v50 = vsub.s32 %v1128_v35, %v1109_v21 }
 0x3f2   :  { %v1070_v36 = vadd.f32 %v1069_v19, %v1068_v13  ;;  %v1065_v23 = vadd.f32 %v1049_v63, %v1009_v34  ;;  %v1086_v39 = vadd.f32 %v1085_v0, %v1064_v45 }
 0x3f3   :  { %v1077_v42 = vadd.f32 %v1076_v6, %v1063_v38 }
 0x3f4   :  { %v1071_v30 = vrot.slane %v1070_v36, 2  ;;  %v1095_v62 = vadd.f32 %v1094_v60, %v1065_v23  ;;  %v1087_v3 = vrot.slane %v1086_v39, 4 }
 0x3f5   :  { %v1078_v17 = vrot.slane %v1077_v42, 4 }
 0x3f6   :  { %v1072_v25 = vadd.f32 %v1071_v30, %v1070_v36  ;;  %v1096_v1 = vrot.slane %v1095_v62, 4  ;;  %v1088_v2 = vadd.f32 %v1087_v3, %v1086_v39 }
 0x3f7   :  { %v1079_v49 = vadd.f32 %v1078_v17, %v1077_v42 }
 0x3f8   :  { %v1097_v4 = vadd.f32 %v1096_v1, %v1095_v62  ;;  %v1089_v56 = vrot.slane %v1088_v2, 2  ;;  %v1073_v52 = vrot.slane %v1072_v25, 1  ;;  %v1106_v5 = vpop.permute.xlu1 %1105 }
 0x3f9   :  { %v1080_v26 = vrot.slane %v1079_v49, 2  ;;  %v1111_v9 = vrot.slane %v1106_v5, %v1110_v61 }
 0x3fa   :  { %v1098_v18 = vrot.slane %v1097_v4, 2  ;;  %v1090_v11 = vadd.f32 %v1089_v56, %v1088_v2  ;;  %v1074_v47 = vadd.f32 %v1073_v52, %v1072_v25 }
 0x3fb   :  { %v1081_v41 = vadd.f32 %v1080_v26, %v1079_v49 }
 0x3fc   :  { %v1091_v12 = vrot.slane %v1090_v11, 1  ;;  %v1099_v0 = vadd.f32 %v1098_v18, %v1097_v4  ;;  %v1112_v16 = vadd.f32 %v1111_v9, %v1074_v47 }
 0x3fd   :  { %v1082_v6 = vrot.slane %v1081_v41, 1 }
 0x3fe   :  { %v1092_v60 = vadd.f32 %v1091_v12, %v1090_v11  ;;  %v1100_v10 = vrot.slane %v1099_v0, 1  ;;  %1353 = vtanh.f32 %v1112_v16 }
 0x3ff   :  { %v1083_v27 = vadd.f32 %v1082_v6, %v1081_v41 }
 0x400   :  { %v1101_v58 = vadd.f32 %v1100_v10, %v1099_v0  ;;  %v1114_v43 = vadd.f32 %v1111_v9, %v1092_v60 }
 0x401   :  { %v1113_v53 = vadd.f32 %v1111_v9, %v1083_v27 }
 0x402   :  { %v1115_v15 = vadd.f32 %v1111_v9, %v1101_v58  ;;  %1355 = vtanh.f32 %v1114_v43 }
 0x403   :  { %1357 = vtanh.f32 %v1113_v53 }
 0x404   :  { %1359 = vtanh.f32 %v1115_v15 }
 0x40b   :  { %v1354_v28 = vpop.eup %1353 }
 0x40f   :  { %v1356_v29 = vpop.eup %1355 }
 0x410   :  { %v1358_v46 = vpop.eup %1357 }
 0x411   :  { %v1360_v40 = vpop.eup %1359  ;;  %v1124_v33 = vcombine.low %v1354_v28, %v1358_v46 }
 0x412   :  { %v1125_v37 = vcombine.low %v1356_v29, %v1360_v40 }
 0x413   :  { %v1132_v48 = vrot.slane %v1124_v33, %v1131_v50 }
 0x414   :  { %v1139_v54 = vrot.slane %v1125_v37, %v1131_v50 }
 0x416   :  { %v1140_v8 = vcombine.low %v1132_v48, %v1139_v54 }
 0x418   :  { %v1147_v44 = vrot.slane %v1140_v8, %v1131_v50 }
 0x41a   :  { %1153 = vst.msk [vmem:[%s2236_s9] sm:$0xf] %vm1151_vm7, %v1147_v44 }

// kernel: decoder_forward.2
= control target key start
LH: loop header
LB: loop body
LE: loop exit
PB: predicated region body
PF: predicated region fallthrough
CT: control target
= control target key end

     0   :  { %10 = vsyncpa [#allocation3], 0  ;;  %s7919_s0 = inlined_call_operand.hbm [shape: f32[2,256], index: 0, kind: input, shape index: {}]   ;;  %s7920_s1 = inlined_call_operand.hbm [shape: bf16[256,128], index: 1, kind: input, shape index: {}]   ;;  %s7921_s2 = inlined_call_operand.hbm [shape: f32[1,128], index: 2, kind: input, shape index: {}]   ;;  %s7922_s3 = inlined_call_operand.hbm [shape: bf16[128,16384], index: 3, kind: input, shape index: {}]   ;;  %s7923_s4 = inlined_call_operand.hbm [shape: f32[1,16384], index: 4, kind: input, shape index: {}]   ;;  %s7924_s5 = inlined_call_operand.vmem [shape: bf16[2,16384], index: 5, kind: output, shape index: {}]  }
   0x1   :  { %11 = vsyncpa [#allocation5], 0 }
   0x2   :  { %12 = vsyncpa [#allocation8], 0 }
   0x3   :  { %14 = vsyncpa [#allocation8 + $0x1], 0  ;;  %s6871_s18 = smov 0   ;;  %s6873_s19 = smov 0  }
   0x4   :  { %s6875_s20 = smov 0   ;;  %s6877_s21 = smov 0  }
   0x5 LB: > { %s6890_s22 = sadd.s32 4294967295, %s6827_s21   ;;  %s6893_s23 = sadd.s32 1, %s6827_s21   ;;  %s6827_s21 = sphi %s6877_s21, %s7948_s21   ;;  %s6823_s20 = sphi %s6875_s20, %s7947_s20   ;;  %s6819_s19 = sphi %s6873_s19, %s7946_s19   ;;  %s6815_s18 = sphi %s6871_s18, %s7945_s18  }
   0x6   : > { %s87_s24 = ssub.s32 %s6827_s21, %s6893_s23  ;;  %s90_s25 = sadd.s32 1, %s6823_s20 }
   0x7   : > { %p88_p0 = scmp.eq.s32.totalorder %s87_s24, 0  ;;  %p97_p1 = scmp.ne.s32.totalorder %s6823_s20, %s6819_s19 }
   0x8   : > { %p98_p2 = scmp.eq.s32.totalorder %s6827_s21, 0  ;;  %p103_p3 = scmp.ne.s32.totalorder %s6819_s19, %s6815_s18 }
   0x9   : > { %s6903_s26 = scalar_select %p88_p0, %s6823_s20, %s90_s25  }
   0xa   : > { %p6905_p4 = por %p98_p2, %p97_p1  ;;  %p7925_p5 = scmp.eq.s32.totalorder %s6890_s22, 0 }
   0xb   : > { %7929 = sst [smem:[#allocation13_spill]] %s6903_s26  ;;  %p5947_p6 = scmp.ge.s32.totalorder %s6827_s21, 1 }
   0xc   : > { %p166_p7 = scmp.lt.s32.totalorder %s6827_s21, 3  ;;  %p6914_p8 = por %p7925_p5, %p103_p3 }
   0xd   : > { %s6829_s30 = smov [#allocation4]   ;;  %p6589_p12 = scmp.lt.s32.totalorder %s6827_s21, 2 }
   0xe   : > { %s7931_s28 = scalar_select %p6914_p8, 1, 0 }
   0xf   : > { %p6918_p9 = pnand %p5947_p6, %p166_p7  ;;  %s189_s6 = sshll.u32 %s6829_s30, 4  ;;  %s190_s6 = int_to_ptr.vmem [resolvable:$true] %s189_s6 }
  0x10   : > { %s214_s8 = sand.u32 1, %s6827_s21   ;;  %s216_s9 = sand.u32 1, %s6823_s20  }
  0x11   : > { %s7932_s29 = scalar_select %p6918_p9, 1, 0 }
  0x12   : > { %p6569_p10 = pneg %p6918_p9  ;;  %p6935_p13 = pnand %p6589_p12, %p6905_p4 }
  0x13   : > { %s6662_s11 = scalar_lea.vmem %s190_s6, 2048  ;;  %p6670_p6 = scmp.lt.s32.totalorder %s190_s6, %s190_s6 }
  0x14   : > { %p6926_p11 = pnand %p6569_p10, %p7925_p5  ;;  %p6663_p1 = scmp.ne.s32.totalorder %s190_s6, %s6662_s11 }
  0x15   : > { %p6671_p7 = scmp.lt.s32.totalorder %s6662_s11, %s6662_s11 }
  0x16   : > { %p7926_p0 = pneg %p6926_p11 }
  0x17   : > { %p6672_p10 = por %p6671_p7, %p6670_p6 }
  0x18   : > { %p6665_p2 = pnand %p6663_p1, %p7926_p0 }
  0x1a   : > { %p6666_p3 = pneg %p6665_p2 }
  0x1c   : > { %p6673_p5 = pnand %p6672_p10, %p6666_p3 }
  0x1e   : > { %6676 = shalt.err (!%p6673_p5)
}
  0x1f   : > { %s6830_s12 = smov 64   ;;  %s6831_s13 = smov 4  }
  0x20   : > { %6575 = dma.hbm_to_vmem [thread:$0]  (!%p6926_p11), %s7920_s1, 2048, %s190_s6, [#allocation5], %s6830_s12, %s6830_s12, %s6831_s13  }
  0x21   : > { %s5952_s16 = sshll.u32 %s216_s9, 12  ;;  %s6529_s17 = sshll.u32 %s6827_s21, 12 }
  0x22   : > { %s6955_s25 = scalar_lea.hbm %s7922_s3, %s6529_s17  ;;  %s218_s27 = scalar_lea.vmem [#allocation7], %s5952_s16 }
  0x23   : > { %s225_s30 = sshll.u32 %s218_s27, 4  ;;  %s6959_s11 = scalar_lea.sflag [#allocation8], %s214_s8  ;;  %s6957_s30 = int_to_ptr.vmem [resolvable:$true] %s225_s30 }
  0x24   : > { %s6677_s26 = scalar_lea.hbm %s6955_s25, 65536  ;;  %p6679_p5 = pneg %p6935_p13 }
  0x25   : > { %p6678_p4 = scmp.ne.s32.totalorder %s6955_s25, %s6677_s26  ;;  %s6682_s13 = scalar_lea.hbm %s7922_s3, 131072 }
  0x26   : > { %p6683_p2 = scmp.lt.s32.totalorder %s6955_s25, %s7922_s3  ;;  %p6684_p3 = scmp.lt.s32.totalorder %s6682_s13, %s6677_s26 }
  0x27   : > { %p6680_p12 = pnand %p6679_p5, %p6678_p4 }
  0x28   : > { %p6685_p6 = por %p6684_p3, %p6683_p2 }
  0x29   : > { %p6681_p1 = pneg %p6680_p12 }
  0x2b   : > { %p6686_p7 = pnand %p6685_p6, %p6681_p1 }
  0x2d   : > { %6689 = shalt.err (!%p6686_p7)
}
  0x2e   : > { %s6690_s8 = scalar_lea.vmem %s6957_s30, 65536  ;;  %s6832_s16 = smov [#allocation7]  }
  0x2f   : > { %p6691_p10 = scmp.ne.s32.totalorder %s6957_s30, %s6690_s8  ;;  %s6695_s17 = sshll.u32 %s6832_s16, 4  ;;  %s6696_s17 = int_to_ptr.vmem [resolvable:$false] %s6695_s17 }
  0x30   : > { %s6697_s18 = scalar_lea.vmem %s6696_s17, 131072  ;;  %p6698_p0 = scmp.lt.s32.totalorder %s6957_s30, %s6696_s17 }
  0x31   : > { %p6693_p4 = pnand %p6691_p10, %p6679_p5  ;;  %p6699_p8 = scmp.lt.s32.totalorder %s6697_s18, %s6690_s8 }
  0x33   : > { %p6694_p12 = pneg %p6693_p4  ;;  %p6700_p9 = por %p6699_p8, %p6698_p0 }
  0x35   : > { %p6701_p2 = pnand %p6700_p9, %p6694_p12 }
  0x37   : > { %6704 = shalt.err (!%p6701_p2)
}
  0x38   : > { %s6833_s26 = smov 8192   ;;  %s6834_s24 = smov 4096  }
  0x39   : > { %s6835_s27 = smov 256   ;;  %s6836_s6 = smov [#allocation2]  }
  0x3a   : > { %6582 = dma.hbm_to_vmem [thread:$0]  (!%p6935_p13), %s6955_s25, 65536, %s6957_s30, %s6959_s11, %s6833_s26, %s6834_s24, %s6835_s27  }
  0x3b   : > { %s179_s12 = sshll.u32 %s6836_s6, 4  ;;  %s6837_s13 = smov [#allocation6]   ;;  %s180_s12 = int_to_ptr.vmem [resolvable:$true] %s179_s12 }
  0x3c   : > { %s203_s14 = sshll.u32 %s6837_s13, 4  ;;  %s6716_s15 = scalar_lea.vmem %s180_s12, 64  ;;  %s204_s14 = int_to_ptr.vmem [resolvable:$true] %s203_s14 }
  0x3d   : > { %p6717_p1 = scmp.ne.s32.totalorder %s180_s12, %s6716_s15  ;;  %p7935_p8 = pneg %p6926_p11 }
  0x3e   : > { %p6724_p3 = scmp.lt.s32.totalorder %s180_s12, %s180_s12  ;;  %p6725_p6 = scmp.lt.s32.totalorder %s6716_s15, %s6716_s15 }
  0x3f   : > { %p6719_p9 = pnand %p6717_p1, %p7935_p8 }
  0x40   : > { %p6726_p7 = por %p6725_p6, %p6724_p3 }
  0x41   : > { %p6720_p0 = pneg %p6719_p9 }
  0x43   : > { %p6727_p10 = pnand %p6726_p7, %p6720_p0 }
  0x45   : > { %6730 = shalt.err (!%p6727_p10)
}
  0x46   : > { %6572 = dma.hbm_to_vmem [thread:$0]  (!%p6926_p11), %s7919_s0, 64, %s180_s12, [#allocation3]  }
  0x47   : > { %s5955_s30 = sshll.u32 %s216_s9, 6  ;;  %s6742_s16 = scalar_lea.vmem %s204_s14, 16 }
  0x48   : > { %p6743_p4 = scmp.ne.s32.totalorder %s204_s14, %s6742_s16  ;;  %p7936_p12 = pmov %p7935_p8 }
  0x49   : > { %s6749_s17 = scalar_lea.vmem %s204_s14, 32  ;;  %p6750_p8 = scmp.lt.s32.totalorder %s204_s14, %s204_s14 }
  0x4a   : > { %p6745_p2 = pnand %p6743_p4, %p7936_p12  ;;  %p6751_p9 = scmp.lt.s32.totalorder %s6749_s17, %s6742_s16 }
  0x4c   : > { %p6746_p1 = pneg %p6745_p2  ;;  %p6752_p0 = por %p6751_p9, %p6750_p8 }
  0x4e   : > { %p6753_p3 = pnand %p6752_p0, %p6746_p1 }
  0x50   : > { %6756 = shalt.err (!%p6753_p3)
}
  0x51   : > { %6578 = dma.hbm_to_vmem [thread:$0]  (!%p6926_p11), %s7921_s2, 16, %s204_s14, [#allocation5]  }
  0x52   : > { %s6530_s9 = sshll.u32 %s6827_s21, 10  ;;  %s239_s12 = scalar_lea.vmem [#allocation9], %s5955_s30 }
  0x53   : > { %s245_s6 = scalar_lea.hbm %s7923_s4, %s6530_s9  ;;  %s247_s13 = sshll.u32 %s239_s12, 4  ;;  %s248_s13 = int_to_ptr.vmem [resolvable:$true] %s247_s13 }
  0x54   : > { %s6757_s15 = scalar_lea.hbm %s245_s6, 1024  ;;  %s6762_s25 = scalar_lea.hbm %s7923_s4, 2048 }
  0x55   : > { %p6758_p6 = scmp.ne.s32.totalorder %s245_s6, %s6757_s15  ;;  %p6763_p11 = scmp.lt.s32.totalorder %s245_s6, %s7923_s4 }
  0x56   : > { %p6764_p4 = scmp.lt.s32.totalorder %s6762_s25, %s6757_s15 }
  0x57   : > { %p6760_p7 = pnand %p6758_p6, %p6679_p5 }
  0x58   : > { %p6765_p12 = por %p6764_p4, %p6763_p11 }
  0x59   : > { %p6761_p10 = pneg %p6760_p7 }
  0x5b   : > { %p6766_p2 = pnand %p6765_p12, %p6761_p10 }
  0x5d   : > { %6769 = shalt.err (!%p6766_p2)
}
  0x5e   : > { %s6770_s21 = scalar_lea.vmem %s248_s13, 1024  ;;  %s6838_s30 = smov [#allocation9]  }
  0x5f   : > { %p6771_p1 = scmp.ne.s32.totalorder %s248_s13, %s6770_s21  ;;  %s6775_s17 = sshll.u32 %s6838_s30, 4  ;;  %s6776_s17 = int_to_ptr.vmem [resolvable:$false] %s6775_s17 }
  0x60   : > { %s6777_s18 = scalar_lea.vmem %s6776_s17, 2048  ;;  %p6778_p0 = scmp.lt.s32.totalorder %s248_s13, %s6776_s17 }
  0x61   : > { %p6773_p8 = pnand %p6771_p1, %p6679_p5  ;;  %p6779_p3 = scmp.lt.s32.totalorder %s6777_s18, %s6770_s21 }
  0x63   : > { %p6774_p9 = pneg %p6773_p8  ;;  %p6780_p6 = por %p6779_p3, %p6778_p0 }
  0x65   : > { %p6781_p7 = pnand %p6780_p6, %p6774_p9 }
  0x67   : > { %6784 = shalt.err (!%p6781_p7)
}
  0x68   : > { %6585 = dma.hbm_to_vmem [thread:$0]  (!%p6935_p13), %s245_s6, 1024, %s248_s13, %s6959_s11  }
  0x69   : > { %p7937_p10 = scmp.ne.s32.totalorder %s7932_s29, 0 }
  0x6a   : > { %p7938_p11 = scmp.eq.s32.totalorder (!%p7937_p10), %s6890_s22, 0 }
  0x6b   : > { %256 = sbr.rel (%p7937_p10) target bundleno = 1048 (0x418), region = 40 }
  0x70   : > { %6802 = dma.done.wait (%p7938_p11), [#allocation3], 64   ;;  %p7939_p5 = pmov %p7938_p11 }
  0x72   : > { %6804 = vsyncadd (%p7939_p5), [#allocation3], 4294967232  ;;  %p7940_p4 = pmov %p7939_p5 }
  0x74   : > { %6806 = dma.done.wait (%p7940_p4), [#allocation5], 2064   ;;  %p7941_p12 = pmov %p7940_p4 }
  0x75   : > { %s270_s10 = sand.u32 1, %s6890_s22   ;;  %s272_s11 = sand.u32 1, %s6819_s19  }
  0x76   : > { %6808 = vsyncadd (%p7941_p12), [#allocation5], 4294965232  ;;  %s5962_s29 = sshll.u32 %s272_s11, 12  ;;  %s271_s26 = scalar_lea.sflag [#allocation8], %s270_s10 }
  0x77   : > { %s7037_s9 = scalar_lea.vmem [#allocation7], %s5962_s29  ;;  %p7942_p13 = scmp.ne.s32.totalorder %s7931_s28, 0 }
  0x79   : > { %6810 = dma.done.wait (%p7942_p13), %s271_s26, 66560  }
  0x7a   : > { %6812 = vsyncadd (%p7942_p13), %s271_s26, 4294900736  ;;  %v6635_v0 = vld [vmem:[#allocation4 + $0x78] sm:$0xff]   ;;  %v6637_v2 = vld [vmem:[#allocation4 + $0x70] sm:$0xff]   ;;  %s5963_s28 = sshll.u32 %s272_s11, 6  ;;  %s5964_s27 = sshll.u32 %s6890_s22, 6 }
  0x7b   : > { %v6636_v1 = vld [vmem:[#allocation4 + $0x38] sm:$0xff]   ;;  %6531 = vmatprep.subr.bf16.mxu0 %v6635_v0  ;;  %v6638_v3 = vld [vmem:[#allocation4 + $0x30] sm:$0xff]   ;;  %v6639_v4 = vld [vmem:[#allocation4 + $0x68] sm:$0xff]   ;;  %s7348_s24 = scalar_lea.vmem [#allocation9], %s5963_s28  ;;  %p7428_p2 = scmp.lt.s32.totalorder %s5964_s27, 127 }
  0x7c   : > { %6532 = vmatpush3.bf16.msra.mxu0 %v6636_v1  ;;  %v6640_v5 = vld [vmem:[#allocation4 + $0x28] sm:$0xff]   ;;  %v6641_v6 = vld [vmem:[#allocation4 + $0x60] sm:$0xff]   ;;  %v6643_v8 = vld [vmem:[#allocation4 + $0x58] sm:$0xff]  }
  0x7d   : > { %6533 = vmatprep.subr.bf16.mxu0 %v6637_v2  ;;  %v6642_v7 = vld [vmem:[#allocation4 + $0x20] sm:$0xff]   ;;  %v6644_v9 = vld [vmem:[#allocation4 + $0x18] sm:$0xff]   ;;  %v6645_v10 = vld [vmem:[#allocation4 + $0x50] sm:$0xff]   ;;  %s7950_s27 = smov (!%p7428_p2, %s5964_s27), 127 }
  0x7e   : > { %v5965_v11 = vld.sshfl [vmem:[#allocation2] sm:$0x33 pattern:$0x76325410]  ;;  %v961_v12 = vld [vmem:[%s7037_s9 + $0xe00] sm:$0xff]  ;;  %v6646_v19 = vld [vmem:[#allocation4 + $0x10] sm:$0xff]   ;;  %s7451_s13 = scalar_lea.vmem %s7924_s5, %s7950_s27 }
  0x7f   : > { %v993_v13 = vld [vmem:[%s7037_s9 + $0xf00] sm:$0xff]  ;;  %v331_v14 = vcombine.high %v5965_v11, %v5965_v11  ;;  %v962_v32 = vld [vmem:[%s7037_s9 + $0xe08] sm:$0xff]  ;;  %v334_v43 = vpack.c.bf16 %v5965_v11, %v5965_v11 }
  0x80   : > { %6534 = vmatpush3.bf16.msra.mxu0 %v6638_v3  ;;  %v6432_v15 = vcombine.high %v961_v12, %v993_v13  ;;  %v6431_v16 = vcombine.low %v961_v12, %v993_v13  ;;  %v897_v17 = vld [vmem:[%s7037_s9 + $0xc00] sm:$0xff]  ;;  %v994_v33 = vld [vmem:[%s7037_s9 + $0xf08] sm:$0xff] }
  0x81   : > { %6535 = vmatprep.subr.bf16.mxu0 %v6639_v4  ;;  %v929_v18 = vld [vmem:[%s7037_s9 + $0xd00] sm:$0xff]  ;;  %v335_v20 = vpack.c.bf16 %v331_v14, %v331_v14  ;;  %v6434_v38 = vcombine.high %v962_v32, %v994_v33  ;;  %v898_v40 = vld [vmem:[%s7037_s9 + $0xc08] sm:$0xff]  ;;  %v6433_v46 = vcombine.low %v962_v32, %v994_v33 }
  0x82   : > { %3921 = vmatprep.subr.bf16.mxu1 %v6432_v15  ;;  %v6368_v21 = vcombine.high %v897_v17, %v929_v18  ;;  %v833_v22 = vld [vmem:[%s7037_s9 + $0xa00] sm:$0xff]  ;;  %v6367_v25 = vcombine.low %v897_v17, %v929_v18  ;;  %v930_v41 = vld [vmem:[%s7037_s9 + $0xd08] sm:$0xff] }
  0x83   : > { %v865_v23 = vld [vmem:[%s7037_s9 + $0xb00] sm:$0xff]  ;;  %3922 = vmatpush1.bf16.msra.mxu1 %v6431_v16  ;;  %503 = vmatprep.mubr.bf16.mxu0 %v335_v20  ;;  %v6370_v47 = vcombine.high %v898_v40, %v930_v41  ;;  %v834_v49 = vld [vmem:[%s7037_s9 + $0xa08] sm:$0xff]  ;;  %v6369_v52 = vcombine.low %v898_v40, %v930_v41  ;;  %v963_v20 = vld [vmem:[%s7037_s9 + $0xe10] sm:$0xff] }
  0x84   : > { %6536 = vmatpush3.bf16.msra.mxu0 %v6640_v5  ;;  %v6647_v24 = vld [vmem:[#allocation4 + $0x48] sm:$0xff]   ;;  %3923 = vmatprep.subr.bf16.mxu1 %v6368_v21  ;;  %v6304_v26 = vcombine.high %v833_v22, %v865_v23  ;;  %v6649_v30 = vld [vmem:[#allocation4 + $0x40] sm:$0xff]   ;;  %v6303_v31 = vcombine.low %v833_v22, %v865_v23  ;;  %v995_v21 = vld [vmem:[%s7037_s9 + $0xf10] sm:$0xff] }
  0x85   : > { %6537 = vmatprep.subr.bf16.mxu0 %v6641_v6  ;;  %v769_v27 = vld [vmem:[%s7037_s9 + $0x800] sm:$0xff]  ;;  %v866_v50 = vld [vmem:[%s7037_s9 + $0xb08] sm:$0xff]  ;;  %v964_v22 = vld [vmem:[%s7037_s9 + $0xe18] sm:$0xff]  ;;  %v6436_v23 = vcombine.high %v963_v20, %v995_v21 }
  0x86   : > { %v801_v28 = vld [vmem:[%s7037_s9 + $0x900] sm:$0xff]  ;;  %v6306_v53 = vcombine.high %v834_v49, %v866_v50  ;;  %v770_v55 = vld [vmem:[%s7037_s9 + $0x808] sm:$0xff]  ;;  %v6305_v57 = vcombine.low %v834_v49, %v866_v50 }
  0x87   : > { %v6648_v29 = vld [vmem:[#allocation4 + $0x8] sm:$0xff]   ;;  %3924 = vmatpush1.bf16.msra.mxu1 %v6367_v25  ;;  %v6240_v34 = vcombine.high %v769_v27, %v801_v28  ;;  %v6650_v37 = vld [vmem:[#allocation4] sm:$0xff]   ;;  %v6239_v39 = vcombine.low %v769_v27, %v801_v28  ;;  %v6435_v25 = vcombine.low %v963_v20, %v995_v21  ;;  %v6839_v28 = vmov 0   ;;  %v515_v20 = vld [vmem:[%s7037_s9 + $0x10] sm:$0xff] }
  0x88   : > { %6538 = vmatpush3.bf16.msra.mxu0 %v6642_v7  ;;  %3925 = vmatprep.subr.bf16.mxu1 %v6304_v26  ;;  %v705_v35 = vld [vmem:[%s7037_s9 + $0x600] sm:$0xff]  ;;  %v802_v56 = vld [vmem:[%s7037_s9 + $0x908] sm:$0xff]  ;;  %v547_v21 = vld [vmem:[%s7037_s9 + $0x110] sm:$0xff] }
  0x89   : > { %6539 = vmatprep.subr.bf16.mxu0 %v6643_v8  ;;  %v737_v36 = vld [vmem:[%s7037_s9 + $0x700] sm:$0xff]  ;;  %v6242_v58 = vcombine.high %v770_v55, %v802_v56  ;;  %v706_v59 = vld [vmem:[%s7037_s9 + $0x608] sm:$0xff]  ;;  %v6241_v61 = vcombine.low %v770_v55, %v802_v56  ;;  %3953 = vmatprep.mubr.bf16.mxu1 %v6839_v28  ;;  %v804_v55 = vld [vmem:[%s7037_s9 + $0x918] sm:$0xff] }
  0x8a   : > { %v6176_v42 = vcombine.high %v705_v35, %v737_v36  ;;  %v641_v44 = vld [vmem:[%s7037_s9 + $0x400] sm:$0xff]  ;;  %v6175_v48 = vcombine.low %v705_v35, %v737_v36  ;;  %v738_v60 = vld [vmem:[%s7037_s9 + $0x708] sm:$0xff]  ;;  %v899_v35 = vld [vmem:[%s7037_s9 + $0xc10] sm:$0xff] }
  0x8b   : > { %3926 = vmatpush1.bf16.msra.mxu1 %v6303_v31  ;;  %v673_v45 = vld [vmem:[%s7037_s9 + $0x500] sm:$0xff]  ;;  %v6178_v62 = vcombine.high %v706_v59, %v738_v60  ;;  %v642_v63 = vld [vmem:[%s7037_s9 + $0x408] sm:$0xff]  ;;  %v6177_v1 = vcombine.low %v706_v59, %v738_v60  ;;  %v707_v60 = vld [vmem:[%s7037_s9 + $0x610] sm:$0xff] }
  0x8c   : > { %6540 = vmatpush3.bf16.msra.mxu0 %v6644_v9  ;;  %3927 = vmatprep.subr.bf16.mxu1 %v6240_v34  ;;  %v6112_v51 = vcombine.high %v641_v44, %v673_v45  ;;  %v6111_v54 = vcombine.low %v641_v44, %v673_v45  ;;  %v674_v0 = vld [vmem:[%s7037_s9 + $0x508] sm:$0xff]  ;;  %v577_v4 = vld [vmem:[%s7037_s9 + $0x200] sm:$0xff]  ;;  %v835_v44 = vld [vmem:[%s7037_s9 + $0xa10] sm:$0xff] }
  0x8d   : > { %6541 = vmatprep.subr.bf16.mxu0 %v6645_v10  ;;  %v6114_v2 = vcombine.high %v642_v63, %v674_v0  ;;  %v6113_v3 = vcombine.low %v642_v63, %v674_v0  ;;  %v609_v5 = vld [vmem:[%s7037_s9 + $0x300] sm:$0xff]  ;;  %v578_v6 = vld [vmem:[%s7037_s9 + $0x208] sm:$0xff]  ;;  %v867_v45 = vld [vmem:[%s7037_s9 + $0xb10] sm:$0xff] }
  0x8e   : > { %v6048_v7 = vcombine.high %v577_v4, %v609_v5  ;;  %v610_v8 = vld [vmem:[%s7037_s9 + $0x308] sm:$0xff]  ;;  %v6047_v11 = vcombine.low %v577_v4, %v609_v5  ;;  %v513_v12 = vld [vmem:[%s7037_s9] sm:$0xff]  ;;  %v6308_v50 = vcombine.high %v835_v44, %v867_v45  ;;  %v6307_v56 = vcombine.low %v835_v44, %v867_v45  ;;  %v740_v63 = vld [vmem:[%s7037_s9 + $0x718] sm:$0xff] }
  0x8f   : > { %3928 = vmatpush1.bf16.msra.mxu1 %v6239_v39  ;;  %v6049_v9 = vcombine.low %v578_v6, %v610_v8  ;;  %v6050_v10 = vcombine.high %v578_v6, %v610_v8  ;;  %v545_v13 = vld [vmem:[%s7037_s9 + $0x100] sm:$0xff]  ;;  %v514_v14 = vld [vmem:[%s7037_s9 + $0x8] sm:$0xff]  ;;  %v932_v39 = vld [vmem:[%s7037_s9 + $0xd18] sm:$0xff] }
  0x90   : > { %6542 = vmatpush3.bf16.msra.mxu0 %v6646_v19  ;;  %3929 = vmatprep.subr.bf16.mxu1 %v6176_v42  ;;  %v5984_v15 = vcombine.high %v513_v12, %v545_v13  ;;  %v546_v16 = vld [vmem:[%s7037_s9 + $0x108] sm:$0xff]  ;;  %v5983_v19 = vcombine.low %v513_v12, %v545_v13  ;;  %v643_v4 = vld [vmem:[%s7037_s9 + $0x410] sm:$0xff]  ;;  %v644_v6 = vld [vmem:[%s7037_s9 + $0x418] sm:$0xff] }
  0x91   : > { %6543 = vmatprep.subr.bf16.mxu0 %v6647_v24  ;;  %v5985_v17 = vcombine.low %v514_v14, %v546_v16  ;;  %v5986_v18 = vcombine.high %v514_v14, %v546_v16  ;;  %v996_v24 = vld [vmem:[%s7037_s9 + $0xf18] sm:$0xff]  ;;  %v675_v5 = vld [vmem:[%s7037_s9 + $0x510] sm:$0xff] }
  0x92   : > { %v6437_v26 = vcombine.low %v964_v22, %v996_v24  ;;  %v6438_v27 = vcombine.high %v964_v22, %v996_v24  ;;  %v579_v12 = vld [vmem:[%s7037_s9 + $0x210] sm:$0xff]  ;;  %v580_v14 = vld [vmem:[%s7037_s9 + $0x218] sm:$0xff]  ;;  %v6115_v16 = vcombine.low %v643_v4, %v675_v5 }
  0x93   : > { %3930 = vmatpush1.bf16.msra.mxu1 %v6175_v48  ;;  %v611_v13 = vld [vmem:[%s7037_s9 + $0x310] sm:$0xff]  ;;  %v516_v22 = vld [vmem:[%s7037_s9 + $0x18] sm:$0xff] }
  0x94   : > { %6544 = vmatpush3.bf16.msra.mxu0 %v6648_v29  ;;  %3931 = vmatprep.subr.bf16.mxu1 %v6112_v51  ;;  %v6051_v24 = vcombine.low %v579_v12, %v611_v13 }
  0x95   : > { %6545 = vmatprep.subr.bf16.mxu0 %v6649_v30  ;;  %v5966_v30 = vld [vmem:[#allocation6] ss:$0 sm:$0xff] }
  0x97   : > { %3932 = vmatpush1.bf16.msra.mxu1 %v6111_v54  ;;  %v772_v54 = vld [vmem:[%s7037_s9 + $0x818] sm:$0xff] }
  0x98   : > { %6546 = vmatpush3.bf16.msra.mxu0 %v6650_v37  ;;  %3933 = vmatprep.subr.bf16.mxu1 %v6048_v7  ;;  %v931_v37 = vld [vmem:[%s7037_s9 + $0xd10] sm:$0xff]  ;;  %v6246_v59 = vcombine.high %v772_v54, %v804_v55  ;;  %v676_v7 = vld [vmem:[%s7037_s9 + $0x518] sm:$0xff] }
  0x99   : > { %3962 = vmatprep.subr.bf16.mxu0 %v6434_v38  ;;  %v900_v38 = vld [vmem:[%s7037_s9 + $0xc18] sm:$0xff]  ;;  %v6372_v42 = vcombine.high %v899_v35, %v931_v37  ;;  %v6371_v48 = vcombine.low %v899_v35, %v931_v37  ;;  %v901_v37 = vld [vmem:[%s7037_s9 + $0xc20] sm:$0xff] }
  0x9a   : > { %v6373_v49 = vcombine.low %v900_v38, %v932_v39 }
  0x9b   : > { %504 = vmatmul.mubr.bf16.vlgmr.msra.gmra.mxu0 %v334_v43  ;;  %3934 = vmatpush1.bf16.msra.mxu1 %v6047_v11  ;;  %v6374_v43 = vcombine.high %v900_v38, %v932_v39  ;;  %v6118_v11 = vcombine.high %v644_v6, %v676_v7  ;;  %v933_v38 = vld [vmem:[%s7037_s9 + $0xd20] sm:$0xff]  ;;  %v902_v39 = vld [vmem:[%s7037_s9 + $0xc28] sm:$0xff] }
  0x9c   : > { %3963 = vmatpush1.bf16.msra.mxu0 %v6433_v46  ;;  %3935 = vmatprep.subr.bf16.mxu1 %v5984_v15  ;;  %v836_v46 = vld [vmem:[%s7037_s9 + $0xa18] sm:$0xff]  ;;  %v6376_v44 = vcombine.high %v901_v37, %v933_v38 }
  0x9d   : > { %3964 = vmatprep.subr.bf16.mxu0 %v6370_v47  ;;  %3994 = vmatprep.mubr.bf16.mxu0 %v6839_v28  ;;  %v868_v47 = vld [vmem:[%s7037_s9 + $0xb18] sm:$0xff] }
  0x9e   : > { %v6310_v51 = vcombine.high %v836_v46, %v868_v47  ;;  %v612_v15 = vld [vmem:[%s7037_s9 + $0x318] sm:$0xff] }
  0x9f   : > { %3936 = vmatpush1.bf16.msra.mxu1 %v5983_v19  ;;  %v6054_v19 = vcombine.high %v580_v14, %v612_v15 }
  0xa0   : > { %3965 = vmatpush1.bf16.msra.mxu0 %v6369_v52  ;;  %4003 = vmatprep.subr.bf16.mxu1 %v6436_v23  ;;  %v771_v52 = vld [vmem:[%s7037_s9 + $0x810] sm:$0xff]  ;;  %v548_v23 = vld [vmem:[%s7037_s9 + $0x118] sm:$0xff] }
  0xa1   : > { %3966 = vmatprep.subr.bf16.mxu0 %v6306_v53  ;;  %v803_v53 = vld [vmem:[%s7037_s9 + $0x910] sm:$0xff] }
  0xa2   : > { %v6243_v0 = vcombine.low %v771_v52, %v803_v53 }
  0xa4   : > { %3967 = vmatpush1.bf16.msra.mxu0 %v6305_v57  ;;  %v6309_v57 = vcombine.low %v836_v46, %v868_v47  ;;  %v837_v46 = vld [vmem:[%s7037_s9 + $0xa20] sm:$0xff] }
  0xa5   : > { %3968 = vmatprep.subr.bf16.mxu0 %v6242_v58  ;;  %v6244_v58 = vcombine.high %v771_v52, %v803_v53  ;;  %v869_v47 = vld [vmem:[%s7037_s9 + $0xb20] sm:$0xff] }
  0xa6   : > { %v6312_v52 = vcombine.high %v837_v46, %v869_v47 }
  0xa8   : > { %3969 = vmatpush1.bf16.msra.mxu0 %v6241_v61  ;;  %v739_v61 = vld [vmem:[%s7037_s9 + $0x710] sm:$0xff] }
  0xa9   : > { %3970 = vmatprep.subr.bf16.mxu0 %v6178_v62  ;;  %v708_v62 = vld [vmem:[%s7037_s9 + $0x618] sm:$0xff]  ;;  %v6179_v8 = vcombine.low %v707_v60, %v739_v61 }
  0xac   : > { %3971 = vmatpush1.bf16.msra.mxu0 %v6177_v1  ;;  %v6245_v1 = vcombine.low %v772_v54, %v804_v55  ;;  %v773_v54 = vld [vmem:[%s7037_s9 + $0x820] sm:$0xff] }
  0xad   : > { %3972 = vmatprep.subr.bf16.mxu0 %v6114_v2  ;;  %v6180_v2 = vcombine.high %v707_v60, %v739_v61  ;;  %v805_v55 = vld [vmem:[%s7037_s9 + $0x920] sm:$0xff] }
  0xae   : > { %v6248_v60 = vcombine.high %v773_v54, %v805_v55 }
  0xb0   : > { %3973 = vmatpush1.bf16.msra.mxu0 %v6113_v3  ;;  %v6182_v3 = vcombine.high %v708_v62, %v740_v63 }
  0xb1   : > { %3974 = vmatprep.subr.bf16.mxu0 %v6050_v10  ;;  %v6116_v10 = vcombine.high %v643_v4, %v675_v5 }
  0xb4   : > { %3975 = vmatpush1.bf16.msra.mxu0 %v6049_v9  ;;  %v6181_v9 = vcombine.low %v708_v62, %v740_v63  ;;  %v709_v62 = vld [vmem:[%s7037_s9 + $0x620] sm:$0xff] }
  0xb5   : > { %3976 = vmatprep.subr.bf16.mxu0 %v5986_v18  ;;  %v6052_v18 = vcombine.high %v579_v12, %v611_v13  ;;  %v741_v63 = vld [vmem:[%s7037_s9 + $0x720] sm:$0xff] }
  0xb6   : > { %v6184_v4 = vcombine.high %v709_v62, %v741_v63 }
  0xb8   : > { %3977 = vmatpush1.bf16.msra.mxu0 %v5985_v17  ;;  %v6117_v17 = vcombine.low %v644_v6, %v676_v7  ;;  %v645_v6 = vld [vmem:[%s7037_s9 + $0x420] sm:$0xff] }
  0xb9   : > { %4044 = vmatprep.subr.bf16.mxu0 %v6438_v27  ;;  %v5990_v27 = vcombine.high %v516_v22, %v548_v23  ;;  %v677_v7 = vld [vmem:[%s7037_s9 + $0x520] sm:$0xff] }
  0xba   : > { %v6120_v12 = vcombine.high %v645_v6, %v677_v7 }
 0x15b   : > { %v6547_v29 = vpop.f32.mrf.mxu0 }
 0x15d   : > { %v6548_v31 = vpop.f32.mrf.mxu0 }
 0x15e   : > { %v6549_v32 = vadd.f32 %v6548_v31, %v6547_v29  ;;  %v965_v29 = vld [vmem:[%s7037_s9 + $0xe20] sm:$0xff]  ;;  %v966_v31 = vld [vmem:[%s7037_s9 + $0xe28] sm:$0xff] }
 0x15f   : > { %v6550_v33 = vpop.f32.mrf.mxu0 }
 0x160   : > { %v506_v34 = vadd.f32 %v6549_v32, %v5966_v30  ;;  %v997_v30 = vld [vmem:[%s7037_s9 + $0xf20] sm:$0xff]  ;;  %v998_v32 = vld [vmem:[%s7037_s9 + $0xf28] sm:$0xff]  ;;  %v5987_v33 = vcombine.low %v515_v20, %v547_v21 }
 0x161   : > { %v6551_v36 = vpop.f32.mrf.mxu0  ;;  %v6440_v35 = vcombine.high %v965_v29, %v997_v30 }
 0x162   : > { %v511_v40 = vmax.f32 %v506_v34, 0.0  ;;  %v5989_v34 = vcombine.low %v516_v22, %v548_v23  ;;  %v6442_v36 = vcombine.high %v966_v31, %v998_v32  ;;  %v517_v22 = vld [vmem:[%s7037_s9 + $0x20] sm:$0xff] }
 0x163   : > { %v549_v23 = vld [vmem:[%s7037_s9 + $0x120] sm:$0xff] }
 0x164   : > { %v7085_v41 = vpack.c.bf16 %v511_v40, %v511_v40  ;;  %v934_v40 = vld [vmem:[%s7037_s9 + $0xd28] sm:$0xff] }
 0x165   : > { %v6378_v45 = vcombine.high %v902_v39, %v934_v40 }
 0x166   : > { %3954 = vmatmul.mubr.bf16.vlgmr.msra.gmra.mxu1 %v7085_v41  ;;  %3995 = vmatmul.mubr.bf16.vlgmr.msra.gmra.mxu0 %v7085_v41 }
 0x167   : > { %4004 = vmatpush1.bf16.msra.mxu1 %v6435_v25  ;;  %4045 = vmatpush1.bf16.msra.mxu0 %v6437_v26  ;;  %v6053_v25 = vcombine.low %v580_v14, %v612_v15  ;;  %v5988_v26 = vcombine.high %v515_v20, %v547_v21  ;;  %v581_v14 = vld [vmem:[%s7037_s9 + $0x220] sm:$0xff] }
 0x168   : > { %4005 = vmatprep.subr.bf16.mxu1 %v6372_v42  ;;  %4046 = vmatprep.subr.bf16.mxu0 %v6374_v43  ;;  %v6439_v42 = vcombine.low %v965_v29, %v997_v30  ;;  %v6441_v43 = vcombine.low %v966_v31, %v998_v32  ;;  %v613_v15 = vld [vmem:[%s7037_s9 + $0x320] sm:$0xff]  ;;  %v5992_v29 = vcombine.high %v517_v22, %v549_v23  ;;  %v967_v31 = vld [vmem:[%s7037_s9 + $0xe30] sm:$0xff] }
 0x169   : > { %4035 = vmatprep.mubr.bf16.mxu1 %v6839_v28  ;;  %4076 = vmatprep.mubr.bf16.mxu0 %v6839_v28  ;;  %v6056_v20 = vcombine.high %v581_v14, %v613_v15  ;;  %v999_v32 = vld [vmem:[%s7037_s9 + $0xf30] sm:$0xff] }
 0x16b   : > { %4006 = vmatpush1.bf16.msra.mxu1 %v6371_v48  ;;  %4047 = vmatpush1.bf16.msra.mxu0 %v6373_v49  ;;  %v838_v48 = vld [vmem:[%s7037_s9 + $0xa28] sm:$0xff] }
 0x16c   : > { %4007 = vmatprep.subr.bf16.mxu1 %v6308_v50  ;;  %4048 = vmatprep.subr.bf16.mxu0 %v6310_v51  ;;  %v870_v49 = vld [vmem:[%s7037_s9 + $0xb28] sm:$0xff]  ;;  %v6375_v50 = vcombine.low %v901_v37, %v933_v38  ;;  %v6377_v51 = vcombine.low %v902_v39, %v934_v40  ;;  %v6444_v37 = vcombine.high %v967_v31, %v999_v32  ;;  %v903_v39 = vld [vmem:[%s7037_s9 + $0xc30] sm:$0xff] }
 0x16d   : > { %v6314_v53 = vcombine.high %v838_v48, %v870_v49  ;;  %v935_v40 = vld [vmem:[%s7037_s9 + $0xd30] sm:$0xff] }
 0x16f   : > { %4008 = vmatpush1.bf16.msra.mxu1 %v6307_v56  ;;  %4049 = vmatpush1.bf16.msra.mxu0 %v6309_v57  ;;  %v774_v56 = vld [vmem:[%s7037_s9 + $0x828] sm:$0xff] }
 0x170   : > { %4009 = vmatprep.subr.bf16.mxu1 %v6244_v58  ;;  %4050 = vmatprep.subr.bf16.mxu0 %v6246_v59  ;;  %v806_v57 = vld [vmem:[%s7037_s9 + $0x928] sm:$0xff]  ;;  %v6311_v58 = vcombine.low %v837_v46, %v869_v47  ;;  %v6313_v59 = vcombine.low %v838_v48, %v870_v49  ;;  %v6380_v46 = vcombine.high %v903_v39, %v935_v40  ;;  %v839_v48 = vld [vmem:[%s7037_s9 + $0xa30] sm:$0xff] }
 0x171   : > { %v6250_v61 = vcombine.high %v774_v56, %v806_v57  ;;  %v871_v49 = vld [vmem:[%s7037_s9 + $0xb30] sm:$0xff] }
 0x173   : > { %4010 = vmatpush1.bf16.msra.mxu1 %v6243_v0  ;;  %4051 = vmatpush1.bf16.msra.mxu0 %v6245_v1  ;;  %v710_v0 = vld [vmem:[%s7037_s9 + $0x628] sm:$0xff] }
 0x174   : > { %4011 = vmatprep.subr.bf16.mxu1 %v6180_v2  ;;  %4052 = vmatprep.subr.bf16.mxu0 %v6182_v3  ;;  %v742_v1 = vld [vmem:[%s7037_s9 + $0x728] sm:$0xff]  ;;  %v6247_v2 = vcombine.low %v773_v54, %v805_v55  ;;  %v6249_v3 = vcombine.low %v774_v56, %v806_v57  ;;  %v6316_v54 = vcombine.high %v839_v48, %v871_v49  ;;  %v775_v56 = vld [vmem:[%s7037_s9 + $0x830] sm:$0xff] }
 0x175   : > { %v6186_v5 = vcombine.high %v710_v0, %v742_v1  ;;  %v807_v57 = vld [vmem:[%s7037_s9 + $0x930] sm:$0xff] }
 0x177   : > { %4012 = vmatpush1.bf16.msra.mxu1 %v6179_v8  ;;  %4053 = vmatpush1.bf16.msra.mxu0 %v6181_v9  ;;  %v646_v8 = vld [vmem:[%s7037_s9 + $0x428] sm:$0xff] }
 0x178   : > { %4013 = vmatprep.subr.bf16.mxu1 %v6116_v10  ;;  %4054 = vmatprep.subr.bf16.mxu0 %v6118_v11  ;;  %v678_v9 = vld [vmem:[%s7037_s9 + $0x528] sm:$0xff]  ;;  %v6183_v10 = vcombine.low %v709_v62, %v741_v63  ;;  %v6185_v11 = vcombine.low %v710_v0, %v742_v1  ;;  %v6252_v62 = vcombine.high %v775_v56, %v807_v57  ;;  %v711_v0 = vld [vmem:[%s7037_s9 + $0x630] sm:$0xff] }
 0x179   : > { %v6122_v13 = vcombine.high %v646_v8, %v678_v9  ;;  %v743_v1 = vld [vmem:[%s7037_s9 + $0x730] sm:$0xff] }
 0x17b   : > { %4014 = vmatpush1.bf16.msra.mxu1 %v6115_v16  ;;  %4055 = vmatpush1.bf16.msra.mxu0 %v6117_v17  ;;  %v582_v16 = vld [vmem:[%s7037_s9 + $0x228] sm:$0xff] }
 0x17c   : > { %4015 = vmatprep.subr.bf16.mxu1 %v6052_v18  ;;  %4056 = vmatprep.subr.bf16.mxu0 %v6054_v19  ;;  %v614_v17 = vld [vmem:[%s7037_s9 + $0x328] sm:$0xff]  ;;  %v6119_v18 = vcombine.low %v645_v6, %v677_v7  ;;  %v6121_v19 = vcombine.low %v646_v8, %v678_v9  ;;  %v6188_v6 = vcombine.high %v711_v0, %v743_v1  ;;  %v647_v8 = vld [vmem:[%s7037_s9 + $0x430] sm:$0xff] }
 0x17d   : > { %v6058_v21 = vcombine.high %v582_v16, %v614_v17  ;;  %v679_v9 = vld [vmem:[%s7037_s9 + $0x530] sm:$0xff] }
 0x17f   : > { %4016 = vmatpush1.bf16.msra.mxu1 %v6051_v24  ;;  %4057 = vmatpush1.bf16.msra.mxu0 %v6053_v25  ;;  %v518_v24 = vld [vmem:[%s7037_s9 + $0x28] sm:$0xff] }
 0x180   : > { %4017 = vmatprep.subr.bf16.mxu1 %v5988_v26  ;;  %4058 = vmatprep.subr.bf16.mxu0 %v5990_v27  ;;  %v550_v25 = vld [vmem:[%s7037_s9 + $0x128] sm:$0xff]  ;;  %v6055_v26 = vcombine.low %v581_v14, %v613_v15  ;;  %v6057_v27 = vcombine.low %v582_v16, %v614_v17  ;;  %v6124_v14 = vcombine.high %v647_v8, %v679_v9  ;;  %v583_v16 = vld [vmem:[%s7037_s9 + $0x230] sm:$0xff] }
 0x181   : > { %v5994_v30 = vcombine.high %v518_v24, %v550_v25  ;;  %v615_v17 = vld [vmem:[%s7037_s9 + $0x330] sm:$0xff] }
 0x183   : > { %4018 = vmatpush1.bf16.msra.mxu1 %v5987_v33  ;;  %4059 = vmatpush1.bf16.msra.mxu0 %v5989_v34  ;;  %v968_v33 = vld [vmem:[%s7037_s9 + $0xe38] sm:$0xff] }
 0x184   : > { %4085 = vmatprep.subr.bf16.mxu1 %v6440_v35  ;;  %4126 = vmatprep.subr.bf16.mxu0 %v6442_v36  ;;  %v1000_v34 = vld [vmem:[%s7037_s9 + $0xf38] sm:$0xff]  ;;  %v5991_v35 = vcombine.low %v517_v22, %v549_v23  ;;  %v5993_v36 = vcombine.low %v518_v24, %v550_v25  ;;  %v6060_v22 = vcombine.high %v583_v16, %v615_v17  ;;  %v519_v24 = vld [vmem:[%s7037_s9 + $0x30] sm:$0xff] }
 0x185   : > { %v6446_v38 = vcombine.high %v968_v33, %v1000_v34  ;;  %v551_v25 = vld [vmem:[%s7037_s9 + $0x130] sm:$0xff] }
 0x186   : > { %4036 = vmatmul.mubr.bf16.vlgmr.msra.gmra.mxu1 %v7085_v41  ;;  %4077 = vmatmul.mubr.bf16.vlgmr.msra.gmra.mxu0 %v7085_v41 }
 0x187   : > { %4086 = vmatpush1.bf16.msra.mxu1 %v6439_v42  ;;  %4127 = vmatpush1.bf16.msra.mxu0 %v6441_v43  ;;  %v904_v42 = vld [vmem:[%s7037_s9 + $0xc38] sm:$0xff] }
 0x188   : > { %4087 = vmatprep.subr.bf16.mxu1 %v6376_v44  ;;  %4128 = vmatprep.subr.bf16.mxu0 %v6378_v45  ;;  %v936_v43 = vld [vmem:[%s7037_s9 + $0xd38] sm:$0xff]  ;;  %v6443_v44 = vcombine.low %v967_v31, %v999_v32  ;;  %v6445_v45 = vcombine.low %v968_v33, %v1000_v34  ;;  %v5996_v31 = vcombine.high %v519_v24, %v551_v25  ;;  %v969_v33 = vld [vmem:[%s7037_s9 + $0xe40] sm:$0xff] }
 0x189   : > { %4117 = vmatprep.mubr.bf16.mxu1 %v6839_v28  ;;  %4158 = vmatprep.mubr.bf16.mxu0 %v6839_v28  ;;  %v6382_v47 = vcombine.high %v904_v42, %v936_v43  ;;  %v1001_v34 = vld [vmem:[%s7037_s9 + $0xf40] sm:$0xff] }
 0x18b   : > { %4088 = vmatpush1.bf16.msra.mxu1 %v6375_v50  ;;  %4129 = vmatpush1.bf16.msra.mxu0 %v6377_v51  ;;  %v840_v50 = vld [vmem:[%s7037_s9 + $0xa38] sm:$0xff] }
 0x18c   : > { %4089 = vmatprep.subr.bf16.mxu1 %v6312_v52  ;;  %4130 = vmatprep.subr.bf16.mxu0 %v6314_v53  ;;  %v872_v51 = vld [vmem:[%s7037_s9 + $0xb38] sm:$0xff]  ;;  %v6379_v52 = vcombine.low %v903_v39, %v935_v40  ;;  %v6381_v53 = vcombine.low %v904_v42, %v936_v43  ;;  %v6448_v39 = vcombine.high %v969_v33, %v1001_v34  ;;  %v905_v42 = vld [vmem:[%s7037_s9 + $0xc40] sm:$0xff] }
 0x18d   : > { %v6318_v55 = vcombine.high %v840_v50, %v872_v51  ;;  %v937_v43 = vld [vmem:[%s7037_s9 + $0xd40] sm:$0xff] }
 0x18f   : > { %4090 = vmatpush1.bf16.msra.mxu1 %v6311_v58  ;;  %4131 = vmatpush1.bf16.msra.mxu0 %v6313_v59  ;;  %v776_v58 = vld [vmem:[%s7037_s9 + $0x838] sm:$0xff] }
 0x190   : > { %4091 = vmatprep.subr.bf16.mxu1 %v6248_v60  ;;  %4132 = vmatprep.subr.bf16.mxu0 %v6250_v61  ;;  %v808_v59 = vld [vmem:[%s7037_s9 + $0x938] sm:$0xff]  ;;  %v6315_v60 = vcombine.low %v839_v48, %v871_v49  ;;  %v6317_v61 = vcombine.low %v840_v50, %v872_v51  ;;  %v6384_v48 = vcombine.high %v905_v42, %v937_v43  ;;  %v841_v50 = vld [vmem:[%s7037_s9 + $0xa40] sm:$0xff] }
 0x191   : > { %v6254_v63 = vcombine.high %v776_v58, %v808_v59  ;;  %v873_v51 = vld [vmem:[%s7037_s9 + $0xb40] sm:$0xff] }
 0x193   : > { %4092 = vmatpush1.bf16.msra.mxu1 %v6247_v2  ;;  %4133 = vmatpush1.bf16.msra.mxu0 %v6249_v3  ;;  %v712_v2 = vld [vmem:[%s7037_s9 + $0x638] sm:$0xff] }
 0x194   : > { %4093 = vmatprep.subr.bf16.mxu1 %v6184_v4  ;;  %4134 = vmatprep.subr.bf16.mxu0 %v6186_v5  ;;  %v744_v3 = vld [vmem:[%s7037_s9 + $0x738] sm:$0xff]  ;;  %v6251_v4 = vcombine.low %v775_v56, %v807_v57  ;;  %v6253_v5 = vcombine.low %v776_v58, %v808_v59  ;;  %v6320_v56 = vcombine.high %v841_v50, %v873_v51  ;;  %v777_v58 = vld [vmem:[%s7037_s9 + $0x840] sm:$0xff] }
 0x195   : > { %v6190_v7 = vcombine.high %v712_v2, %v744_v3  ;;  %v809_v59 = vld [vmem:[%s7037_s9 + $0x940] sm:$0xff] }
 0x197   : > { %4094 = vmatpush1.bf16.msra.mxu1 %v6183_v10  ;;  %4135 = vmatpush1.bf16.msra.mxu0 %v6185_v11  ;;  %v648_v10 = vld [vmem:[%s7037_s9 + $0x438] sm:$0xff] }
 0x198   : > { %4095 = vmatprep.subr.bf16.mxu1 %v6120_v12  ;;  %4136 = vmatprep.subr.bf16.mxu0 %v6122_v13  ;;  %v680_v11 = vld [vmem:[%s7037_s9 + $0x538] sm:$0xff]  ;;  %v6187_v12 = vcombine.low %v711_v0, %v743_v1  ;;  %v6189_v13 = vcombine.low %v712_v2, %v744_v3  ;;  %v6256_v0 = vcombine.high %v777_v58, %v809_v59  ;;  %v713_v2 = vld [vmem:[%s7037_s9 + $0x640] sm:$0xff] }
 0x199   : > { %v6126_v15 = vcombine.high %v648_v10, %v680_v11  ;;  %v745_v3 = vld [vmem:[%s7037_s9 + $0x740] sm:$0xff] }
 0x19b   : > { %4096 = vmatpush1.bf16.msra.mxu1 %v6119_v18  ;;  %4137 = vmatpush1.bf16.msra.mxu0 %v6121_v19  ;;  %v584_v18 = vld [vmem:[%s7037_s9 + $0x238] sm:$0xff] }
 0x19c   : > { %4097 = vmatprep.subr.bf16.mxu1 %v6056_v20  ;;  %4138 = vmatprep.subr.bf16.mxu0 %v6058_v21  ;;  %v616_v19 = vld [vmem:[%s7037_s9 + $0x338] sm:$0xff]  ;;  %v6123_v20 = vcombine.low %v647_v8, %v679_v9  ;;  %v6125_v21 = vcombine.low %v648_v10, %v680_v11  ;;  %v6192_v8 = vcombine.high %v713_v2, %v745_v3  ;;  %v649_v10 = vld [vmem:[%s7037_s9 + $0x440] sm:$0xff] }
 0x19d   : > { %v6062_v23 = vcombine.high %v584_v18, %v616_v19  ;;  %v681_v11 = vld [vmem:[%s7037_s9 + $0x540] sm:$0xff] }
 0x19f   : > { %4098 = vmatpush1.bf16.msra.mxu1 %v6055_v26  ;;  %4139 = vmatpush1.bf16.msra.mxu0 %v6057_v27  ;;  %v520_v26 = vld [vmem:[%s7037_s9 + $0x38] sm:$0xff] }
 0x1a0   : > { %4099 = vmatprep.subr.bf16.mxu1 %v5992_v29  ;;  %4140 = vmatprep.subr.bf16.mxu0 %v5994_v30  ;;  %v552_v27 = vld [vmem:[%s7037_s9 + $0x138] sm:$0xff]  ;;  %v6059_v29 = vcombine.low %v583_v16, %v615_v17  ;;  %v6061_v30 = vcombine.low %v584_v18, %v616_v19  ;;  %v6128_v16 = vcombine.high %v649_v10, %v681_v11  ;;  %v585_v18 = vld [vmem:[%s7037_s9 + $0x240] sm:$0xff] }
 0x1a1   : > { %v5998_v32 = vcombine.high %v520_v26, %v552_v27  ;;  %v617_v19 = vld [vmem:[%s7037_s9 + $0x340] sm:$0xff] }
 0x1a3   : > { %4100 = vmatpush1.bf16.msra.mxu1 %v5991_v35  ;;  %4141 = vmatpush1.bf16.msra.mxu0 %v5993_v36  ;;  %v970_v35 = vld [vmem:[%s7037_s9 + $0xe48] sm:$0xff] }
 0x1a4   : > { %4167 = vmatprep.subr.bf16.mxu1 %v6444_v37  ;;  %4208 = vmatprep.subr.bf16.mxu0 %v6446_v38  ;;  %v1002_v36 = vld [vmem:[%s7037_s9 + $0xf48] sm:$0xff]  ;;  %v5995_v37 = vcombine.low %v519_v24, %v551_v25  ;;  %v5997_v38 = vcombine.low %v520_v26, %v552_v27  ;;  %v6064_v24 = vcombine.high %v585_v18, %v617_v19  ;;  %v521_v26 = vld [vmem:[%s7037_s9 + $0x40] sm:$0xff] }
 0x1a5   : > { %v6450_v40 = vcombine.high %v970_v35, %v1002_v36  ;;  %v553_v27 = vld [vmem:[%s7037_s9 + $0x140] sm:$0xff] }
 0x1a6   : > { %4118 = vmatmul.mubr.bf16.vlgmr.msra.gmra.mxu1 %v7085_v41  ;;  %4159 = vmatmul.mubr.bf16.vlgmr.msra.gmra.mxu0 %v7085_v41 }
 0x1a7   : > { %4168 = vmatpush1.bf16.msra.mxu1 %v6443_v44  ;;  %4209 = vmatpush1.bf16.msra.mxu0 %v6445_v45  ;;  %v906_v44 = vld [vmem:[%s7037_s9 + $0xc48] sm:$0xff] }
 0x1a8   : > { %4169 = vmatprep.subr.bf16.mxu1 %v6380_v46  ;;  %4210 = vmatprep.subr.bf16.mxu0 %v6382_v47  ;;  %v938_v45 = vld [vmem:[%s7037_s9 + $0xd48] sm:$0xff]  ;;  %v6447_v46 = vcombine.low %v969_v33, %v1001_v34  ;;  %v6449_v47 = vcombine.low %v970_v35, %v1002_v36  ;;  %v6000_v33 = vcombine.high %v521_v26, %v553_v27  ;;  %v971_v35 = vld [vmem:[%s7037_s9 + $0xe50] sm:$0xff] }
 0x1a9   : > { %4199 = vmatprep.mubr.bf16.mxu1 %v6839_v28  ;;  %4240 = vmatprep.mubr.bf16.mxu0 %v6839_v28  ;;  %v6386_v49 = vcombine.high %v906_v44, %v938_v45  ;;  %v1003_v36 = vld [vmem:[%s7037_s9 + $0xf50] sm:$0xff] }
 0x1ab   : > { %4170 = vmatpush1.bf16.msra.mxu1 %v6379_v52  ;;  %4211 = vmatpush1.bf16.msra.mxu0 %v6381_v53  ;;  %v842_v52 = vld [vmem:[%s7037_s9 + $0xa48] sm:$0xff] }
 0x1ac   : > { %4171 = vmatprep.subr.bf16.mxu1 %v6316_v54  ;;  %4212 = vmatprep.subr.bf16.mxu0 %v6318_v55  ;;  %v874_v53 = vld [vmem:[%s7037_s9 + $0xb48] sm:$0xff]  ;;  %v6383_v54 = vcombine.low %v905_v42, %v937_v43  ;;  %v6385_v55 = vcombine.low %v906_v44, %v938_v45  ;;  %v6452_v42 = vcombine.high %v971_v35, %v1003_v36  ;;  %v907_v44 = vld [vmem:[%s7037_s9 + $0xc50] sm:$0xff] }
 0x1ad   : > { %v6322_v57 = vcombine.high %v842_v52, %v874_v53  ;;  %v939_v45 = vld [vmem:[%s7037_s9 + $0xd50] sm:$0xff] }
 0x1af   : > { %4172 = vmatpush1.bf16.msra.mxu1 %v6315_v60  ;;  %4213 = vmatpush1.bf16.msra.mxu0 %v6317_v61  ;;  %v778_v60 = vld [vmem:[%s7037_s9 + $0x848] sm:$0xff] }
 0x1b0   : > { %4173 = vmatprep.subr.bf16.mxu1 %v6252_v62  ;;  %4214 = vmatprep.subr.bf16.mxu0 %v6254_v63  ;;  %v810_v61 = vld [vmem:[%s7037_s9 + $0x948] sm:$0xff]  ;;  %v6319_v62 = vcombine.low %v841_v50, %v873_v51  ;;  %v6321_v63 = vcombine.low %v842_v52, %v874_v53  ;;  %v6388_v50 = vcombine.high %v907_v44, %v939_v45  ;;  %v843_v52 = vld [vmem:[%s7037_s9 + $0xa50] sm:$0xff] }
 0x1b1   : > { %v6258_v1 = vcombine.high %v778_v60, %v810_v61  ;;  %v875_v53 = vld [vmem:[%s7037_s9 + $0xb50] sm:$0xff] }
 0x1b3   : > { %4174 = vmatpush1.bf16.msra.mxu1 %v6251_v4  ;;  %4215 = vmatpush1.bf16.msra.mxu0 %v6253_v5  ;;  %v714_v4 = vld [vmem:[%s7037_s9 + $0x648] sm:$0xff] }
 0x1b4   : > { %4175 = vmatprep.subr.bf16.mxu1 %v6188_v6  ;;  %4216 = vmatprep.subr.bf16.mxu0 %v6190_v7  ;;  %v746_v5 = vld [vmem:[%s7037_s9 + $0x748] sm:$0xff]  ;;  %v6255_v6 = vcombine.low %v777_v58, %v809_v59  ;;  %v6257_v7 = vcombine.low %v778_v60, %v810_v61  ;;  %v6324_v58 = vcombine.high %v843_v52, %v875_v53  ;;  %v779_v60 = vld [vmem:[%s7037_s9 + $0x850] sm:$0xff] }
 0x1b5   : > { %v6194_v9 = vcombine.high %v714_v4, %v746_v5  ;;  %v811_v61 = vld [vmem:[%s7037_s9 + $0x950] sm:$0xff] }
 0x1b7   : > { %4176 = vmatpush1.bf16.msra.mxu1 %v6187_v12  ;;  %4217 = vmatpush1.bf16.msra.mxu0 %v6189_v13  ;;  %v650_v12 = vld [vmem:[%s7037_s9 + $0x448] sm:$0xff] }
 0x1b8   : > { %4177 = vmatprep.subr.bf16.mxu1 %v6124_v14  ;;  %4218 = vmatprep.subr.bf16.mxu0 %v6126_v15  ;;  %v682_v13 = vld [vmem:[%s7037_s9 + $0x548] sm:$0xff]  ;;  %v6191_v14 = vcombine.low %v713_v2, %v745_v3  ;;  %v6193_v15 = vcombine.low %v714_v4, %v746_v5  ;;  %v6260_v2 = vcombine.high %v779_v60, %v811_v61  ;;  %v715_v4 = vld [vmem:[%s7037_s9 + $0x650] sm:$0xff] }
 0x1b9   : > { %v6130_v17 = vcombine.high %v650_v12, %v682_v13  ;;  %v747_v5 = vld [vmem:[%s7037_s9 + $0x750] sm:$0xff] }
 0x1bb   : > { %4178 = vmatpush1.bf16.msra.mxu1 %v6123_v20  ;;  %4219 = vmatpush1.bf16.msra.mxu0 %v6125_v21  ;;  %v586_v20 = vld [vmem:[%s7037_s9 + $0x248] sm:$0xff] }
 0x1bc   : > { %4179 = vmatprep.subr.bf16.mxu1 %v6060_v22  ;;  %4220 = vmatprep.subr.bf16.mxu0 %v6062_v23  ;;  %v618_v21 = vld [vmem:[%s7037_s9 + $0x348] sm:$0xff]  ;;  %v6127_v22 = vcombine.low %v649_v10, %v681_v11  ;;  %v6129_v23 = vcombine.low %v650_v12, %v682_v13  ;;  %v6196_v10 = vcombine.high %v715_v4, %v747_v5  ;;  %v651_v12 = vld [vmem:[%s7037_s9 + $0x450] sm:$0xff] }
 0x1bd   : > { %v6066_v25 = vcombine.high %v586_v20, %v618_v21  ;;  %v683_v13 = vld [vmem:[%s7037_s9 + $0x550] sm:$0xff] }
 0x1bf   : > { %4180 = vmatpush1.bf16.msra.mxu1 %v6059_v29  ;;  %4221 = vmatpush1.bf16.msra.mxu0 %v6061_v30  ;;  %v522_v29 = vld [vmem:[%s7037_s9 + $0x48] sm:$0xff] }
 0x1c0   : > { %4181 = vmatprep.subr.bf16.mxu1 %v5996_v31  ;;  %4222 = vmatprep.subr.bf16.mxu0 %v5998_v32  ;;  %v554_v30 = vld [vmem:[%s7037_s9 + $0x148] sm:$0xff]  ;;  %v6063_v31 = vcombine.low %v585_v18, %v617_v19  ;;  %v6065_v32 = vcombine.low %v586_v20, %v618_v21  ;;  %v6132_v18 = vcombine.high %v651_v12, %v683_v13  ;;  %v587_v20 = vld [vmem:[%s7037_s9 + $0x250] sm:$0xff] }
 0x1c1   : > { %v6002_v34 = vcombine.high %v522_v29, %v554_v30  ;;  %v619_v21 = vld [vmem:[%s7037_s9 + $0x350] sm:$0xff] }
 0x1c3   : > { %4182 = vmatpush1.bf16.msra.mxu1 %v5995_v37  ;;  %4223 = vmatpush1.bf16.msra.mxu0 %v5997_v38  ;;  %v972_v37 = vld [vmem:[%s7037_s9 + $0xe58] sm:$0xff] }
 0x1c4   : > { %4249 = vmatprep.subr.bf16.mxu1 %v6448_v39  ;;  %4290 = vmatprep.subr.bf16.mxu0 %v6450_v40  ;;  %v1004_v38 = vld [vmem:[%s7037_s9 + $0xf58] sm:$0xff]  ;;  %v5999_v39 = vcombine.low %v521_v26, %v553_v27  ;;  %v6001_v40 = vcombine.low %v522_v29, %v554_v30  ;;  %v6068_v26 = vcombine.high %v587_v20, %v619_v21  ;;  %v523_v29 = vld [vmem:[%s7037_s9 + $0x50] sm:$0xff] }
 0x1c5   : > { %v6454_v43 = vcombine.high %v972_v37, %v1004_v38  ;;  %v555_v30 = vld [vmem:[%s7037_s9 + $0x150] sm:$0xff] }
 0x1c6   : > { %4200 = vmatmul.mubr.bf16.vlgmr.msra.gmra.mxu1 %v7085_v41  ;;  %4241 = vmatmul.mubr.bf16.vlgmr.msra.gmra.mxu0 %v7085_v41 }
 0x1c7   : > { %4250 = vmatpush1.bf16.msra.mxu1 %v6447_v46  ;;  %4291 = vmatpush1.bf16.msra.mxu0 %v6449_v47  ;;  %v908_v46 = vld [vmem:[%s7037_s9 + $0xc58] sm:$0xff] }
 0x1c8   : > { %4251 = vmatprep.subr.bf16.mxu1 %v6384_v48  ;;  %4292 = vmatprep.subr.bf16.mxu0 %v6386_v49  ;;  %v940_v47 = vld [vmem:[%s7037_s9 + $0xd58] sm:$0xff]  ;;  %v6451_v48 = vcombine.low %v971_v35, %v1003_v36  ;;  %v6453_v49 = vcombine.low %v972_v37, %v1004_v38  ;;  %v6004_v35 = vcombine.high %v523_v29, %v555_v30  ;;  %v973_v37 = vld [vmem:[%s7037_s9 + $0xe60] sm:$0xff] }
 0x1c9   : > { %4281 = vmatprep.mubr.bf16.mxu1 %v6839_v28  ;;  %4322 = vmatprep.mubr.bf16.mxu0 %v6839_v28  ;;  %v6390_v51 = vcombine.high %v908_v46, %v940_v47  ;;  %v1005_v38 = vld [vmem:[%s7037_s9 + $0xf60] sm:$0xff] }
 0x1cb   : > { %4252 = vmatpush1.bf16.msra.mxu1 %v6383_v54  ;;  %4293 = vmatpush1.bf16.msra.mxu0 %v6385_v55  ;;  %v844_v54 = vld [vmem:[%s7037_s9 + $0xa58] sm:$0xff] }
 0x1cc   : > { %4253 = vmatprep.subr.bf16.mxu1 %v6320_v56  ;;  %4294 = vmatprep.subr.bf16.mxu0 %v6322_v57  ;;  %v876_v55 = vld [vmem:[%s7037_s9 + $0xb58] sm:$0xff]  ;;  %v6387_v56 = vcombine.low %v907_v44, %v939_v45  ;;  %v6389_v57 = vcombine.low %v908_v46, %v940_v47  ;;  %v6456_v44 = vcombine.high %v973_v37, %v1005_v38  ;;  %v909_v46 = vld [vmem:[%s7037_s9 + $0xc60] sm:$0xff] }
 0x1cd   : > { %v6326_v59 = vcombine.high %v844_v54, %v876_v55  ;;  %v941_v47 = vld [vmem:[%s7037_s9 + $0xd60] sm:$0xff] }
 0x1cf   : > { %4254 = vmatpush1.bf16.msra.mxu1 %v6319_v62  ;;  %4295 = vmatpush1.bf16.msra.mxu0 %v6321_v63  ;;  %v780_v62 = vld [vmem:[%s7037_s9 + $0x858] sm:$0xff] }
 0x1d0   : > { %4255 = vmatprep.subr.bf16.mxu1 %v6256_v0  ;;  %4296 = vmatprep.subr.bf16.mxu0 %v6258_v1  ;;  %v812_v63 = vld [vmem:[%s7037_s9 + $0x958] sm:$0xff]  ;;  %v6323_v0 = vcombine.low %v843_v52, %v875_v53  ;;  %v6325_v1 = vcombine.low %v844_v54, %v876_v55  ;;  %v6392_v52 = vcombine.high %v909_v46, %v941_v47  ;;  %v845_v54 = vld [vmem:[%s7037_s9 + $0xa60] sm:$0xff] }
 0x1d1   : > { %v6262_v3 = vcombine.high %v780_v62, %v812_v63  ;;  %v877_v55 = vld [vmem:[%s7037_s9 + $0xb60] sm:$0xff] }
 0x1d3   : > { %4256 = vmatpush1.bf16.msra.mxu1 %v6255_v6  ;;  %4297 = vmatpush1.bf16.msra.mxu0 %v6257_v7  ;;  %v716_v6 = vld [vmem:[%s7037_s9 + $0x658] sm:$0xff] }
 0x1d4   : > { %4257 = vmatprep.subr.bf16.mxu1 %v6192_v8  ;;  %4298 = vmatprep.subr.bf16.mxu0 %v6194_v9  ;;  %v748_v7 = vld [vmem:[%s7037_s9 + $0x758] sm:$0xff]  ;;  %v6259_v8 = vcombine.low %v779_v60, %v811_v61  ;;  %v6261_v9 = vcombine.low %v780_v62, %v812_v63  ;;  %v6328_v60 = vcombine.high %v845_v54, %v877_v55  ;;  %v781_v62 = vld [vmem:[%s7037_s9 + $0x860] sm:$0xff] }
 0x1d5   : > { %v6198_v11 = vcombine.high %v716_v6, %v748_v7  ;;  %v813_v63 = vld [vmem:[%s7037_s9 + $0x960] sm:$0xff] }
 0x1d7   : > { %4258 = vmatpush1.bf16.msra.mxu1 %v6191_v14  ;;  %4299 = vmatpush1.bf16.msra.mxu0 %v6193_v15  ;;  %v652_v14 = vld [vmem:[%s7037_s9 + $0x458] sm:$0xff] }
 0x1d8   : > { %4259 = vmatprep.subr.bf16.mxu1 %v6128_v16  ;;  %4300 = vmatprep.subr.bf16.mxu0 %v6130_v17  ;;  %v684_v15 = vld [vmem:[%s7037_s9 + $0x558] sm:$0xff]  ;;  %v6195_v16 = vcombine.low %v715_v4, %v747_v5  ;;  %v6197_v17 = vcombine.low %v716_v6, %v748_v7  ;;  %v6264_v4 = vcombine.high %v781_v62, %v813_v63  ;;  %v717_v6 = vld [vmem:[%s7037_s9 + $0x660] sm:$0xff] }
 0x1d9   : > { %v6134_v19 = vcombine.high %v652_v14, %v684_v15  ;;  %v749_v7 = vld [vmem:[%s7037_s9 + $0x760] sm:$0xff] }
 0x1db   : > { %4260 = vmatpush1.bf16.msra.mxu1 %v6127_v22  ;;  %4301 = vmatpush1.bf16.msra.mxu0 %v6129_v23  ;;  %v588_v22 = vld [vmem:[%s7037_s9 + $0x258] sm:$0xff] }
 0x1dc   : > { %4261 = vmatprep.subr.bf16.mxu1 %v6064_v24  ;;  %4302 = vmatprep.subr.bf16.mxu0 %v6066_v25  ;;  %v620_v23 = vld [vmem:[%s7037_s9 + $0x358] sm:$0xff]  ;;  %v6131_v24 = vcombine.low %v651_v12, %v683_v13  ;;  %v6133_v25 = vcombine.low %v652_v14, %v684_v15  ;;  %v6200_v12 = vcombine.high %v717_v6, %v749_v7  ;;  %v653_v14 = vld [vmem:[%s7037_s9 + $0x460] sm:$0xff] }
 0x1dd   : > { %v6070_v27 = vcombine.high %v588_v22, %v620_v23  ;;  %v685_v15 = vld [vmem:[%s7037_s9 + $0x560] sm:$0xff] }
 0x1df   : > { %4262 = vmatpush1.bf16.msra.mxu1 %v6063_v31  ;;  %4303 = vmatpush1.bf16.msra.mxu0 %v6065_v32  ;;  %v524_v31 = vld [vmem:[%s7037_s9 + $0x58] sm:$0xff] }
 0x1e0   : > { %4263 = vmatprep.subr.bf16.mxu1 %v6000_v33  ;;  %4304 = vmatprep.subr.bf16.mxu0 %v6002_v34  ;;  %v556_v32 = vld [vmem:[%s7037_s9 + $0x158] sm:$0xff]  ;;  %v6067_v33 = vcombine.low %v587_v20, %v619_v21  ;;  %v6069_v34 = vcombine.low %v588_v22, %v620_v23  ;;  %v6136_v20 = vcombine.high %v653_v14, %v685_v15  ;;  %v589_v22 = vld [vmem:[%s7037_s9 + $0x260] sm:$0xff] }
 0x1e1   : > { %v6006_v36 = vcombine.high %v524_v31, %v556_v32  ;;  %v621_v23 = vld [vmem:[%s7037_s9 + $0x360] sm:$0xff] }
 0x1e3   : > { %4264 = vmatpush1.bf16.msra.mxu1 %v5999_v39  ;;  %4305 = vmatpush1.bf16.msra.mxu0 %v6001_v40  ;;  %v974_v39 = vld [vmem:[%s7037_s9 + $0xe68] sm:$0xff] }
 0x1e4   : > { %4331 = vmatprep.subr.bf16.mxu1 %v6452_v42  ;;  %4372 = vmatprep.subr.bf16.mxu0 %v6454_v43  ;;  %v1006_v40 = vld [vmem:[%s7037_s9 + $0xf68] sm:$0xff]  ;;  %v6003_v42 = vcombine.low %v523_v29, %v555_v30  ;;  %v6005_v43 = vcombine.low %v524_v31, %v556_v32  ;;  %v6072_v29 = vcombine.high %v589_v22, %v621_v23  ;;  %v525_v31 = vld [vmem:[%s7037_s9 + $0x60] sm:$0xff] }
 0x1e5   : > { %v6458_v45 = vcombine.high %v974_v39, %v1006_v40  ;;  %v557_v32 = vld [vmem:[%s7037_s9 + $0x160] sm:$0xff] }
 0x1e6   : > { %4282 = vmatmul.mubr.bf16.vlgmr.msra.gmra.mxu1 %v7085_v41  ;;  %4323 = vmatmul.mubr.bf16.vlgmr.msra.gmra.mxu0 %v7085_v41 }
 0x1e7   : > { %4332 = vmatpush1.bf16.msra.mxu1 %v6451_v48  ;;  %4373 = vmatpush1.bf16.msra.mxu0 %v6453_v49  ;;  %v910_v48 = vld [vmem:[%s7037_s9 + $0xc68] sm:$0xff] }
 0x1e8   : > { %4333 = vmatprep.subr.bf16.mxu1 %v6388_v50  ;;  %4374 = vmatprep.subr.bf16.mxu0 %v6390_v51  ;;  %v942_v49 = vld [vmem:[%s7037_s9 + $0xd68] sm:$0xff]  ;;  %v6455_v50 = vcombine.low %v973_v37, %v1005_v38  ;;  %v6457_v51 = vcombine.low %v974_v39, %v1006_v40  ;;  %v6008_v37 = vcombine.high %v525_v31, %v557_v32  ;;  %v975_v39 = vld [vmem:[%s7037_s9 + $0xe70] sm:$0xff] }
 0x1e9   : > { %4363 = vmatprep.mubr.bf16.mxu1 %v6839_v28  ;;  %4404 = vmatprep.mubr.bf16.mxu0 %v6839_v28  ;;  %v6394_v53 = vcombine.high %v910_v48, %v942_v49  ;;  %v1007_v40 = vld [vmem:[%s7037_s9 + $0xf70] sm:$0xff] }
 0x1eb   : > { %4334 = vmatpush1.bf16.msra.mxu1 %v6387_v56  ;;  %4375 = vmatpush1.bf16.msra.mxu0 %v6389_v57  ;;  %v846_v56 = vld [vmem:[%s7037_s9 + $0xa68] sm:$0xff] }
 0x1ec   : > { %4335 = vmatprep.subr.bf16.mxu1 %v6324_v58  ;;  %4376 = vmatprep.subr.bf16.mxu0 %v6326_v59  ;;  %v878_v57 = vld [vmem:[%s7037_s9 + $0xb68] sm:$0xff]  ;;  %v6391_v58 = vcombine.low %v909_v46, %v941_v47  ;;  %v6393_v59 = vcombine.low %v910_v48, %v942_v49  ;;  %v6460_v46 = vcombine.high %v975_v39, %v1007_v40  ;;  %v911_v48 = vld [vmem:[%s7037_s9 + $0xc70] sm:$0xff] }
 0x1ed   : > { %v6330_v61 = vcombine.high %v846_v56, %v878_v57  ;;  %v943_v49 = vld [vmem:[%s7037_s9 + $0xd70] sm:$0xff] }
 0x1ef   : > { %4336 = vmatpush1.bf16.msra.mxu1 %v6323_v0  ;;  %4377 = vmatpush1.bf16.msra.mxu0 %v6325_v1  ;;  %v782_v0 = vld [vmem:[%s7037_s9 + $0x868] sm:$0xff] }
 0x1f0   : > { %4337 = vmatprep.subr.bf16.mxu1 %v6260_v2  ;;  %4378 = vmatprep.subr.bf16.mxu0 %v6262_v3  ;;  %v814_v1 = vld [vmem:[%s7037_s9 + $0x968] sm:$0xff]  ;;  %v6327_v2 = vcombine.low %v845_v54, %v877_v55  ;;  %v6329_v3 = vcombine.low %v846_v56, %v878_v57  ;;  %v6396_v54 = vcombine.high %v911_v48, %v943_v49  ;;  %v847_v56 = vld [vmem:[%s7037_s9 + $0xa70] sm:$0xff] }
 0x1f1   : > { %v6266_v5 = vcombine.high %v782_v0, %v814_v1  ;;  %v879_v57 = vld [vmem:[%s7037_s9 + $0xb70] sm:$0xff] }
 0x1f3   : > { %4338 = vmatpush1.bf16.msra.mxu1 %v6259_v8  ;;  %4379 = vmatpush1.bf16.msra.mxu0 %v6261_v9  ;;  %v718_v8 = vld [vmem:[%s7037_s9 + $0x668] sm:$0xff] }
 0x1f4   : > { %4339 = vmatprep.subr.bf16.mxu1 %v6196_v10  ;;  %4380 = vmatprep.subr.bf16.mxu0 %v6198_v11  ;;  %v750_v9 = vld [vmem:[%s7037_s9 + $0x768] sm:$0xff]  ;;  %v6263_v10 = vcombine.low %v781_v62, %v813_v63  ;;  %v6265_v11 = vcombine.low %v782_v0, %v814_v1  ;;  %v6395_v62 = vcombine.low %v911_v48, %v943_v49  ;;  %v527_v49 = vld [vmem:[%s7037_s9 + $0x70] sm:$0xff] }
 0x1f5   : > { %v6202_v13 = vcombine.high %v718_v8, %v750_v9 }
 0x1f7   : > { %4340 = vmatpush1.bf16.msra.mxu1 %v6195_v16  ;;  %4381 = vmatpush1.bf16.msra.mxu0 %v6197_v17  ;;  %v654_v16 = vld [vmem:[%s7037_s9 + $0x468] sm:$0xff] }
 0x1f8   : > { %4341 = vmatprep.subr.bf16.mxu1 %v6132_v18  ;;  %4382 = vmatprep.subr.bf16.mxu0 %v6134_v19  ;;  %v686_v17 = vld [vmem:[%s7037_s9 + $0x568] sm:$0xff]  ;;  %v6199_v18 = vcombine.low %v717_v6, %v749_v7  ;;  %v6201_v19 = vcombine.low %v718_v8, %v750_v9  ;;  %v784_v6 = vld [vmem:[%s7037_s9 + $0x878] sm:$0xff] }
 0x1f9   : > { %v6138_v21 = vcombine.high %v654_v16, %v686_v17  ;;  %v816_v7 = vld [vmem:[%s7037_s9 + $0x978] sm:$0xff] }
 0x1fb   : > { %4342 = vmatpush1.bf16.msra.mxu1 %v6131_v24  ;;  %4383 = vmatpush1.bf16.msra.mxu0 %v6133_v25  ;;  %v590_v24 = vld [vmem:[%s7037_s9 + $0x268] sm:$0xff] }
 0x1fc   : > { %4343 = vmatprep.subr.bf16.mxu1 %v6068_v26  ;;  %4384 = vmatprep.subr.bf16.mxu0 %v6070_v27  ;;  %v622_v25 = vld [vmem:[%s7037_s9 + $0x368] sm:$0xff]  ;;  %v6135_v26 = vcombine.low %v653_v14, %v685_v15  ;;  %v6137_v27 = vcombine.low %v654_v16, %v686_v17  ;;  %v6270_v15 = vcombine.high %v784_v6, %v816_v7  ;;  %v719_v16 = vld [vmem:[%s7037_s9 + $0x670] sm:$0xff] }
 0x1fd   : > { %v6074_v30 = vcombine.high %v590_v24, %v622_v25  ;;  %v751_v17 = vld [vmem:[%s7037_s9 + $0x770] sm:$0xff] }
 0x1ff   : > { %4344 = vmatpush1.bf16.msra.mxu1 %v6067_v33  ;;  %4385 = vmatpush1.bf16.msra.mxu0 %v6069_v34  ;;  %v526_v33 = vld [vmem:[%s7037_s9 + $0x68] sm:$0xff] }
 0x200   : > { %4345 = vmatprep.subr.bf16.mxu1 %v6004_v35  ;;  %4386 = vmatprep.subr.bf16.mxu0 %v6006_v36  ;;  %v558_v34 = vld [vmem:[%s7037_s9 + $0x168] sm:$0xff]  ;;  %v6071_v35 = vcombine.low %v589_v22, %v621_v23  ;;  %v6073_v36 = vcombine.low %v590_v24, %v622_v25  ;;  %v6269_v22 = vcombine.low %v784_v6, %v816_v7  ;;  %v655_v25 = vld [vmem:[%s7037_s9 + $0x470] sm:$0xff] }
 0x201   : > { %v6010_v38 = vcombine.high %v526_v33, %v558_v34  ;;  %v6204_v23 = vcombine.high %v719_v16, %v751_v17  ;;  %v1010_v6 = vld [vmem:[%s7037_s9 + $0xf88] sm:$0xff] }
 0x203   : > { %4346 = vmatpush1.bf16.msra.mxu1 %v6003_v42  ;;  %4387 = vmatpush1.bf16.msra.mxu0 %v6005_v43  ;;  %v976_v42 = vld [vmem:[%s7037_s9 + $0xe78] sm:$0xff] }
 0x204   : > { %4413 = vmatprep.subr.bf16.mxu1 %v6456_v44  ;;  %4454 = vmatprep.subr.bf16.mxu0 %v6458_v45  ;;  %v1008_v43 = vld [vmem:[%s7037_s9 + $0xf78] sm:$0xff]  ;;  %v6007_v44 = vcombine.low %v525_v31, %v557_v32  ;;  %v6009_v45 = vcombine.low %v526_v33, %v558_v34  ;;  %v6203_v31 = vcombine.low %v719_v16, %v751_v17 }
 0x205   : > { %v6462_v47 = vcombine.high %v976_v42, %v1008_v43 }
 0x206   : > { %4364 = vmatmul.mubr.bf16.vlgmr.msra.gmra.mxu1 %v7085_v41  ;;  %4405 = vmatmul.mubr.bf16.vlgmr.msra.gmra.mxu0 %v7085_v41 }
 0x207   : > { %4414 = vmatpush1.bf16.msra.mxu1 %v6455_v50  ;;  %4455 = vmatpush1.bf16.msra.mxu0 %v6457_v51  ;;  %v912_v50 = vld [vmem:[%s7037_s9 + $0xc78] sm:$0xff] }
 0x208   : > { %4415 = vmatprep.subr.bf16.mxu1 %v6392_v52  ;;  %4456 = vmatprep.subr.bf16.mxu0 %v6394_v53  ;;  %v944_v51 = vld [vmem:[%s7037_s9 + $0xd78] sm:$0xff]  ;;  %v6459_v52 = vcombine.low %v975_v39, %v1007_v40  ;;  %v6461_v53 = vcombine.low %v976_v42, %v1008_v43 }
 0x209   : > { %4445 = vmatprep.mubr.bf16.mxu1 %v6839_v28  ;;  %4486 = vmatprep.mubr.bf16.mxu0 %v6839_v28  ;;  %v6398_v55 = vcombine.high %v912_v50, %v944_v51  ;;  %v6397_v63 = vcombine.low %v912_v50, %v944_v51  ;;  %v559_v50 = vld [vmem:[%s7037_s9 + $0x170] sm:$0xff]  ;;  %v528_v51 = vld [vmem:[%s7037_s9 + $0x78] sm:$0xff] }
 0x20b   : > { %4416 = vmatpush1.bf16.msra.mxu1 %v6391_v58  ;;  %4457 = vmatpush1.bf16.msra.mxu0 %v6393_v59  ;;  %v848_v58 = vld [vmem:[%s7037_s9 + $0xa78] sm:$0xff] }
 0x20c   : > { %4417 = vmatprep.subr.bf16.mxu1 %v6328_v60  ;;  %4458 = vmatprep.subr.bf16.mxu0 %v6330_v61  ;;  %v880_v59 = vld [vmem:[%s7037_s9 + $0xb78] sm:$0xff] }
 0x20f   : > { %4418 = vmatpush1.bf16.msra.mxu1 %v6327_v2  ;;  %4459 = vmatpush1.bf16.msra.mxu0 %v6329_v3  ;;  %v6332_v2 = vcombine.high %v847_v56, %v879_v57  ;;  %v6334_v3 = vcombine.high %v848_v58, %v880_v59 }
 0x210   : > { %4419 = vmatprep.subr.bf16.mxu1 %v6264_v4  ;;  %4460 = vmatprep.subr.bf16.mxu0 %v6266_v5  ;;  %v783_v4 = vld [vmem:[%s7037_s9 + $0x870] sm:$0xff] }
 0x211   : > { %v815_v5 = vld [vmem:[%s7037_s9 + $0x970] sm:$0xff] }
 0x212   : > { %v6268_v14 = vcombine.high %v783_v4, %v815_v5 }
 0x213   : > { %4420 = vmatpush1.bf16.msra.mxu1 %v6263_v10  ;;  %4461 = vmatpush1.bf16.msra.mxu0 %v6265_v11  ;;  %v6331_v10 = vcombine.low %v847_v56, %v879_v57  ;;  %v6333_v11 = vcombine.low %v848_v58, %v880_v59  ;;  %v6012_v59 = vcombine.high %v527_v49, %v559_v50 }
 0x214   : > { %4421 = vmatprep.subr.bf16.mxu1 %v6200_v12  ;;  %4462 = vmatprep.subr.bf16.mxu0 %v6202_v13 }
 0x217   : > { %4422 = vmatpush1.bf16.msra.mxu1 %v6199_v18  ;;  %4463 = vmatpush1.bf16.msra.mxu0 %v6201_v19  ;;  %v720_v18 = vld [vmem:[%s7037_s9 + $0x678] sm:$0xff] }
 0x218   : > { %4423 = vmatprep.subr.bf16.mxu1 %v6136_v20  ;;  %4464 = vmatprep.subr.bf16.mxu0 %v6138_v21  ;;  %v752_v19 = vld [vmem:[%s7037_s9 + $0x778] sm:$0xff]  ;;  %v1041_v20 = vlaneseq  ;;  %v6267_v21 = vcombine.low %v783_v4, %v815_v5  ;;  %v978_v5 = vld [vmem:[%s7037_s9 + $0xe88] sm:$0xff] }
 0x219   : > { %v6206_v24 = vcombine.high %v720_v18, %v752_v19  ;;  %v6205_v32 = vcombine.low %v720_v18, %v752_v19  ;;  %v945_v19 = vld [vmem:[%s7037_s9 + $0xd80] sm:$0xff] }
 0x21b   : > { %4424 = vmatpush1.bf16.msra.mxu1 %v6135_v26  ;;  %4465 = vmatpush1.bf16.msra.mxu0 %v6137_v27  ;;  %v687_v26 = vld [vmem:[%s7037_s9 + $0x570] sm:$0xff]  ;;  %v656_v27 = vld [vmem:[%s7037_s9 + $0x478] sm:$0xff] }
 0x21c   : > { %4425 = vmatprep.subr.bf16.mxu1 %v6072_v29  ;;  %4466 = vmatprep.subr.bf16.mxu0 %v6074_v30  ;;  %v688_v29 = vld [vmem:[%s7037_s9 + $0x578] sm:$0xff]  ;;  %v7333_v30 = vshrl.u32 %v1041_v20, 7  ;;  %v6140_v33 = vcombine.high %v655_v25, %v687_v26  ;;  %v6139_v43 = vcombine.low %v655_v25, %v687_v26  ;;  %v914_v20 = vld [vmem:[%s7037_s9 + $0xc88] sm:$0xff]  ;;  %v6465_v25 = vcombine.low %v978_v5, %v1010_v6 }
 0x21d   : > { %v6142_v34 = vcombine.high %v656_v27, %v688_v29 }
 0x21e   : > { %v7340_v39 = vsub.s32 1, %v7333_v30  ;;  %v7343_v40 = vsub.s32 3, %v7333_v30  ;;  %v7346_v42 = vsub.s32 0, %v7333_v30  ;;  %v7386_v17 = vsub.s32 5, %v7333_v30 }
 0x21f   : > { %4426 = vmatpush1.bf16.msra.mxu1 %v6071_v35  ;;  %4467 = vmatpush1.bf16.msra.mxu0 %v6073_v36  ;;  %v591_v35 = vld [vmem:[%s7037_s9 + $0x270] sm:$0xff]  ;;  %v7389_v18 = vsub.s32 7, %v7333_v30 }
 0x220   : > { %4427 = vmatprep.subr.bf16.mxu1 %v6008_v37  ;;  %4468 = vmatprep.subr.bf16.mxu0 %v6010_v38  ;;  %v623_v36 = vld [vmem:[%s7037_s9 + $0x370] sm:$0xff]  ;;  %v592_v37 = vld [vmem:[%s7037_s9 + $0x278] sm:$0xff] }
 0x221   : > { %v624_v38 = vld [vmem:[%s7037_s9 + $0x378] sm:$0xff]  ;;  %v6075_v56 = vcombine.low %v591_v35, %v623_v36 }
 0x222   : > { %v6078_v48 = vcombine.high %v592_v37, %v624_v38  ;;  %v6077_v57 = vcombine.low %v592_v37, %v624_v38  ;;  %v850_v37 = vld [vmem:[%s7037_s9 + $0xa88] sm:$0xff] }
 0x223   : > { %4428 = vmatpush1.bf16.msra.mxu1 %v6007_v44  ;;  %4469 = vmatpush1.bf16.msra.mxu0 %v6009_v45  ;;  %v6141_v44 = vcombine.low %v656_v27, %v688_v29  ;;  %v7351_v45 = vld [vmem:[%s7348_s24] sm:$0xff]  ;;  %v882_v38 = vld [vmem:[%s7037_s9 + $0xb88] sm:$0xff] }
 0x224   : > { %4495 = vmatprep.subr.bf16.mxu1 %v6460_v46  ;;  %4536 = vmatprep.subr.bf16.mxu0 %v6462_v47  ;;  %v7354_v46 = vsub.s32 2, %v7333_v30  ;;  %v6076_v47 = vcombine.high %v591_v35, %v623_v36  ;;  %v1072_v35 = vrot.slane %v7351_v45, %v7389_v18  ;;  %v881_v36 = vld [vmem:[%s7037_s9 + $0xb80] sm:$0xff] }
 0x226   : > { %4446 = vmatmul.mubr.bf16.vlgmr.msra.gmra.mxu1 %v7085_v41  ;;  %4487 = vmatmul.mubr.bf16.vlgmr.msra.gmra.mxu0 %v7085_v41  ;;  %v7309_v60 = vpop.f32.mrf.mxu1  ;;  %v7311_v61 = vpop.f32.mrf.mxu0  ;;  %v1052_v58 = vrot.slane %v7351_v45, %v7354_v46 }
 0x227   : > { %4496 = vmatpush1.bf16.msra.mxu1 %v6459_v52  ;;  %4537 = vmatpush1.bf16.msra.mxu0 %v6461_v53  ;;  %v560_v52 = vld [vmem:[%s7037_s9 + $0x178] sm:$0xff]  ;;  %v1048_v53 = vrot.slane %v7351_v45, %v7340_v39 }
 0x228   : > { %v7313_v0 = vpop.f32.mrf.mxu1  ;;  %v7315_v1 = vpop.f32.mrf.mxu0  ;;  %4497 = vmatprep.subr.bf16.mxu1 %v6396_v54  ;;  %4538 = vmatprep.subr.bf16.mxu0 %v6398_v55  ;;  %v1056_v54 = vrot.slane %v7351_v45, %v7343_v40  ;;  %v1044_v55 = vrot.slane %v7351_v45, %v7346_v42 }
 0x229   : > { %4527 = vmatprep.mubr.bf16.mxu1 %v6839_v28  ;;  %4568 = vmatprep.mubr.bf16.mxu0 %v6839_v28  ;;  %v3958_v7 = vadd.f32 %v7313_v0, %v1048_v53  ;;  %v3997_v0 = vadd.f32 %v7311_v61, %v1052_v58  ;;  %v817_v58 = vld [vmem:[%s7037_s9 + $0x980] sm:$0xff] }
 0x22a   : > { %v3959_v8 = vpop.f32.mrf.mxu1  ;;  %v4000_v9 = vpop.f32.mrf.mxu0 }
 0x22b   : > { %4498 = vmatpush1.bf16.msra.mxu1 %v6395_v62  ;;  %4539 = vmatpush1.bf16.msra.mxu0 %v6397_v63  ;;  %v6014_v62 = vcombine.high %v528_v51, %v560_v52  ;;  %v977_v63 = vld [vmem:[%s7037_s9 + $0xe80] sm:$0xff]  ;;  %v3999_v8 = vadd.f32 %v7315_v1, %v1056_v54  ;;  %v7375_v9 = vsub.s32 4, %v7333_v30  ;;  %v6466_v1 = vcombine.high %v978_v5, %v1010_v6 }
 0x22c   : > { %v3960_v12 = vpop.f32.mrf.mxu1  ;;  %v4001_v13 = vpop.f32.mrf.mxu0  ;;  %4499 = vmatprep.subr.bf16.mxu1 %v6332_v2  ;;  %4540 = vmatprep.subr.bf16.mxu0 %v6334_v3  ;;  %v1009_v2 = vld [vmem:[%s7037_s9 + $0xf80] sm:$0xff]  ;;  %v6840_v3 = vmov 1966171168   ;;  %v5235_v27 = vmax.f32 %v3997_v0, 0.0  ;;  %v6338_v54 = vcombine.high %v850_v37, %v882_v38  ;;  %v6337_v6 = vcombine.low %v850_v37, %v882_v38 }
 0x22d   : > { %v5430_v4 = vunpack.c.l.s4 %v6840_v3  ;;  %v7378_v12 = vsub.s32 6, %v7333_v30  ;;  %v6464_v13 = vcombine.high %v977_v63, %v1009_v2  ;;  %v1060_v61 = vrot.slane %v7351_v45, %v7375_v9 }
 0x22f   : > { %4500 = vmatpush1.bf16.msra.mxu1 %v6331_v10  ;;  %4541 = vmatpush1.bf16.msra.mxu0 %v6333_v11  ;;  %v6011_v10 = vcombine.low %v527_v49, %v559_v50  ;;  %v6013_v11 = vcombine.low %v528_v51, %v560_v52  ;;  %v5431_v16 = vunpack.c.0.s8 %v5430_v4 }
 0x230   : > { %4501 = vmatprep.subr.bf16.mxu1 %v6268_v14  ;;  %4542 = vmatprep.subr.bf16.mxu0 %v6270_v15  ;;  %v3956_v14 = vadd.f32 %v7309_v60, %v1044_v55  ;;  %v7383_v15 = vld [vmem:[%s7037_s9 + $0xc80] sm:$0xff]  ;;  %v5236_v60 = vmax.f32 %v3999_v8, 0.0 }
 0x231   : > { %v6400_v29 = vcombine.high %v7383_v15, %v945_v19  ;;  %v785_v55 = vld [vmem:[%s7037_s9 + $0x880] sm:$0xff] }
 0x232   : > { %v5233_v26 = vmax.f32 %v3956_v14, 0.0  ;;  %v6272_v0 = vcombine.high %v785_v55, %v817_v58 }
 0x233   : > { %4502 = vmatpush1.bf16.msra.mxu1 %v6267_v21  ;;  %4543 = vmatpush1.bf16.msra.mxu0 %v6269_v22  ;;  %v946_v21 = vld [vmem:[%s7037_s9 + $0xd88] sm:$0xff]  ;;  %v5234_v22 = vmax.f32 %v3958_v7, 0.0 }
 0x234   : > { %4503 = vmatprep.subr.bf16.mxu1 %v6204_v23  ;;  %4544 = vmatprep.subr.bf16.mxu0 %v6206_v24  ;;  %v1068_v23 = vrot.slane %v7351_v45, %v7378_v12  ;;  %v6463_v24 = vcombine.low %v977_v63, %v1009_v2 }
 0x237   : > { %4504 = vmatpush1.bf16.msra.mxu1 %v6203_v31  ;;  %4545 = vmatpush1.bf16.msra.mxu0 %v6205_v32  ;;  %v6402_v31 = vcombine.high %v914_v20, %v946_v21  ;;  %v7400_v32 = vld [vmem:[%s7037_s9 + $0xa80] sm:$0xff] }
 0x238   : > { %4505 = vmatprep.subr.bf16.mxu1 %v6140_v33  ;;  %4546 = vmatprep.subr.bf16.mxu0 %v6142_v34  ;;  %v7403_v33 = vsub.s32 %v5431_v16, %v7333_v30  ;;  %v1064_v34 = vrot.slane %v7351_v45, %v7386_v17  ;;  %v6399_v30 = vcombine.low %v7383_v15, %v945_v19  ;;  %v721_v15 = vld [vmem:[%s7037_s9 + $0x680] sm:$0xff] }
 0x239   : > { %v6401_v45 = vcombine.low %v914_v20, %v946_v21  ;;  %v6336_v53 = vcombine.high %v7400_v32, %v881_v36  ;;  %v6335_v5 = vcombine.low %v7400_v32, %v881_v36  ;;  %v753_v20 = vld [vmem:[%s7037_s9 + $0x780] sm:$0xff]  ;;  %v722_v21 = vld [vmem:[%s7037_s9 + $0x688] sm:$0xff] }
 0x23a   : > { %v689_v32 = vld [vmem:[%s7037_s9 + $0x580] sm:$0xff]  ;;  %v6207_v36 = vcombine.low %v721_v15, %v753_v20 }
 0x23b   : > { %4506 = vmatpush1.bf16.msra.mxu1 %v6139_v43  ;;  %4547 = vmatpush1.bf16.msra.mxu0 %v6141_v44  ;;  %v6495_v43 = vpack.c.bf16 %v5234_v22, %v5233_v26  ;;  %v6496_v44 = vpack.c.bf16 %v5236_v60, %v5235_v27  ;;  %v754_v22 = vld [vmem:[%s7037_s9 + $0x788] sm:$0xff]  ;;  %v6271_v60 = vcombine.low %v785_v55, %v817_v58  ;;  %v529_v55 = vld [vmem:[%s7037_s9 + $0x80] sm:$0xff] }
 0x23c   : > { %4507 = vmatprep.subr.bf16.mxu1 %v6076_v47  ;;  %4548 = vmatprep.subr.bf16.mxu0 %v6078_v48  ;;  %v6208_v26 = vcombine.high %v721_v15, %v753_v20  ;;  %v6210_v27 = vcombine.high %v722_v21, %v754_v22  ;;  %v562_v58 = vld [vmem:[%s7037_s9 + $0x188] sm:$0xff] }
 0x23d   : > { %v5435_v63 = vrot.slane %v6495_v43, %v7403_v33  ;;  %v5442_v2 = vrot.slane %v6496_v44, %v7403_v33  ;;  %v6209_v43 = vcombine.low %v722_v21, %v754_v22  ;;  %v851_v21 = vld [vmem:[%s7037_s9 + $0xa90] sm:$0xff] }
 0x23e   : > { %v883_v22 = vld [vmem:[%s7037_s9 + $0xb90] sm:$0xff] }
 0x23f   : > { %4508 = vmatpush1.bf16.msra.mxu1 %v6075_v56  ;;  %4549 = vmatpush1.bf16.msra.mxu0 %v6077_v57 }
 0x240   : > { %4509 = vmatprep.subr.bf16.mxu1 %v6012_v59  ;;  %4550 = vmatprep.subr.bf16.mxu0 %v6014_v62  ;;  %v786_v59 = vld [vmem:[%s7037_s9 + $0x888] sm:$0xff] }
 0x241   : > { %v818_v62 = vld [vmem:[%s7037_s9 + $0x988] sm:$0xff] }
 0x243   : > { %4510 = vmatpush1.bf16.msra.mxu1 %v6011_v10  ;;  %4551 = vmatpush1.bf16.msra.mxu0 %v6013_v11 }
 0x244   : > { %4577 = vmatprep.subr.bf16.mxu1 %v6464_v13  ;;  %4618 = vmatprep.subr.bf16.mxu0 %v6466_v1  ;;  %v6274_v1 = vcombine.high %v786_v59, %v818_v62 }
 0x246   : > { %v4037_v47 = vpop.f32.mrf.mxu1  ;;  %v4078_v48 = vpop.f32.mrf.mxu0  ;;  %4528 = vmatmul.mubr.bf16.vlgmr.msra.gmra.mxu1 %v7085_v41  ;;  %4569 = vmatmul.mubr.bf16.vlgmr.msra.gmra.mxu0 %v7085_v41 }
 0x247   : > { %v4038_v49 = vadd.f32 %v4037_v47, %v1060_v61  ;;  %v4079_v50 = vadd.f32 %v4078_v48, %v1068_v23  ;;  %4578 = vmatpush1.bf16.msra.mxu1 %v6463_v24  ;;  %4619 = vmatpush1.bf16.msra.mxu0 %v6465_v25  ;;  %v6273_v61 = vcombine.low %v786_v59, %v818_v62  ;;  %v593_v48 = vld [vmem:[%s7037_s9 + $0x280] sm:$0xff] }
 0x248   : > { %v4039_v51 = vpop.f32.mrf.mxu1  ;;  %v4080_v52 = vpop.f32.mrf.mxu0  ;;  %4579 = vmatprep.subr.bf16.mxu1 %v6400_v29  ;;  %4620 = vmatprep.subr.bf16.mxu0 %v6402_v31  ;;  %v5457_v23 = vcombine.low %v5435_v63, %v5442_v2  ;;  %v657_v29 = vld [vmem:[%s7037_s9 + $0x480] sm:$0xff] }
 0x249   : > { %v4040_v56 = vadd.f32 %v4039_v51, %v1064_v34  ;;  %v4081_v57 = vadd.f32 %v4080_v52, %v1072_v35  ;;  %4609 = vmatprep.mubr.bf16.mxu1 %v6839_v28  ;;  %4650 = vmatprep.mubr.bf16.mxu0 %v6839_v28  ;;  %v5237_v7 = vmax.f32 %v4038_v49, 0.0  ;;  %v5239_v8 = vmax.f32 %v4079_v50, 0.0  ;;  %v658_v34 = vld [vmem:[%s7037_s9 + $0x488] sm:$0xff]  ;;  %v625_v49 = vld [vmem:[%s7037_s9 + $0x380] sm:$0xff] }
 0x24a   : > { %v4041_v3 = vpop.f32.mrf.mxu1  ;;  %v4082_v4 = vpop.f32.mrf.mxu0  ;;  %v690_v35 = vld [vmem:[%s7037_s9 + $0x588] sm:$0xff]  ;;  %v5465_v37 = vrot.slane %v5457_v23, %v7403_v33  ;;  %v6144_v44 = vcombine.high %v657_v29, %v689_v32  ;;  %v6143_v51 = vcombine.low %v657_v29, %v689_v32  ;;  %v6079_v59 = vcombine.low %v593_v48, %v625_v49 }
 0x24b   : > { %v5238_v10 = vmax.f32 %v4040_v56, 0.0  ;;  %v5240_v11 = vmax.f32 %v4081_v57, 0.0  ;;  %4580 = vmatpush1.bf16.msra.mxu1 %v6399_v30  ;;  %4621 = vmatpush1.bf16.msra.mxu0 %v6401_v45  ;;  %v6146_v47 = vcombine.high %v658_v34, %v690_v35  ;;  %v594_v50 = vld [vmem:[%s7037_s9 + $0x288] sm:$0xff]  ;;  %v6145_v52 = vcombine.low %v658_v34, %v690_v35  ;;  %v561_v56 = vld [vmem:[%s7037_s9 + $0x180] sm:$0xff]  ;;  %v979_v3 = vld [vmem:[%s7037_s9 + $0xe90] sm:$0xff] }
 0x24c   : > { %v4042_v13 = vpop.f32.mrf.mxu1  ;;  %v4083_v14 = vpop.f32.mrf.mxu0  ;;  %4581 = vmatprep.subr.bf16.mxu1 %v6336_v53  ;;  %4622 = vmatprep.subr.bf16.mxu0 %v6338_v54  ;;  %v626_v45 = vld [vmem:[%s7037_s9 + $0x388] sm:$0xff]  ;;  %v6080_v53 = vcombine.high %v593_v48, %v625_v49  ;;  %v6016_v63 = vcombine.high %v529_v55, %v561_v56  ;;  %v1011_v4 = vld [vmem:[%s7037_s9 + $0xf90] sm:$0xff] }
 0x24d   : > { %v6497_v16 = vpack.c.bf16 %v5238_v10, %v5237_v7  ;;  %v6498_v19 = vpack.c.bf16 %v5240_v11, %v5239_v8  ;;  %v6082_v54 = vcombine.high %v594_v50, %v626_v45  ;;  %v530_v57 = vld [vmem:[%s7037_s9 + $0x88] sm:$0xff]  ;;  %v6081_v62 = vcombine.low %v594_v50, %v626_v45  ;;  %v915_v13 = vld [vmem:[%s7037_s9 + $0xc90] sm:$0xff] }
 0x24e   : > { %v6018_v2 = vcombine.high %v530_v57, %v562_v58  ;;  %v6015_v7 = vcombine.low %v529_v55, %v561_v56  ;;  %v6017_v8 = vcombine.low %v530_v57, %v562_v58  ;;  %v6468_v10 = vcombine.high %v979_v3, %v1011_v4  ;;  %v947_v14 = vld [vmem:[%s7037_s9 + $0xd90] sm:$0xff] }
 0x24f   : > { %v5449_v24 = vrot.slane %v6497_v16, %v7403_v33  ;;  %v5456_v25 = vrot.slane %v6498_v19, %v7403_v33  ;;  %4582 = vmatpush1.bf16.msra.mxu1 %v6335_v5  ;;  %4623 = vmatpush1.bf16.msra.mxu0 %v6337_v6  ;;  %v980_v5 = vld [vmem:[%s7037_s9 + $0xe98] sm:$0xff]  ;;  %v6467_v15 = vcombine.low %v979_v3, %v1011_v4  ;;  %v787_v34 = vld [vmem:[%s7037_s9 + $0x890] sm:$0xff] }
 0x250   : > { %4583 = vmatprep.subr.bf16.mxu1 %v6272_v0  ;;  %4624 = vmatprep.subr.bf16.mxu0 %v6274_v1  ;;  %v1012_v6 = vld [vmem:[%s7037_s9 + $0xf98] sm:$0xff]  ;;  %v6404_v19 = vcombine.high %v915_v13, %v947_v14  ;;  %v819_v35 = vld [vmem:[%s7037_s9 + $0x990] sm:$0xff] }
 0x251   : > { %v5458_v31 = vcombine.low %v5449_v24, %v5456_v25  ;;  %v6470_v11 = vcombine.high %v980_v5, %v1012_v6  ;;  %v916_v0 = vld [vmem:[%s7037_s9 + $0xc98] sm:$0xff]  ;;  %v6469_v16 = vcombine.low %v980_v5, %v1012_v6  ;;  %v6403_v25 = vcombine.low %v915_v13, %v947_v14  ;;  %v723_v45 = vld [vmem:[%s7037_s9 + $0x690] sm:$0xff]  ;;  %v7503_v14 = vld [vmem:[%s7348_s24 + $0x8] sm:$0xff] }
 0x252   : > { %v948_v1 = vld [vmem:[%s7037_s9 + $0xd98] sm:$0xff]  ;;  %v6276_v49 = vcombine.high %v787_v34, %v819_v35  ;;  %v659_v58 = vld [vmem:[%s7037_s9 + $0x490] sm:$0xff] }
 0x253   : > { %v5472_v38 = vrot.slane %v5458_v31, %v7403_v33  ;;  %4584 = vmatpush1.bf16.msra.mxu1 %v6271_v60  ;;  %4625 = vmatpush1.bf16.msra.mxu0 %v6273_v61  ;;  %v6406_v20 = vcombine.high %v916_v0, %v948_v1  ;;  %v852_v60 = vld [vmem:[%s7037_s9 + $0xa98] sm:$0xff]  ;;  %v6340_v31 = vcombine.high %v851_v21, %v883_v22  ;;  %v595_v6 = vld [vmem:[%s7037_s9 + $0x290] sm:$0xff] }
 0x254   : > { %4585 = vmatprep.subr.bf16.mxu1 %v6208_v26  ;;  %4626 = vmatprep.subr.bf16.mxu0 %v6210_v27  ;;  %v884_v61 = vld [vmem:[%s7037_s9 + $0xb98] sm:$0xff]  ;;  %v6405_v26 = vcombine.low %v916_v0, %v948_v1 }
 0x255   : > { %v5473_v30 = vcombine.low %v5465_v37, %v5472_v38  ;;  %v6342_v32 = vcombine.high %v852_v60, %v884_v61  ;;  %v820_v37 = vld [vmem:[%s7037_s9 + $0x998] sm:$0xff] }
 0x257   : > { %5825 = vst [vmem:[%s7451_s13] sm:$0xff] %v5473_v30  ;;  %4586 = vmatpush1.bf16.msra.mxu1 %v6207_v36  ;;  %4627 = vmatpush1.bf16.msra.mxu0 %v6209_v43  ;;  %v788_v36 = vld [vmem:[%s7037_s9 + $0x898] sm:$0xff] }
 0x258   : > { %4587 = vmatprep.subr.bf16.mxu1 %v6144_v44  ;;  %4628 = vmatprep.subr.bf16.mxu0 %v6146_v47  ;;  %v6339_v44 = vcombine.low %v851_v21, %v883_v22  ;;  %v6341_v47 = vcombine.low %v852_v60, %v884_v61  ;;  %v6278_v50 = vcombine.high %v788_v36, %v820_v37 }
 0x259   : > { %v6277_v55 = vcombine.low %v788_v36, %v820_v37  ;;  %v1080_v21 = vrot.slane %v7503_v14, %v7340_v39  ;;  %v1088_v22 = vrot.slane %v7503_v14, %v7343_v40  ;;  %v1076_v60 = vrot.slane %v7503_v14, %v7346_v42  ;;  %v982_v36 = vld [vmem:[%s7037_s9 + $0xea8] sm:$0xff] }
 0x25a   : > { %v1014_v37 = vld [vmem:[%s7037_s9 + $0xfa8] sm:$0xff] }
 0x25b   : > { %4588 = vmatpush1.bf16.msra.mxu1 %v6143_v51  ;;  %4629 = vmatpush1.bf16.msra.mxu0 %v6145_v52  ;;  %v755_v51 = vld [vmem:[%s7037_s9 + $0x790] sm:$0xff]  ;;  %v724_v52 = vld [vmem:[%s7037_s9 + $0x698] sm:$0xff] }
 0x25c   : > { %4589 = vmatprep.subr.bf16.mxu1 %v6080_v53  ;;  %4630 = vmatprep.subr.bf16.mxu0 %v6082_v54  ;;  %v756_v53 = vld [vmem:[%s7037_s9 + $0x798] sm:$0xff]  ;;  %v6275_v54 = vcombine.low %v787_v34, %v819_v35  ;;  %v6212_v56 = vcombine.high %v723_v45, %v755_v51  ;;  %v981_v34 = vld [vmem:[%s7037_s9 + $0xea0] sm:$0xff] }
 0x25d   : > { %v6214_v57 = vcombine.high %v724_v52, %v756_v53  ;;  %v6213_v3 = vcombine.low %v724_v52, %v756_v53  ;;  %v1013_v35 = vld [vmem:[%s7037_s9 + $0xfa0] sm:$0xff]  ;;  %v918_v52 = vld [vmem:[%s7037_s9 + $0xca8] sm:$0xff] }
 0x25e   : > { %v950_v53 = vld [vmem:[%s7037_s9 + $0xda8] sm:$0xff] }
 0x25f   : > { %4590 = vmatpush1.bf16.msra.mxu1 %v6079_v59  ;;  %4631 = vmatpush1.bf16.msra.mxu0 %v6081_v62  ;;  %v691_v59 = vld [vmem:[%s7037_s9 + $0x590] sm:$0xff]  ;;  %v660_v62 = vld [vmem:[%s7037_s9 + $0x498] sm:$0xff] }
 0x260   : > { %4591 = vmatprep.subr.bf16.mxu1 %v6016_v63  ;;  %4632 = vmatprep.subr.bf16.mxu0 %v6018_v2  ;;  %v692_v63 = vld [vmem:[%s7037_s9 + $0x598] sm:$0xff]  ;;  %v6211_v2 = vcombine.low %v723_v45, %v755_v51  ;;  %v6148_v4 = vcombine.high %v659_v58, %v691_v59  ;;  %v917_v45 = vld [vmem:[%s7037_s9 + $0xca0] sm:$0xff] }
 0x261   : > { %v6150_v5 = vcombine.high %v660_v62, %v692_v63  ;;  %v6149_v13 = vcombine.low %v660_v62, %v692_v63  ;;  %v949_v51 = vld [vmem:[%s7037_s9 + $0xda0] sm:$0xff]  ;;  %v1096_v63 = vrot.slane %v7503_v14, %v7386_v17 }
 0x262   : > { %v853_v62 = vld [vmem:[%s7037_s9 + $0xaa0] sm:$0xff] }
 0x263   : > { %4592 = vmatpush1.bf16.msra.mxu1 %v6015_v7  ;;  %4633 = vmatpush1.bf16.msra.mxu0 %v6017_v8  ;;  %v627_v7 = vld [vmem:[%s7037_s9 + $0x390] sm:$0xff]  ;;  %v596_v8 = vld [vmem:[%s7037_s9 + $0x298] sm:$0xff] }
 0x264   : > { %4659 = vmatprep.subr.bf16.mxu1 %v6468_v10  ;;  %4700 = vmatprep.subr.bf16.mxu0 %v6470_v11  ;;  %v628_v10 = vld [vmem:[%s7037_s9 + $0x398] sm:$0xff]  ;;  %v6147_v11 = vcombine.low %v659_v58, %v691_v59  ;;  %v6084_v0 = vcombine.high %v595_v6, %v627_v7  ;;  %v6083_v61 = vcombine.low %v595_v6, %v627_v7 }
 0x265   : > { %v6086_v1 = vcombine.high %v596_v8, %v628_v10  ;;  %v6408_v58 = vcombine.high %v917_v45, %v949_v51  ;;  %v6410_v59 = vcombine.high %v918_v52, %v950_v53 }
 0x266   : > { %v7474_v23 = vpop.f32.mrf.mxu1  ;;  %v7476_v24 = vpop.f32.mrf.mxu0  ;;  %4610 = vmatmul.mubr.bf16.vlgmr.msra.gmra.mxu1 %v7085_v41  ;;  %4651 = vmatmul.mubr.bf16.vlgmr.msra.gmra.mxu0 %v7085_v41 }
 0x267   : > { %4660 = vmatpush1.bf16.msra.mxu1 %v6467_v15  ;;  %4701 = vmatpush1.bf16.msra.mxu0 %v6469_v16  ;;  %v531_v15 = vld [vmem:[%s7037_s9 + $0x90] sm:$0xff] }
 0x268   : > { %v7480_v27 = vpop.f32.mrf.mxu1  ;;  %v7482_v29 = vpop.f32.mrf.mxu0  ;;  %4661 = vmatprep.subr.bf16.mxu1 %v6404_v19  ;;  %4702 = vmatprep.subr.bf16.mxu0 %v6406_v20  ;;  %v563_v16 = vld [vmem:[%s7037_s9 + $0x190] sm:$0xff]  ;;  %v532_v19 = vld [vmem:[%s7037_s9 + $0x98] sm:$0xff] }
 0x269   : > { %4691 = vmatprep.mubr.bf16.mxu1 %v6839_v28  ;;  %4732 = vmatprep.mubr.bf16.mxu0 %v6839_v28  ;;  %v564_v20 = vld [vmem:[%s7037_s9 + $0x198] sm:$0xff] }
 0x26a   : > { %v4123_v38 = vpop.f32.mrf.mxu1  ;;  %v4164_v43 = vpop.f32.mrf.mxu0 }
 0x26b   : > { %4662 = vmatpush1.bf16.msra.mxu1 %v6403_v25  ;;  %4703 = vmatpush1.bf16.msra.mxu0 %v6405_v26  ;;  %v6085_v25 = vcombine.low %v596_v8, %v628_v10  ;;  %v1084_v26 = vrot.slane %v7503_v14, %v7354_v46  ;;  %v4122_v38 = vadd.f32 %v7480_v27, %v1080_v21 }
 0x26c   : > { %v4124_v48 = vpop.f32.mrf.mxu1  ;;  %v4165_v30 = vpop.f32.mrf.mxu0  ;;  %4663 = vmatprep.subr.bf16.mxu1 %v6340_v31  ;;  %4704 = vmatprep.subr.bf16.mxu0 %v6342_v32  ;;  %v6020_v31 = vcombine.high %v531_v15, %v563_v16  ;;  %v6022_v32 = vcombine.high %v532_v19, %v564_v20  ;;  %v4163_v43 = vadd.f32 %v7482_v29, %v1088_v22 }
 0x26d   : > { %v6472_v48 = vcombine.high %v981_v34, %v1013_v35  ;;  %v4120_v30 = vadd.f32 %v7474_v23, %v1076_v60  ;;  %v5242_v27 = vmax.f32 %v4122_v38, 0.0  ;;  %v1092_v29 = vrot.slane %v7503_v14, %v7375_v9  ;;  %v821_v60 = vld [vmem:[%s7037_s9 + $0x9a0] sm:$0xff] }
 0x26e   : > { %v1100_v23 = vrot.slane %v7503_v14, %v7378_v12 }
 0x26f   : > { %4664 = vmatpush1.bf16.msra.mxu1 %v6339_v44  ;;  %4705 = vmatpush1.bf16.msra.mxu0 %v6341_v47  ;;  %v6019_v44 = vcombine.low %v531_v15, %v563_v16  ;;  %v6021_v47 = vcombine.low %v532_v19, %v564_v20  ;;  %v789_v20 = vld [vmem:[%s7037_s9 + $0x8a0] sm:$0xff] }
 0x270   : > { %4665 = vmatprep.subr.bf16.mxu1 %v6276_v49  ;;  %4706 = vmatprep.subr.bf16.mxu0 %v6278_v50  ;;  %v4161_v49 = vadd.f32 %v7476_v24, %v1084_v26  ;;  %v6474_v50 = vcombine.high %v982_v36, %v1014_v37  ;;  %v6471_v24 = vcombine.low %v981_v34, %v1013_v35 }
 0x273   : > { %4666 = vmatpush1.bf16.msra.mxu1 %v6275_v54  ;;  %4707 = vmatpush1.bf16.msra.mxu0 %v6277_v55  ;;  %v5244_v54 = vmax.f32 %v4163_v43, 0.0  ;;  %v6473_v55 = vcombine.low %v982_v36, %v1014_v37 }
 0x274   : > { %4667 = vmatprep.subr.bf16.mxu1 %v6212_v56  ;;  %4708 = vmatprep.subr.bf16.mxu0 %v6214_v57  ;;  %v5241_v56 = vmax.f32 %v4120_v30, 0.0  ;;  %v5243_v57 = vmax.f32 %v4161_v49, 0.0  ;;  %v6280_v30 = vcombine.high %v789_v20, %v821_v60 }
 0x276   : > { %v6499_v6 = vpack.c.bf16 %v5242_v27, %v5241_v56  ;;  %v6500_v7 = vpack.c.bf16 %v5244_v54, %v5243_v57  ;;  %v758_v27 = vld [vmem:[%s7037_s9 + $0x7a8] sm:$0xff]  ;;  %v6279_v54 = vcombine.low %v789_v20, %v821_v60  ;;  %v533_v20 = vld [vmem:[%s7037_s9 + $0xa0] sm:$0xff] }
 0x277   : > { %4668 = vmatpush1.bf16.msra.mxu1 %v6211_v2  ;;  %4709 = vmatpush1.bf16.msra.mxu0 %v6213_v3  ;;  %v1104_v2 = vrot.slane %v7503_v14, %v7389_v18  ;;  %v885_v3 = vld [vmem:[%s7037_s9 + $0xba0] sm:$0xff]  ;;  %v6409_v14 = vcombine.low %v918_v52, %v950_v53  ;;  %v726_v53 = vld [vmem:[%s7037_s9 + $0x6a8] sm:$0xff] }
 0x278   : > { %4669 = vmatprep.subr.bf16.mxu1 %v6148_v4  ;;  %4710 = vmatprep.subr.bf16.mxu0 %v6150_v5  ;;  %v854_v4 = vld [vmem:[%s7037_s9 + $0xaa8] sm:$0xff]  ;;  %v6344_v16 = vcombine.high %v853_v62, %v885_v3  ;;  %v5484_v26 = vrot.slane %v6499_v6, %v7403_v33  ;;  %v6343_v35 = vcombine.low %v853_v62, %v885_v3  ;;  %v757_v52 = vld [vmem:[%s7037_s9 + $0x7a0] sm:$0xff] }
 0x279   : > { %v886_v5 = vld [vmem:[%s7037_s9 + $0xba8] sm:$0xff]  ;;  %v6218_v57 = vcombine.high %v726_v53, %v758_v27  ;;  %v693_v62 = vld [vmem:[%s7037_s9 + $0x5a0] sm:$0xff]  ;;  %v6217_v6 = vcombine.low %v726_v53, %v758_v27  ;;  %v855_v53 = vld [vmem:[%s7037_s9 + $0xab0] sm:$0xff] }
 0x27a   : > { %v6346_v19 = vcombine.high %v854_v4, %v886_v5  ;;  %v6345_v36 = vcombine.low %v854_v4, %v886_v5  ;;  %v566_v60 = vld [vmem:[%s7037_s9 + $0x1a8] sm:$0xff]  ;;  %v887_v27 = vld [vmem:[%s7037_s9 + $0xbb0] sm:$0xff] }
 0x27b   : > { %4670 = vmatpush1.bf16.msra.mxu1 %v6147_v11  ;;  %4711 = vmatpush1.bf16.msra.mxu0 %v6149_v13  ;;  %v6407_v11 = vcombine.low %v917_v45, %v949_v51 }
 0x27c   : > { %4671 = vmatprep.subr.bf16.mxu1 %v6084_v0  ;;  %4712 = vmatprep.subr.bf16.mxu0 %v6086_v1 }
 0x27f   : > { %4672 = vmatpush1.bf16.msra.mxu1 %v6083_v61  ;;  %4713 = vmatpush1.bf16.msra.mxu0 %v6085_v25  ;;  %v790_v61 = vld [vmem:[%s7037_s9 + $0x8a8] sm:$0xff] }
 0x280   : > { %4673 = vmatprep.subr.bf16.mxu1 %v6020_v31  ;;  %4714 = vmatprep.subr.bf16.mxu0 %v6022_v32  ;;  %v822_v25 = vld [vmem:[%s7037_s9 + $0x9a8] sm:$0xff]  ;;  %v5491_v31 = vrot.slane %v6500_v7, %v7403_v33 }
 0x281   : > { %v6282_v49 = vcombine.high %v790_v61, %v822_v25 }
 0x283   : > { %4674 = vmatpush1.bf16.msra.mxu1 %v6019_v44  ;;  %4715 = vmatpush1.bf16.msra.mxu0 %v6021_v47 }
 0x284   : > { %4741 = vmatprep.subr.bf16.mxu1 %v6472_v48  ;;  %4782 = vmatprep.subr.bf16.mxu0 %v6474_v50  ;;  %v725_v50 = vld [vmem:[%s7037_s9 + $0x6a0] sm:$0xff] }
 0x285   : > { %v6216_v56 = vcombine.high %v725_v50, %v757_v52  ;;  %v6215_v3 = vcombine.low %v725_v50, %v757_v52 }
 0x286   : > { %v4201_v8 = vpop.f32.mrf.mxu1  ;;  %v4242_v10 = vpop.f32.mrf.mxu0  ;;  %4692 = vmatmul.mubr.bf16.vlgmr.msra.gmra.mxu1 %v7085_v41  ;;  %4733 = vmatmul.mubr.bf16.vlgmr.msra.gmra.mxu0 %v7085_v41 }
 0x287   : > { %v4202_v13 = vadd.f32 %v4201_v8, %v1092_v29  ;;  %v4243_v0 = vadd.f32 %v4242_v10, %v1100_v23  ;;  %4742 = vmatpush1.bf16.msra.mxu1 %v6471_v24  ;;  %4783 = vmatpush1.bf16.msra.mxu0 %v6473_v55  ;;  %v6281_v29 = vcombine.low %v790_v61, %v822_v25  ;;  %v597_v10 = vld [vmem:[%s7037_s9 + $0x2a0] sm:$0xff] }
 0x288   : > { %v4203_v1 = vpop.f32.mrf.mxu1  ;;  %v4244_v15 = vpop.f32.mrf.mxu0  ;;  %4743 = vmatprep.subr.bf16.mxu1 %v6408_v58  ;;  %4784 = vmatprep.subr.bf16.mxu0 %v6410_v59  ;;  %v5506_v23 = vcombine.low %v5484_v26, %v5491_v31  ;;  %v661_v58 = vld [vmem:[%s7037_s9 + $0x4a0] sm:$0xff] }
 0x289   : > { %v4204_v21 = vadd.f32 %v4203_v1, %v1096_v63  ;;  %v4245_v22 = vadd.f32 %v4244_v15, %v1104_v2  ;;  %4773 = vmatprep.mubr.bf16.mxu1 %v6839_v28  ;;  %4814 = vmatprep.mubr.bf16.mxu0 %v6839_v28  ;;  %v5245_v37 = vmax.f32 %v4202_v13, 0.0  ;;  %v5247_v38 = vmax.f32 %v4243_v0, 0.0  ;;  %v662_v63 = vld [vmem:[%s7037_s9 + $0x4a8] sm:$0xff]  ;;  %v629_v13 = vld [vmem:[%s7037_s9 + $0x3a0] sm:$0xff] }
 0x28a   : > { %v4205_v32 = vpop.f32.mrf.mxu1  ;;  %v4246_v34 = vpop.f32.mrf.mxu0  ;;  %v694_v2 = vld [vmem:[%s7037_s9 + $0x5a8] sm:$0xff]  ;;  %v5514_v4 = vrot.slane %v5506_v23, %v7403_v33  ;;  %v6152_v7 = vcombine.high %v661_v58, %v693_v62  ;;  %v6151_v1 = vcombine.low %v661_v58, %v693_v62  ;;  %v6087_v61 = vcombine.low %v597_v10, %v629_v13 }
 0x28b   : > { %v5246_v43 = vmax.f32 %v4204_v21, 0.0  ;;  %v5248_v44 = vmax.f32 %v4245_v22, 0.0  ;;  %4744 = vmatpush1.bf16.msra.mxu1 %v6407_v11  ;;  %4785 = vmatpush1.bf16.msra.mxu0 %v6409_v14  ;;  %v6154_v8 = vcombine.high %v662_v63, %v694_v2  ;;  %v598_v0 = vld [vmem:[%s7037_s9 + $0x2a8] sm:$0xff]  ;;  %v6153_v15 = vcombine.low %v662_v63, %v694_v2  ;;  %v565_v21 = vld [vmem:[%s7037_s9 + $0x1a0] sm:$0xff]  ;;  %v983_v32 = vld [vmem:[%s7037_s9 + $0xeb0] sm:$0xff] }
 0x28c   : > { %v4206_v47 = vpop.f32.mrf.mxu1  ;;  %v4247_v48 = vpop.f32.mrf.mxu0  ;;  %4745 = vmatprep.subr.bf16.mxu1 %v6344_v16  ;;  %4786 = vmatprep.subr.bf16.mxu0 %v6346_v19  ;;  %v630_v14 = vld [vmem:[%s7037_s9 + $0x3a8] sm:$0xff]  ;;  %v6088_v16 = vcombine.high %v597_v10, %v629_v13  ;;  %v6024_v26 = vcombine.high %v533_v20, %v565_v21  ;;  %v1015_v34 = vld [vmem:[%s7037_s9 + $0xfb0] sm:$0xff] }
 0x28d   : > { %v6501_v45 = vpack.c.bf16 %v5246_v43, %v5245_v37  ;;  %v6502_v51 = vpack.c.bf16 %v5248_v44, %v5247_v38  ;;  %v6090_v19 = vcombine.high %v598_v0, %v630_v14  ;;  %v534_v22 = vld [vmem:[%s7037_s9 + $0xa8] sm:$0xff]  ;;  %v6089_v25 = vcombine.low %v598_v0, %v630_v14  ;;  %v919_v47 = vld [vmem:[%s7037_s9 + $0xcb0] sm:$0xff] }
 0x28e   : > { %v6026_v31 = vcombine.high %v534_v22, %v566_v60  ;;  %v6023_v37 = vcombine.low %v533_v20, %v565_v21  ;;  %v6025_v38 = vcombine.low %v534_v22, %v566_v60  ;;  %v6476_v43 = vcombine.high %v983_v32, %v1015_v34  ;;  %v951_v48 = vld [vmem:[%s7037_s9 + $0xdb0] sm:$0xff] }
 0x28f   : > { %v5498_v24 = vrot.slane %v6501_v45, %v7403_v33  ;;  %v5505_v55 = vrot.slane %v6502_v51, %v7403_v33  ;;  %4746 = vmatpush1.bf16.msra.mxu1 %v6343_v35  ;;  %4787 = vmatpush1.bf16.msra.mxu0 %v6345_v36  ;;  %v984_v35 = vld [vmem:[%s7037_s9 + $0xeb8] sm:$0xff]  ;;  %v6475_v50 = vcombine.low %v983_v32, %v1015_v34  ;;  %v791_v63 = vld [vmem:[%s7037_s9 + $0x8b0] sm:$0xff] }
 0x290   : > { %4747 = vmatprep.subr.bf16.mxu1 %v6280_v30  ;;  %4788 = vmatprep.subr.bf16.mxu0 %v6282_v49  ;;  %v1016_v36 = vld [vmem:[%s7037_s9 + $0xfb8] sm:$0xff]  ;;  %v6412_v51 = vcombine.high %v919_v47, %v951_v48  ;;  %v823_v2 = vld [vmem:[%s7037_s9 + $0x9b0] sm:$0xff] }
 0x291   : > { %v5507_v59 = vcombine.low %v5498_v24, %v5505_v55  ;;  %v6478_v44 = vcombine.high %v984_v35, %v1016_v36  ;;  %v920_v30 = vld [vmem:[%s7037_s9 + $0xcb8] sm:$0xff]  ;;  %v6477_v45 = vcombine.low %v984_v35, %v1016_v36  ;;  %v6411_v55 = vcombine.low %v919_v47, %v951_v48  ;;  %v727_v14 = vld [vmem:[%s7037_s9 + $0x6b0] sm:$0xff] }
 0x292   : > { %v952_v49 = vld [vmem:[%s7037_s9 + $0xdb8] sm:$0xff]  ;;  %v6284_v13 = vcombine.high %v791_v63, %v823_v2  ;;  %v663_v60 = vld [vmem:[%s7037_s9 + $0x4b0] sm:$0xff] }
 0x293   : > { %v5521_v5 = vrot.slane %v5507_v59, %v7403_v33  ;;  %4748 = vmatpush1.bf16.msra.mxu1 %v6279_v54  ;;  %4789 = vmatpush1.bf16.msra.mxu0 %v6281_v29  ;;  %v6414_v52 = vcombine.high %v920_v30, %v952_v49  ;;  %v856_v54 = vld [vmem:[%s7037_s9 + $0xab8] sm:$0xff]  ;;  %v6348_v59 = vcombine.high %v855_v53, %v887_v27  ;;  %v599_v36 = vld [vmem:[%s7037_s9 + $0x2b0] sm:$0xff] }
 0x294   : > { %4749 = vmatprep.subr.bf16.mxu1 %v6216_v56  ;;  %4790 = vmatprep.subr.bf16.mxu0 %v6218_v57  ;;  %v888_v29 = vld [vmem:[%s7037_s9 + $0xbb8] sm:$0xff]  ;;  %v6413_v56 = vcombine.low %v920_v30, %v952_v49  ;;  %v7613_v48 = vld [vmem:[%s7348_s24 + $0x10] sm:$0xff] }
 0x295   : > { %v5522_v11 = vcombine.low %v5514_v4, %v5521_v5  ;;  %v6350_v62 = vcombine.high %v856_v54, %v888_v29  ;;  %v824_v4 = vld [vmem:[%s7037_s9 + $0x9b8] sm:$0xff] }
 0x297   : > { %5826 = vst [vmem:[%s7451_s13 + $0x8] sm:$0xff] %v5522_v11  ;;  %4750 = vmatpush1.bf16.msra.mxu1 %v6215_v3  ;;  %4791 = vmatpush1.bf16.msra.mxu0 %v6217_v6  ;;  %v792_v3 = vld [vmem:[%s7037_s9 + $0x8b8] sm:$0xff] }
 0x298   : > { %4751 = vmatprep.subr.bf16.mxu1 %v6152_v7  ;;  %4792 = vmatprep.subr.bf16.mxu0 %v6154_v8  ;;  %v6347_v7 = vcombine.low %v855_v53, %v887_v27  ;;  %v6349_v8 = vcombine.low %v856_v54, %v888_v29  ;;  %v6286_v0 = vcombine.high %v792_v3, %v824_v4 }
 0x299   : > { %v6285_v20 = vcombine.low %v792_v3, %v824_v4  ;;  %v1112_v53 = vrot.slane %v7613_v48, %v7340_v39  ;;  %v1120_v27 = vrot.slane %v7613_v48, %v7343_v40  ;;  %v1108_v54 = vrot.slane %v7613_v48, %v7346_v42  ;;  %v986_v3 = vld [vmem:[%s7037_s9 + $0xec8] sm:$0xff] }
 0x29a   : > { %v1018_v4 = vld [vmem:[%s7037_s9 + $0xfc8] sm:$0xff] }
 0x29b   : > { %4752 = vmatpush1.bf16.msra.mxu1 %v6151_v1  ;;  %4793 = vmatpush1.bf16.msra.mxu0 %v6153_v15  ;;  %v759_v1 = vld [vmem:[%s7037_s9 + $0x7b0] sm:$0xff]  ;;  %v728_v15 = vld [vmem:[%s7037_s9 + $0x6b8] sm:$0xff] }
 0x29c   : > { %4753 = vmatprep.subr.bf16.mxu1 %v6088_v16  ;;  %4794 = vmatprep.subr.bf16.mxu0 %v6090_v19  ;;  %v760_v16 = vld [vmem:[%s7037_s9 + $0x7b8] sm:$0xff]  ;;  %v6283_v19 = vcombine.low %v791_v63, %v823_v2  ;;  %v6220_v21 = vcombine.high %v727_v14, %v759_v1  ;;  %v985_v63 = vld [vmem:[%s7037_s9 + $0xec0] sm:$0xff] }
 0x29d   : > { %v6222_v22 = vcombine.high %v728_v15, %v760_v16  ;;  %v6221_v32 = vcombine.low %v728_v15, %v760_v16  ;;  %v1017_v2 = vld [vmem:[%s7037_s9 + $0xfc0] sm:$0xff]  ;;  %v922_v15 = vld [vmem:[%s7037_s9 + $0xcc8] sm:$0xff] }
 0x29e   : > { %v954_v16 = vld [vmem:[%s7037_s9 + $0xdc8] sm:$0xff] }
 0x29f   : > { %4754 = vmatpush1.bf16.msra.mxu1 %v6087_v61  ;;  %4795 = vmatpush1.bf16.msra.mxu0 %v6089_v25  ;;  %v695_v61 = vld [vmem:[%s7037_s9 + $0x5b0] sm:$0xff]  ;;  %v664_v25 = vld [vmem:[%s7037_s9 + $0x4b8] sm:$0xff] }
 0x2a0   : > { %4755 = vmatprep.subr.bf16.mxu1 %v6024_v26  ;;  %4796 = vmatprep.subr.bf16.mxu0 %v6026_v31  ;;  %v696_v26 = vld [vmem:[%s7037_s9 + $0x5b8] sm:$0xff]  ;;  %v6219_v31 = vcombine.low %v727_v14, %v759_v1  ;;  %v6156_v34 = vcombine.high %v663_v60, %v695_v61  ;;  %v921_v14 = vld [vmem:[%s7037_s9 + $0xcc0] sm:$0xff] }
 0x2a1   : > { %v6158_v35 = vcombine.high %v664_v25, %v696_v26  ;;  %v6157_v47 = vcombine.low %v664_v25, %v696_v26  ;;  %v953_v1 = vld [vmem:[%s7037_s9 + $0xdc0] sm:$0xff]  ;;  %v1128_v26 = vrot.slane %v7613_v48, %v7386_v17 }
 0x2a2   : > { %v857_v25 = vld [vmem:[%s7037_s9 + $0xac0] sm:$0xff] }
 0x2a3   : > { %4756 = vmatpush1.bf16.msra.mxu1 %v6023_v37  ;;  %4797 = vmatpush1.bf16.msra.mxu0 %v6025_v38  ;;  %v631_v37 = vld [vmem:[%s7037_s9 + $0x3b0] sm:$0xff]  ;;  %v600_v38 = vld [vmem:[%s7037_s9 + $0x2b8] sm:$0xff] }
 0x2a4   : > { %4823 = vmatprep.subr.bf16.mxu1 %v6476_v43  ;;  %4864 = vmatprep.subr.bf16.mxu0 %v6478_v44  ;;  %v632_v43 = vld [vmem:[%s7037_s9 + $0x3b8] sm:$0xff]  ;;  %v6155_v44 = vcombine.low %v663_v60, %v695_v61  ;;  %v6092_v30 = vcombine.high %v599_v36, %v631_v37  ;;  %v6091_v29 = vcombine.low %v599_v36, %v631_v37 }
 0x2a5   : > { %v6094_v49 = vcombine.high %v600_v38, %v632_v43  ;;  %v6416_v60 = vcombine.high %v921_v14, %v953_v1  ;;  %v6418_v61 = vcombine.high %v922_v15, %v954_v16 }
 0x2a6   : > { %v7584_v23 = vpop.f32.mrf.mxu1  ;;  %v7586_v24 = vpop.f32.mrf.mxu0  ;;  %4774 = vmatmul.mubr.bf16.vlgmr.msra.gmra.mxu1 %v7085_v41  ;;  %4815 = vmatmul.mubr.bf16.vlgmr.msra.gmra.mxu0 %v7085_v41 }
 0x2a7   : > { %4824 = vmatpush1.bf16.msra.mxu1 %v6475_v50  ;;  %4865 = vmatpush1.bf16.msra.mxu0 %v6477_v45  ;;  %v535_v50 = vld [vmem:[%s7037_s9 + $0xb0] sm:$0xff] }
 0x2a8   : > { %v7590_v57 = vpop.f32.mrf.mxu1  ;;  %v7592_v58 = vpop.f32.mrf.mxu0  ;;  %4825 = vmatprep.subr.bf16.mxu1 %v6412_v51  ;;  %4866 = vmatprep.subr.bf16.mxu0 %v6414_v52  ;;  %v567_v45 = vld [vmem:[%s7037_s9 + $0x1b0] sm:$0xff]  ;;  %v536_v51 = vld [vmem:[%s7037_s9 + $0xb8] sm:$0xff] }
 0x2a9   : > { %4855 = vmatprep.mubr.bf16.mxu1 %v6839_v28  ;;  %4896 = vmatprep.mubr.bf16.mxu0 %v6839_v28  ;;  %v568_v52 = vld [vmem:[%s7037_s9 + $0x1b8] sm:$0xff] }
 0x2aa   : > { %v4287_v5 = vpop.f32.mrf.mxu1  ;;  %v4328_v6 = vpop.f32.mrf.mxu0 }
 0x2ab   : > { %4826 = vmatpush1.bf16.msra.mxu1 %v6411_v55  ;;  %4867 = vmatpush1.bf16.msra.mxu0 %v6413_v56  ;;  %v6093_v55 = vcombine.low %v600_v38, %v632_v43  ;;  %v1116_v56 = vrot.slane %v7613_v48, %v7354_v46  ;;  %v4286_v5 = vadd.f32 %v7590_v57, %v1112_v53 }
 0x2ac   : > { %v4288_v10 = vpop.f32.mrf.mxu1  ;;  %v4329_v11 = vpop.f32.mrf.mxu0  ;;  %4827 = vmatprep.subr.bf16.mxu1 %v6348_v59  ;;  %4868 = vmatprep.subr.bf16.mxu0 %v6350_v62  ;;  %v6028_v59 = vcombine.high %v535_v50, %v567_v45  ;;  %v6030_v62 = vcombine.high %v536_v51, %v568_v52  ;;  %v4327_v6 = vadd.f32 %v7592_v58, %v1120_v27 }
 0x2ad   : > { %v6480_v10 = vcombine.high %v985_v63, %v1017_v2  ;;  %v4284_v11 = vadd.f32 %v7584_v23, %v1108_v54  ;;  %v5250_v57 = vmax.f32 %v4286_v5, 0.0  ;;  %v1124_v58 = vrot.slane %v7613_v48, %v7375_v9  ;;  %v825_v54 = vld [vmem:[%s7037_s9 + $0x9c0] sm:$0xff] }
 0x2ae   : > { %v1132_v23 = vrot.slane %v7613_v48, %v7378_v12 }
 0x2af   : > { %4828 = vmatpush1.bf16.msra.mxu1 %v6347_v7  ;;  %4869 = vmatpush1.bf16.msra.mxu0 %v6349_v8  ;;  %v6027_v7 = vcombine.low %v535_v50, %v567_v45  ;;  %v6029_v8 = vcombine.low %v536_v51, %v568_v52  ;;  %v793_v52 = vld [vmem:[%s7037_s9 + $0x8c0] sm:$0xff] }
 0x2b0   : > { %4829 = vmatprep.subr.bf16.mxu1 %v6284_v13  ;;  %4870 = vmatprep.subr.bf16.mxu0 %v6286_v0  ;;  %v4325_v13 = vadd.f32 %v7586_v24, %v1116_v56  ;;  %v6482_v0 = vcombine.high %v986_v3, %v1018_v4  ;;  %v6479_v24 = vcombine.low %v985_v63, %v1017_v2 }
 0x2b3   : > { %4830 = vmatpush1.bf16.msra.mxu1 %v6283_v19  ;;  %4871 = vmatpush1.bf16.msra.mxu0 %v6285_v20  ;;  %v5252_v19 = vmax.f32 %v4327_v6, 0.0  ;;  %v6481_v20 = vcombine.low %v986_v3, %v1018_v4 }
 0x2b4   : > { %4831 = vmatprep.subr.bf16.mxu1 %v6220_v21  ;;  %4872 = vmatprep.subr.bf16.mxu0 %v6222_v22  ;;  %v5249_v21 = vmax.f32 %v4284_v11, 0.0  ;;  %v5251_v22 = vmax.f32 %v4325_v13, 0.0  ;;  %v6288_v11 = vcombine.high %v793_v52, %v825_v54 }
 0x2b6   : > { %v6503_v36 = vpack.c.bf16 %v5250_v57, %v5249_v21  ;;  %v6504_v37 = vpack.c.bf16 %v5252_v19, %v5251_v22  ;;  %v762_v57 = vld [vmem:[%s7037_s9 + $0x7c8] sm:$0xff]  ;;  %v6287_v19 = vcombine.low %v793_v52, %v825_v54  ;;  %v537_v52 = vld [vmem:[%s7037_s9 + $0xc0] sm:$0xff] }
 0x2b7   : > { %4832 = vmatpush1.bf16.msra.mxu1 %v6219_v31  ;;  %4873 = vmatpush1.bf16.msra.mxu0 %v6221_v32  ;;  %v1136_v31 = vrot.slane %v7613_v48, %v7389_v18  ;;  %v889_v32 = vld [vmem:[%s7037_s9 + $0xbc0] sm:$0xff]  ;;  %v6417_v48 = vcombine.low %v922_v15, %v954_v16  ;;  %v730_v16 = vld [vmem:[%s7037_s9 + $0x6c8] sm:$0xff] }
 0x2b8   : > { %4833 = vmatprep.subr.bf16.mxu1 %v6156_v34  ;;  %4874 = vmatprep.subr.bf16.mxu0 %v6158_v35  ;;  %v858_v34 = vld [vmem:[%s7037_s9 + $0xac8] sm:$0xff]  ;;  %v6352_v45 = vcombine.high %v857_v25, %v889_v32  ;;  %v5533_v56 = vrot.slane %v6503_v36, %v7403_v33  ;;  %v6351_v2 = vcombine.low %v857_v25, %v889_v32  ;;  %v761_v15 = vld [vmem:[%s7037_s9 + $0x7c0] sm:$0xff] }
 0x2b9   : > { %v890_v35 = vld [vmem:[%s7037_s9 + $0xbc8] sm:$0xff]  ;;  %v6226_v22 = vcombine.high %v730_v16, %v762_v57  ;;  %v697_v25 = vld [vmem:[%s7037_s9 + $0x5c0] sm:$0xff]  ;;  %v6225_v36 = vcombine.low %v730_v16, %v762_v57  ;;  %v859_v16 = vld [vmem:[%s7037_s9 + $0xad0] sm:$0xff] }
 0x2ba   : > { %v6354_v51 = vcombine.high %v858_v34, %v890_v35  ;;  %v6353_v3 = vcombine.low %v858_v34, %v890_v35  ;;  %v570_v54 = vld [vmem:[%s7037_s9 + $0x1c8] sm:$0xff]  ;;  %v891_v57 = vld [vmem:[%s7037_s9 + $0xbd0] sm:$0xff] }
 0x2bb   : > { %4834 = vmatpush1.bf16.msra.mxu1 %v6155_v44  ;;  %4875 = vmatpush1.bf16.msra.mxu0 %v6157_v47  ;;  %v6415_v44 = vcombine.low %v921_v14, %v953_v1 }
 0x2bc   : > { %4835 = vmatprep.subr.bf16.mxu1 %v6092_v30  ;;  %4876 = vmatprep.subr.bf16.mxu0 %v6094_v49 }
 0x2bf   : > { %4836 = vmatpush1.bf16.msra.mxu1 %v6091_v29  ;;  %4877 = vmatpush1.bf16.msra.mxu0 %v6093_v55  ;;  %v794_v29 = vld [vmem:[%s7037_s9 + $0x8c8] sm:$0xff] }
 0x2c0   : > { %4837 = vmatprep.subr.bf16.mxu1 %v6028_v59  ;;  %4878 = vmatprep.subr.bf16.mxu0 %v6030_v62  ;;  %v826_v55 = vld [vmem:[%s7037_s9 + $0x9c8] sm:$0xff]  ;;  %v5540_v59 = vrot.slane %v6504_v37, %v7403_v33 }
 0x2c1   : > { %v6290_v13 = vcombine.high %v794_v29, %v826_v55 }
 0x2c3   : > { %4838 = vmatpush1.bf16.msra.mxu1 %v6027_v7  ;;  %4879 = vmatpush1.bf16.msra.mxu0 %v6029_v8 }
 0x2c4   : > { %4905 = vmatprep.subr.bf16.mxu1 %v6480_v10  ;;  %4946 = vmatprep.subr.bf16.mxu0 %v6482_v0  ;;  %v729_v0 = vld [vmem:[%s7037_s9 + $0x6c0] sm:$0xff] }
 0x2c5   : > { %v6224_v21 = vcombine.high %v729_v0, %v761_v15  ;;  %v6223_v32 = vcombine.low %v729_v0, %v761_v15 }
 0x2c6   : > { %v4365_v38 = vpop.f32.mrf.mxu1  ;;  %v4406_v43 = vpop.f32.mrf.mxu0  ;;  %4856 = vmatmul.mubr.bf16.vlgmr.msra.gmra.mxu1 %v7085_v41  ;;  %4897 = vmatmul.mubr.bf16.vlgmr.msra.gmra.mxu0 %v7085_v41 }
 0x2c7   : > { %v4366_v47 = vadd.f32 %v4365_v38, %v1124_v58  ;;  %v4407_v30 = vadd.f32 %v4406_v43, %v1132_v23  ;;  %4906 = vmatpush1.bf16.msra.mxu1 %v6479_v24  ;;  %4947 = vmatpush1.bf16.msra.mxu0 %v6481_v20  ;;  %v6289_v58 = vcombine.low %v794_v29, %v826_v55  ;;  %v601_v43 = vld [vmem:[%s7037_s9 + $0x2c0] sm:$0xff] }
 0x2c8   : > { %v4367_v49 = vpop.f32.mrf.mxu1  ;;  %v4408_v50 = vpop.f32.mrf.mxu0  ;;  %4907 = vmatprep.subr.bf16.mxu1 %v6416_v60  ;;  %4948 = vmatprep.subr.bf16.mxu0 %v6418_v61  ;;  %v5555_v23 = vcombine.low %v5533_v56, %v5540_v59  ;;  %v665_v60 = vld [vmem:[%s7037_s9 + $0x4c0] sm:$0xff] }
 0x2c9   : > { %v4368_v53 = vadd.f32 %v4367_v49, %v1128_v26  ;;  %v4409_v27 = vadd.f32 %v4408_v50, %v1136_v31  ;;  %4937 = vmatprep.mubr.bf16.mxu1 %v6839_v28  ;;  %4978 = vmatprep.mubr.bf16.mxu0 %v6839_v28  ;;  %v5253_v4 = vmax.f32 %v4366_v47, 0.0  ;;  %v5255_v5 = vmax.f32 %v4407_v30, 0.0  ;;  %v666_v26 = vld [vmem:[%s7037_s9 + $0x4c8] sm:$0xff]  ;;  %v633_v47 = vld [vmem:[%s7037_s9 + $0x3c0] sm:$0xff] }
 0x2ca   : > { %v4369_v62 = vpop.f32.mrf.mxu1  ;;  %v4410_v63 = vpop.f32.mrf.mxu0  ;;  %v698_v31 = vld [vmem:[%s7037_s9 + $0x5c8] sm:$0xff]  ;;  %v5563_v34 = vrot.slane %v5555_v23, %v7403_v33  ;;  %v6160_v37 = vcombine.high %v665_v60, %v697_v25  ;;  %v6159_v49 = vcombine.low %v665_v60, %v697_v25  ;;  %v6095_v29 = vcombine.low %v601_v43, %v633_v47 }
 0x2cb   : > { %v5254_v6 = vmax.f32 %v4368_v53, 0.0  ;;  %v5256_v7 = vmax.f32 %v4409_v27, 0.0  ;;  %4908 = vmatpush1.bf16.msra.mxu1 %v6415_v44  ;;  %4949 = vmatpush1.bf16.msra.mxu0 %v6417_v48  ;;  %v6162_v38 = vcombine.high %v666_v26, %v698_v31  ;;  %v602_v30 = vld [vmem:[%s7037_s9 + $0x2c8] sm:$0xff]  ;;  %v6161_v50 = vcombine.low %v666_v26, %v698_v31  ;;  %v569_v53 = vld [vmem:[%s7037_s9 + $0x1c0] sm:$0xff]  ;;  %v987_v62 = vld [vmem:[%s7037_s9 + $0xed0] sm:$0xff] }
 0x2cc   : > { %v4370_v8 = vpop.f32.mrf.mxu1  ;;  %v4411_v10 = vpop.f32.mrf.mxu0  ;;  %4909 = vmatprep.subr.bf16.mxu1 %v6352_v45  ;;  %4950 = vmatprep.subr.bf16.mxu0 %v6354_v51  ;;  %v634_v48 = vld [vmem:[%s7037_s9 + $0x3c8] sm:$0xff]  ;;  %v6096_v45 = vcombine.high %v601_v43, %v633_v47  ;;  %v6032_v56 = vcombine.high %v537_v52, %v569_v53  ;;  %v1019_v63 = vld [vmem:[%s7037_s9 + $0xfd0] sm:$0xff] }
 0x2cd   : > { %v6505_v14 = vpack.c.bf16 %v5254_v6, %v5253_v4  ;;  %v6506_v1 = vpack.c.bf16 %v5256_v7, %v5255_v5  ;;  %v6098_v51 = vcombine.high %v602_v30, %v634_v48  ;;  %v538_v27 = vld [vmem:[%s7037_s9 + $0xc8] sm:$0xff]  ;;  %v6097_v55 = vcombine.low %v602_v30, %v634_v48  ;;  %v923_v8 = vld [vmem:[%s7037_s9 + $0xcd0] sm:$0xff] }
 0x2ce   : > { %v6034_v59 = vcombine.high %v538_v27, %v570_v54  ;;  %v6031_v4 = vcombine.low %v537_v52, %v569_v53  ;;  %v6033_v5 = vcombine.low %v538_v27, %v570_v54  ;;  %v6484_v6 = vcombine.high %v987_v62, %v1019_v63  ;;  %v955_v10 = vld [vmem:[%s7037_s9 + $0xdd0] sm:$0xff] }
 0x2cf   : > { %v5547_v24 = vrot.slane %v6505_v14, %v7403_v33  ;;  %v5554_v20 = vrot.slane %v6506_v1, %v7403_v33  ;;  %4910 = vmatpush1.bf16.msra.mxu1 %v6351_v2  ;;  %4951 = vmatpush1.bf16.msra.mxu0 %v6353_v3  ;;  %v988_v2 = vld [vmem:[%s7037_s9 + $0xed8] sm:$0xff]  ;;  %v6483_v0 = vcombine.low %v987_v62, %v1019_v63  ;;  %v795_v26 = vld [vmem:[%s7037_s9 + $0x8d0] sm:$0xff] }
 0x2d0   : > { %4911 = vmatprep.subr.bf16.mxu1 %v6288_v11  ;;  %4952 = vmatprep.subr.bf16.mxu0 %v6290_v13  ;;  %v1020_v3 = vld [vmem:[%s7037_s9 + $0xfd8] sm:$0xff]  ;;  %v6420_v1 = vcombine.high %v923_v8, %v955_v10  ;;  %v827_v31 = vld [vmem:[%s7037_s9 + $0x9d0] sm:$0xff] }
 0x2d1   : > { %v5556_v61 = vcombine.low %v5547_v24, %v5554_v20  ;;  %v6486_v7 = vcombine.high %v988_v2, %v1020_v3  ;;  %v924_v11 = vld [vmem:[%s7037_s9 + $0xcd8] sm:$0xff]  ;;  %v6485_v14 = vcombine.low %v988_v2, %v1020_v3  ;;  %v6419_v20 = vcombine.low %v923_v8, %v955_v10  ;;  %v731_v48 = vld [vmem:[%s7037_s9 + $0x6d0] sm:$0xff] }
 0x2d2   : > { %v956_v13 = vld [vmem:[%s7037_s9 + $0xdd8] sm:$0xff]  ;;  %v6292_v47 = vcombine.high %v795_v26, %v827_v31  ;;  %v667_v54 = vld [vmem:[%s7037_s9 + $0x4d0] sm:$0xff] }
 0x2d3   : > { %v5570_v35 = vrot.slane %v5556_v61, %v7403_v33  ;;  %4912 = vmatpush1.bf16.msra.mxu1 %v6287_v19  ;;  %4953 = vmatpush1.bf16.msra.mxu0 %v6289_v58  ;;  %v6422_v15 = vcombine.high %v924_v11, %v956_v13  ;;  %v860_v19 = vld [vmem:[%s7037_s9 + $0xad8] sm:$0xff]  ;;  %v6356_v61 = vcombine.high %v859_v16, %v891_v57  ;;  %v603_v3 = vld [vmem:[%s7037_s9 + $0x2d0] sm:$0xff] }
 0x2d4   : > { %4913 = vmatprep.subr.bf16.mxu1 %v6224_v21  ;;  %4954 = vmatprep.subr.bf16.mxu0 %v6226_v22  ;;  %v892_v58 = vld [vmem:[%s7037_s9 + $0xbd8] sm:$0xff]  ;;  %v6421_v21 = vcombine.low %v924_v11, %v956_v13 }
 0x2d5   : > { %v5571_v44 = vcombine.low %v5563_v34, %v5570_v35  ;;  %v6358_v25 = vcombine.high %v860_v19, %v892_v58  ;;  %v828_v34 = vld [vmem:[%s7037_s9 + $0x9d8] sm:$0xff] }
 0x2d6   : > { %v7723_v10 = vld [vmem:[%s7348_s24 + $0x18] sm:$0xff] }
 0x2d7   : > { %5827 = vst [vmem:[%s7451_s13 + $0x10] sm:$0xff] %v5571_v44  ;;  %4914 = vmatpush1.bf16.msra.mxu1 %v6223_v32  ;;  %4955 = vmatpush1.bf16.msra.mxu0 %v6225_v36  ;;  %v796_v32 = vld [vmem:[%s7037_s9 + $0x8d8] sm:$0xff] }
 0x2d8   : > { %4915 = vmatprep.subr.bf16.mxu1 %v6160_v37  ;;  %4956 = vmatprep.subr.bf16.mxu0 %v6162_v38  ;;  %v6355_v37 = vcombine.low %v859_v16, %v891_v57  ;;  %v6357_v38 = vcombine.low %v860_v19, %v892_v58  ;;  %v6294_v30 = vcombine.high %v796_v32, %v828_v34 }
 0x2d9   : > { %v6293_v52 = vcombine.low %v796_v32, %v828_v34  ;;  %v1144_v16 = vrot.slane %v7723_v10, %v7340_v39  ;;  %v1152_v57 = vrot.slane %v7723_v10, %v7343_v40  ;;  %v1140_v19 = vrot.slane %v7723_v10, %v7346_v42  ;;  %v990_v32 = vld [vmem:[%s7037_s9 + $0xee8] sm:$0xff] }
 0x2da   : > { %v1022_v34 = vld [vmem:[%s7037_s9 + $0xfe8] sm:$0xff] }
 0x2db   : > { %4916 = vmatpush1.bf16.msra.mxu1 %v6159_v49  ;;  %4957 = vmatpush1.bf16.msra.mxu0 %v6161_v50  ;;  %v763_v49 = vld [vmem:[%s7037_s9 + $0x7d0] sm:$0xff]  ;;  %v732_v50 = vld [vmem:[%s7037_s9 + $0x6d8] sm:$0xff] }
 0x2dc   : > { %4917 = vmatprep.subr.bf16.mxu1 %v6096_v45  ;;  %4958 = vmatprep.subr.bf16.mxu0 %v6098_v51  ;;  %v764_v45 = vld [vmem:[%s7037_s9 + $0x7d8] sm:$0xff]  ;;  %v6291_v51 = vcombine.low %v795_v26, %v827_v31  ;;  %v6228_v53 = vcombine.high %v731_v48, %v763_v49  ;;  %v989_v26 = vld [vmem:[%s7037_s9 + $0xee0] sm:$0xff] }
 0x2dd   : > { %v6230_v27 = vcombine.high %v732_v50, %v764_v45  ;;  %v6229_v62 = vcombine.low %v732_v50, %v764_v45  ;;  %v1021_v31 = vld [vmem:[%s7037_s9 + $0xfe0] sm:$0xff]  ;;  %v926_v50 = vld [vmem:[%s7037_s9 + $0xce8] sm:$0xff] }
 0x2de   : > { %v958_v45 = vld [vmem:[%s7037_s9 + $0xde8] sm:$0xff] }
 0x2df   : > { %4918 = vmatpush1.bf16.msra.mxu1 %v6095_v29  ;;  %4959 = vmatpush1.bf16.msra.mxu0 %v6097_v55  ;;  %v699_v29 = vld [vmem:[%s7037_s9 + $0x5d0] sm:$0xff]  ;;  %v668_v55 = vld [vmem:[%s7037_s9 + $0x4d8] sm:$0xff] }
 0x2e0   : > { %4919 = vmatprep.subr.bf16.mxu1 %v6032_v56  ;;  %4960 = vmatprep.subr.bf16.mxu0 %v6034_v59  ;;  %v700_v56 = vld [vmem:[%s7037_s9 + $0x5d8] sm:$0xff]  ;;  %v6227_v59 = vcombine.low %v731_v48, %v763_v49  ;;  %v6164_v63 = vcombine.high %v667_v54, %v699_v29  ;;  %v925_v48 = vld [vmem:[%s7037_s9 + $0xce0] sm:$0xff] }
 0x2e1   : > { %v6166_v2 = vcombine.high %v668_v55, %v700_v56  ;;  %v6165_v8 = vcombine.low %v668_v55, %v700_v56  ;;  %v957_v49 = vld [vmem:[%s7037_s9 + $0xde0] sm:$0xff]  ;;  %v1160_v56 = vrot.slane %v7723_v10, %v7386_v17 }
 0x2e2   : > { %v861_v55 = vld [vmem:[%s7037_s9 + $0xae0] sm:$0xff] }
 0x2e3   : > { %4920 = vmatpush1.bf16.msra.mxu1 %v6031_v4  ;;  %4961 = vmatpush1.bf16.msra.mxu0 %v6033_v5  ;;  %v635_v4 = vld [vmem:[%s7037_s9 + $0x3d0] sm:$0xff]  ;;  %v604_v5 = vld [vmem:[%s7037_s9 + $0x2d8] sm:$0xff] }
 0x2e4   : > { %4987 = vmatprep.subr.bf16.mxu1 %v6484_v6  ;;  %5028 = vmatprep.subr.bf16.mxu0 %v6486_v7  ;;  %v636_v6 = vld [vmem:[%s7037_s9 + $0x3d8] sm:$0xff]  ;;  %v6163_v7 = vcombine.low %v667_v54, %v699_v29  ;;  %v6100_v11 = vcombine.high %v603_v3, %v635_v4  ;;  %v6099_v58 = vcombine.low %v603_v3, %v635_v4 }
 0x2e5   : > { %v6102_v13 = vcombine.high %v604_v5, %v636_v6  ;;  %v6424_v54 = vcombine.high %v925_v48, %v957_v49  ;;  %v6426_v29 = vcombine.high %v926_v50, %v958_v45 }
 0x2e6   : > { %v7694_v23 = vpop.f32.mrf.mxu1  ;;  %v7696_v24 = vpop.f32.mrf.mxu0  ;;  %4938 = vmatmul.mubr.bf16.vlgmr.msra.gmra.mxu1 %v7085_v41  ;;  %4979 = vmatmul.mubr.bf16.vlgmr.msra.gmra.mxu0 %v7085_v41 }
 0x2e7   : > { %4988 = vmatpush1.bf16.msra.mxu1 %v6483_v0  ;;  %5029 = vmatpush1.bf16.msra.mxu0 %v6485_v14  ;;  %v539_v0 = vld [vmem:[%s7037_s9 + $0xd0] sm:$0xff] }
 0x2e8   : > { %v7700_v22 = vpop.f32.mrf.mxu1  ;;  %v7702_v60 = vpop.f32.mrf.mxu0  ;;  %4989 = vmatprep.subr.bf16.mxu1 %v6420_v1  ;;  %5030 = vmatprep.subr.bf16.mxu0 %v6422_v15  ;;  %v571_v14 = vld [vmem:[%s7037_s9 + $0x1d0] sm:$0xff]  ;;  %v540_v1 = vld [vmem:[%s7037_s9 + $0xd8] sm:$0xff] }
 0x2e9   : > { %5019 = vmatprep.mubr.bf16.mxu1 %v6839_v28  ;;  %5060 = vmatprep.mubr.bf16.mxu0 %v6839_v28  ;;  %v572_v15 = vld [vmem:[%s7037_s9 + $0x1d8] sm:$0xff] }
 0x2ea   : > { %v4451_v35 = vpop.f32.mrf.mxu1  ;;  %v4492_v36 = vpop.f32.mrf.mxu0 }
 0x2eb   : > { %4990 = vmatpush1.bf16.msra.mxu1 %v6419_v20  ;;  %5031 = vmatpush1.bf16.msra.mxu0 %v6421_v21  ;;  %v6101_v20 = vcombine.low %v604_v5, %v636_v6  ;;  %v1148_v21 = vrot.slane %v7723_v10, %v7354_v46  ;;  %v4450_v35 = vadd.f32 %v7700_v22, %v1144_v16 }
 0x2ec   : > { %v4452_v43 = vpop.f32.mrf.mxu1  ;;  %v4493_v44 = vpop.f32.mrf.mxu0  ;;  %4991 = vmatprep.subr.bf16.mxu1 %v6356_v61  ;;  %5032 = vmatprep.subr.bf16.mxu0 %v6358_v25  ;;  %v6036_v61 = vcombine.high %v539_v0, %v571_v14  ;;  %v6038_v25 = vcombine.high %v540_v1, %v572_v15  ;;  %v4491_v36 = vadd.f32 %v7702_v60, %v1152_v57 }
 0x2ed   : > { %v6488_v43 = vcombine.high %v989_v26, %v1021_v31  ;;  %v4448_v44 = vadd.f32 %v7694_v23, %v1140_v19  ;;  %v5258_v22 = vmax.f32 %v4450_v35, 0.0  ;;  %v1156_v60 = vrot.slane %v7723_v10, %v7375_v9  ;;  %v829_v19 = vld [vmem:[%s7037_s9 + $0x9e0] sm:$0xff] }
 0x2ee   : > { %v1164_v23 = vrot.slane %v7723_v10, %v7378_v12 }
 0x2ef   : > { %4992 = vmatpush1.bf16.msra.mxu1 %v6355_v37  ;;  %5033 = vmatpush1.bf16.msra.mxu0 %v6357_v38  ;;  %v6035_v37 = vcombine.low %v539_v0, %v571_v14  ;;  %v6037_v38 = vcombine.low %v540_v1, %v572_v15  ;;  %v797_v15 = vld [vmem:[%s7037_s9 + $0x8e0] sm:$0xff] }
 0x2f0   : > { %4993 = vmatprep.subr.bf16.mxu1 %v6292_v47  ;;  %5034 = vmatprep.subr.bf16.mxu0 %v6294_v30  ;;  %v4489_v47 = vadd.f32 %v7696_v24, %v1148_v21  ;;  %v6490_v30 = vcombine.high %v990_v32, %v1022_v34  ;;  %v6487_v24 = vcombine.low %v989_v26, %v1021_v31 }
 0x2f3   : > { %4994 = vmatpush1.bf16.msra.mxu1 %v6291_v51  ;;  %5035 = vmatpush1.bf16.msra.mxu0 %v6293_v52  ;;  %v5260_v51 = vmax.f32 %v4491_v36, 0.0  ;;  %v6489_v52 = vcombine.low %v990_v32, %v1022_v34 }
 0x2f4   : > { %4995 = vmatprep.subr.bf16.mxu1 %v6228_v53  ;;  %5036 = vmatprep.subr.bf16.mxu0 %v6230_v27  ;;  %v5257_v53 = vmax.f32 %v4448_v44, 0.0  ;;  %v5259_v27 = vmax.f32 %v4489_v47, 0.0  ;;  %v6296_v44 = vcombine.high %v797_v15, %v829_v19 }
 0x2f6   : > { %v6507_v3 = vpack.c.bf16 %v5258_v22, %v5257_v53  ;;  %v6508_v4 = vpack.c.bf16 %v5260_v51, %v5259_v27  ;;  %v766_v22 = vld [vmem:[%s7037_s9 + $0x7e8] sm:$0xff]  ;;  %v6295_v51 = vcombine.low %v797_v15, %v829_v19  ;;  %v541_v15 = vld [vmem:[%s7037_s9 + $0xe0] sm:$0xff] }
 0x2f7   : > { %4996 = vmatpush1.bf16.msra.mxu1 %v6227_v59  ;;  %5037 = vmatpush1.bf16.msra.mxu0 %v6229_v62  ;;  %v1168_v59 = vrot.slane %v7723_v10, %v7389_v18  ;;  %v893_v62 = vld [vmem:[%s7037_s9 + $0xbe0] sm:$0xff]  ;;  %v6425_v10 = vcombine.low %v926_v50, %v958_v45  ;;  %v734_v45 = vld [vmem:[%s7037_s9 + $0x6e8] sm:$0xff] }
 0x2f8   : > { %4997 = vmatprep.subr.bf16.mxu1 %v6164_v63  ;;  %5038 = vmatprep.subr.bf16.mxu0 %v6166_v2  ;;  %v862_v63 = vld [vmem:[%s7037_s9 + $0xae8] sm:$0xff]  ;;  %v6360_v14 = vcombine.high %v861_v55, %v893_v62  ;;  %v5582_v21 = vrot.slane %v6507_v3, %v7403_v33  ;;  %v6359_v31 = vcombine.low %v861_v55, %v893_v62  ;;  %v765_v50 = vld [vmem:[%s7037_s9 + $0x7e0] sm:$0xff] }
 0x2f9   : > { %v894_v2 = vld [vmem:[%s7037_s9 + $0xbe8] sm:$0xff]  ;;  %v6234_v27 = vcombine.high %v734_v45, %v766_v22  ;;  %v701_v55 = vld [vmem:[%s7037_s9 + $0x5e0] sm:$0xff]  ;;  %v6233_v3 = vcombine.low %v734_v45, %v766_v22  ;;  %v863_v45 = vld [vmem:[%s7037_s9 + $0xaf0] sm:$0xff] }
 0x2fa   : > { %v6362_v1 = vcombine.high %v862_v63, %v894_v2  ;;  %v6361_v32 = vcombine.low %v862_v63, %v894_v2  ;;  %v574_v19 = vld [vmem:[%s7037_s9 + $0x1e8] sm:$0xff]  ;;  %v895_v22 = vld [vmem:[%s7037_s9 + $0xbf0] sm:$0xff] }
 0x2fb   : > { %4998 = vmatpush1.bf16.msra.mxu1 %v6163_v7  ;;  %5039 = vmatpush1.bf16.msra.mxu0 %v6165_v8  ;;  %v6423_v7 = vcombine.low %v925_v48, %v957_v49 }
 0x2fc   : > { %4999 = vmatprep.subr.bf16.mxu1 %v6100_v11  ;;  %5040 = vmatprep.subr.bf16.mxu0 %v6102_v13 }
 0x2ff   : > { %5000 = vmatpush1.bf16.msra.mxu1 %v6099_v58  ;;  %5041 = vmatpush1.bf16.msra.mxu0 %v6101_v20  ;;  %v798_v58 = vld [vmem:[%s7037_s9 + $0x8e8] sm:$0xff] }
 0x300   : > { %5001 = vmatprep.subr.bf16.mxu1 %v6036_v61  ;;  %5042 = vmatprep.subr.bf16.mxu0 %v6038_v25  ;;  %v830_v20 = vld [vmem:[%s7037_s9 + $0x9e8] sm:$0xff]  ;;  %v5589_v61 = vrot.slane %v6508_v4, %v7403_v33 }
 0x301   : > { %v6298_v47 = vcombine.high %v798_v58, %v830_v20 }
 0x303   : > { %5002 = vmatpush1.bf16.msra.mxu1 %v6035_v37  ;;  %5043 = vmatpush1.bf16.msra.mxu0 %v6037_v38 }
 0x304   : > { %5069 = vmatprep.subr.bf16.mxu1 %v6488_v43  ;;  %5110 = vmatprep.subr.bf16.mxu0 %v6490_v30  ;;  %v733_v30 = vld [vmem:[%s7037_s9 + $0x6e0] sm:$0xff] }
 0x305   : > { %v6232_v53 = vcombine.high %v733_v30, %v765_v50  ;;  %v6231_v62 = vcombine.low %v733_v30, %v765_v50 }
 0x306   : > { %v4529_v5 = vpop.f32.mrf.mxu1  ;;  %v4570_v6 = vpop.f32.mrf.mxu0  ;;  %5020 = vmatmul.mubr.bf16.vlgmr.msra.gmra.mxu1 %v7085_v41  ;;  %5061 = vmatmul.mubr.bf16.vlgmr.msra.gmra.mxu0 %v7085_v41 }
 0x307   : > { %v4530_v8 = vadd.f32 %v4529_v5, %v1156_v60  ;;  %v4571_v11 = vadd.f32 %v4570_v6, %v1164_v23  ;;  %5070 = vmatpush1.bf16.msra.mxu1 %v6487_v24  ;;  %5111 = vmatpush1.bf16.msra.mxu0 %v6489_v52  ;;  %v6297_v60 = vcombine.low %v798_v58, %v830_v20  ;;  %v605_v6 = vld [vmem:[%s7037_s9 + $0x2e0] sm:$0xff] }
 0x308   : > { %v4531_v13 = vpop.f32.mrf.mxu1  ;;  %v4572_v0 = vpop.f32.mrf.mxu0  ;;  %5071 = vmatprep.subr.bf16.mxu1 %v6424_v54  ;;  %5112 = vmatprep.subr.bf16.mxu0 %v6426_v29  ;;  %v5604_v23 = vcombine.low %v5582_v21, %v5589_v61  ;;  %v669_v54 = vld [vmem:[%s7037_s9 + $0x4e0] sm:$0xff] }
 0x309   : > { %v4532_v16 = vadd.f32 %v4531_v13, %v1160_v56  ;;  %v4573_v57 = vadd.f32 %v4572_v0, %v1168_v59  ;;  %5101 = vmatprep.mubr.bf16.mxu1 %v6839_v28  ;;  %5142 = vmatprep.mubr.bf16.mxu0 %v6839_v28  ;;  %v5261_v34 = vmax.f32 %v4530_v8, 0.0  ;;  %v5263_v35 = vmax.f32 %v4571_v11, 0.0  ;;  %v670_v56 = vld [vmem:[%s7037_s9 + $0x4e8] sm:$0xff]  ;;  %v637_v8 = vld [vmem:[%s7037_s9 + $0x3e0] sm:$0xff] }
 0x30a   : > { %v4533_v25 = vpop.f32.mrf.mxu1  ;;  %v4574_v26 = vpop.f32.mrf.mxu0  ;;  %v702_v59 = vld [vmem:[%s7037_s9 + $0x5e8] sm:$0xff]  ;;  %v5612_v63 = vrot.slane %v5604_v23, %v7403_v33  ;;  %v6168_v4 = vcombine.high %v669_v54, %v701_v55  ;;  %v6167_v13 = vcombine.low %v669_v54, %v701_v55  ;;  %v6103_v58 = vcombine.low %v605_v6, %v637_v8 }
 0x30b   : > { %v5262_v36 = vmax.f32 %v4532_v16, 0.0  ;;  %v5264_v37 = vmax.f32 %v4573_v57, 0.0  ;;  %5072 = vmatpush1.bf16.msra.mxu1 %v6423_v7  ;;  %5113 = vmatpush1.bf16.msra.mxu0 %v6425_v10  ;;  %v6170_v5 = vcombine.high %v670_v56, %v702_v59  ;;  %v606_v11 = vld [vmem:[%s7037_s9 + $0x2e8] sm:$0xff]  ;;  %v6169_v0 = vcombine.low %v670_v56, %v702_v59  ;;  %v573_v16 = vld [vmem:[%s7037_s9 + $0x1e0] sm:$0xff]  ;;  %v991_v25 = vld [vmem:[%s7037_s9 + $0xef0] sm:$0xff] }
 0x30c   : > { %v4534_v38 = vpop.f32.mrf.mxu1  ;;  %v4575_v43 = vpop.f32.mrf.mxu0  ;;  %5073 = vmatprep.subr.bf16.mxu1 %v6360_v14  ;;  %5114 = vmatprep.subr.bf16.mxu0 %v6362_v1  ;;  %v638_v10 = vld [vmem:[%s7037_s9 + $0x3e8] sm:$0xff]  ;;  %v6104_v14 = vcombine.high %v605_v6, %v637_v8  ;;  %v6040_v21 = vcombine.high %v541_v15, %v573_v16  ;;  %v1023_v26 = vld [vmem:[%s7037_s9 + $0xff0] sm:$0xff] }
 0x30d   : > { %v6509_v48 = vpack.c.bf16 %v5262_v36, %v5261_v34  ;;  %v6510_v49 = vpack.c.bf16 %v5264_v37, %v5263_v35  ;;  %v6106_v1 = vcombine.high %v606_v11, %v638_v10  ;;  %v542_v57 = vld [vmem:[%s7037_s9 + $0xe8] sm:$0xff]  ;;  %v6105_v20 = vcombine.low %v606_v11, %v638_v10  ;;  %v927_v38 = vld [vmem:[%s7037_s9 + $0xcf0] sm:$0xff] }
 0x30e   : > { %v6042_v61 = vcombine.high %v542_v57, %v574_v19  ;;  %v6039_v34 = vcombine.low %v541_v15, %v573_v16  ;;  %v6041_v35 = vcombine.low %v542_v57, %v574_v19  ;;  %v6492_v36 = vcombine.high %v991_v25, %v1023_v26  ;;  %v959_v43 = vld [vmem:[%s7037_s9 + $0xdf0] sm:$0xff] }
 0x30f   : > { %v5596_v24 = vrot.slane %v6509_v48, %v7403_v33  ;;  %v5603_v52 = vrot.slane %v6510_v49, %v7403_v33  ;;  %5074 = vmatpush1.bf16.msra.mxu1 %v6359_v31  ;;  %5115 = vmatpush1.bf16.msra.mxu0 %v6361_v32  ;;  %v992_v31 = vld [vmem:[%s7037_s9 + $0xef8] sm:$0xff]  ;;  %v6491_v30 = vcombine.low %v991_v25, %v1023_v26  ;;  %v799_v56 = vld [vmem:[%s7037_s9 + $0x8f0] sm:$0xff] }
 0x310   : > { %5075 = vmatprep.subr.bf16.mxu1 %v6296_v44  ;;  %5116 = vmatprep.subr.bf16.mxu0 %v6298_v47  ;;  %v1024_v32 = vld [vmem:[%s7037_s9 + $0xff8] sm:$0xff]  ;;  %v6428_v49 = vcombine.high %v927_v38, %v959_v43  ;;  %v831_v59 = vld [vmem:[%s7037_s9 + $0x9f0] sm:$0xff] }
 0x311   : > { %v5605_v29 = vcombine.low %v5596_v24, %v5603_v52  ;;  %v6494_v37 = vcombine.high %v992_v31, %v1024_v32  ;;  %v928_v44 = vld [vmem:[%s7037_s9 + $0xcf8] sm:$0xff]  ;;  %v6493_v48 = vcombine.low %v992_v31, %v1024_v32  ;;  %v6427_v52 = vcombine.low %v927_v38, %v959_v43  ;;  %v735_v10 = vld [vmem:[%s7037_s9 + $0x6f0] sm:$0xff]  ;;  %v1029_v38 = vld [vmem:[%s7348_s24 + $0x20] sm:$0xff] }
 0x312   : > { %v960_v47 = vld [vmem:[%s7037_s9 + $0xdf8] sm:$0xff]  ;;  %v6300_v8 = vcombine.high %v799_v56, %v831_v59  ;;  %v671_v57 = vld [vmem:[%s7037_s9 + $0x4f0] sm:$0xff] }
 0x313   : > { %v5619_v2 = vrot.slane %v5605_v29, %v7403_v33  ;;  %5076 = vmatpush1.bf16.msra.mxu1 %v6295_v51  ;;  %5117 = vmatpush1.bf16.msra.mxu0 %v6297_v60  ;;  %v6430_v50 = vcombine.high %v928_v44, %v960_v47  ;;  %v864_v51 = vld [vmem:[%s7037_s9 + $0xaf8] sm:$0xff]  ;;  %v6364_v29 = vcombine.high %v863_v45, %v895_v22  ;;  %v703_v19 = vld [vmem:[%s7037_s9 + $0x5f0] sm:$0xff] }
 0x314   : > { %5077 = vmatprep.subr.bf16.mxu1 %v6232_v53  ;;  %5118 = vmatprep.subr.bf16.mxu0 %v6234_v27  ;;  %v896_v60 = vld [vmem:[%s7037_s9 + $0xbf8] sm:$0xff]  ;;  %v6429_v53 = vcombine.low %v928_v44, %v960_v47  ;;  %v6172_v25 = vcombine.high %v671_v57, %v703_v19  ;;  %v607_v31 = vld [vmem:[%s7037_s9 + $0x2f0] sm:$0xff] }
 0x315   : > { %v5620_v7 = vcombine.low %v5612_v63, %v5619_v2  ;;  %v6366_v55 = vcombine.high %v864_v51, %v896_v60  ;;  %v832_v63 = vld [vmem:[%s7037_s9 + $0x9f8] sm:$0xff]  ;;  %v639_v32 = vld [vmem:[%s7037_s9 + $0x3f0] sm:$0xff] }
 0x316   : > { %v6108_v43 = vcombine.high %v607_v31, %v639_v32  ;;  %v543_v47 = vld [vmem:[%s7037_s9 + $0xf0] sm:$0xff] }
 0x317   : > { %5828 = vst [vmem:[%s7451_s13 + $0x18] sm:$0xff] %v5620_v7  ;;  %5078 = vmatpush1.bf16.msra.mxu1 %v6231_v62  ;;  %5119 = vmatpush1.bf16.msra.mxu0 %v6233_v3  ;;  %v800_v62 = vld [vmem:[%s7037_s9 + $0x8f8] sm:$0xff] }
 0x318   : > { %5079 = vmatprep.subr.bf16.mxu1 %v6168_v4  ;;  %5120 = vmatprep.subr.bf16.mxu0 %v6170_v5  ;;  %v6363_v4 = vcombine.low %v863_v45, %v895_v22  ;;  %v6365_v5 = vcombine.low %v864_v51, %v896_v60  ;;  %v6302_v11 = vcombine.high %v800_v62, %v832_v63 }
 0x319   : > { %v1184_v45 = vrot.slane %v1029_v38, %v7343_v40  ;;  %v1172_v22 = vrot.slane %v1029_v38, %v7346_v42  ;;  %v6107_v51 = vcombine.low %v607_v31, %v639_v32 }
 0x31b   : > { %5080 = vmatpush1.bf16.msra.mxu1 %v6167_v13  ;;  %5121 = vmatpush1.bf16.msra.mxu0 %v6169_v0  ;;  %v767_v13 = vld [vmem:[%s7037_s9 + $0x7f0] sm:$0xff]  ;;  %v768_v0 = vld [vmem:[%s7037_s9 + $0x7f8] sm:$0xff] }
 0x31c   : > { %5081 = vmatprep.subr.bf16.mxu1 %v6104_v14  ;;  %5122 = vmatprep.subr.bf16.mxu0 %v6106_v1  ;;  %v6299_v14 = vcombine.low %v799_v56, %v831_v59  ;;  %v6301_v1 = vcombine.low %v800_v62, %v832_v63  ;;  %v6236_v15 = vcombine.high %v735_v10, %v767_v13 }
 0x31f   : > { %5082 = vmatpush1.bf16.msra.mxu1 %v6103_v58  ;;  %5123 = vmatpush1.bf16.msra.mxu0 %v6105_v20  ;;  %v672_v58 = vld [vmem:[%s7037_s9 + $0x4f8] sm:$0xff] }
 0x320   : > { %5083 = vmatprep.subr.bf16.mxu1 %v6040_v21  ;;  %5124 = vmatprep.subr.bf16.mxu0 %v6042_v61  ;;  %v704_v20 = vld [vmem:[%s7037_s9 + $0x5f8] sm:$0xff]  ;;  %v6235_v21 = vcombine.low %v735_v10, %v767_v13 }
 0x321   : > { %v6174_v26 = vcombine.high %v672_v58, %v704_v20 }
 0x323   : > { %5084 = vmatpush1.bf16.msra.mxu1 %v6039_v34  ;;  %5125 = vmatpush1.bf16.msra.mxu0 %v6041_v35  ;;  %v608_v34 = vld [vmem:[%s7037_s9 + $0x2f8] sm:$0xff] }
 0x324   : > { %5151 = vmatprep.subr.bf16.mxu1 %v6492_v36  ;;  %5192 = vmatprep.subr.bf16.mxu0 %v6494_v37  ;;  %v640_v35 = vld [vmem:[%s7037_s9 + $0x3f8] sm:$0xff]  ;;  %v6171_v36 = vcombine.low %v671_v57, %v703_v19  ;;  %v6173_v37 = vcombine.low %v672_v58, %v704_v20 }
 0x325   : > { %v6110_v44 = vcombine.high %v608_v34, %v640_v35  ;;  %v6109_v60 = vcombine.low %v608_v34, %v640_v35 }
 0x326   : > { %v7804_v23 = vpop.f32.mrf.mxu1  ;;  %v7806_v24 = vpop.f32.mrf.mxu0  ;;  %5102 = vmatmul.mubr.bf16.vlgmr.msra.gmra.mxu1 %v7085_v41  ;;  %5143 = vmatmul.mubr.bf16.vlgmr.msra.gmra.mxu0 %v7085_v41 }
 0x327   : > { %5152 = vmatpush1.bf16.msra.mxu1 %v6491_v30  ;;  %5193 = vmatpush1.bf16.msra.mxu0 %v6493_v48  ;;  %v575_v30 = vld [vmem:[%s7037_s9 + $0x1f0] sm:$0xff]  ;;  %v544_v48 = vld [vmem:[%s7037_s9 + $0xf8] sm:$0xff]  ;;  %v4612_v63 = vadd.f32 %v7804_v23, %v1172_v22 }
 0x328   : > { %v7810_v27 = vpop.f32.mrf.mxu1  ;;  %v7812_v54 = vpop.f32.mrf.mxu0  ;;  %5153 = vmatprep.subr.bf16.mxu1 %v6428_v49  ;;  %5194 = vmatprep.subr.bf16.mxu0 %v6430_v50  ;;  %v576_v49 = vld [vmem:[%s7037_s9 + $0x1f8] sm:$0xff]  ;;  %v1176_v50 = vrot.slane %v1029_v38, %v7340_v39  ;;  %v6043_v59 = vcombine.low %v543_v47, %v575_v30 }
 0x329   : > { %5183 = vmatprep.mubr.bf16.mxu1 %v6839_v28  ;;  %5224 = vmatprep.mubr.bf16.mxu0 %v6839_v28  ;;  %v736_v28 = vld [vmem:[%s7037_s9 + $0x6f8] sm:$0xff]  ;;  %v4655_v56 = vadd.f32 %v7812_v54, %v1184_v45  ;;  %v6045_v62 = vcombine.low %v544_v48, %v576_v49 }
 0x32a   : > { %v4615_v2 = vpop.f32.mrf.mxu1  ;;  %v4656_v3 = vpop.f32.mrf.mxu0  ;;  %v6238_v16 = vcombine.high %v736_v28, %v768_v0  ;;  %v6237_v61 = vcombine.low %v736_v28, %v768_v0 }
 0x32b   : > { %5154 = vmatpush1.bf16.msra.mxu1 %v6427_v52  ;;  %5195 = vmatpush1.bf16.msra.mxu0 %v6429_v53  ;;  %v1180_v52 = vrot.slane %v1029_v38, %v7354_v46  ;;  %v6044_v53 = vcombine.high %v543_v47, %v575_v30 }
 0x32c   : > { %v4616_v6 = vpop.f32.mrf.mxu1  ;;  %v4657_v7 = vpop.f32.mrf.mxu0  ;;  %5155 = vmatprep.subr.bf16.mxu1 %v6364_v29  ;;  %5196 = vmatprep.subr.bf16.mxu0 %v6366_v55  ;;  %v6046_v29 = vcombine.high %v544_v48, %v576_v49  ;;  %v4614_v55 = vadd.f32 %v7810_v27, %v1176_v50  ;;  %v1196_v27 = vrot.slane %v1029_v38, %v7378_v12 }
 0x32d   : > { %v4653_v2 = vadd.f32 %v7806_v24, %v1180_v52  ;;  %v5265_v6 = vmax.f32 %v4612_v63, 0.0  ;;  %v1192_v7 = vrot.slane %v1029_v38, %v7386_v17 }
 0x32e   : > { %v5266_v3 = vmax.f32 %v4614_v55, 0.0 }
 0x32f   : > { %5156 = vmatpush1.bf16.msra.mxu1 %v6363_v4  ;;  %5197 = vmatpush1.bf16.msra.mxu0 %v6365_v5  ;;  %v5268_v4 = vmax.f32 %v4655_v56, 0.0  ;;  %v1188_v5 = vrot.slane %v1029_v38, %v7375_v9  ;;  %v5267_v54 = vmax.f32 %v4653_v2, 0.0 }
 0x330   : > { %5157 = vmatprep.subr.bf16.mxu1 %v6300_v8  ;;  %5198 = vmatprep.subr.bf16.mxu0 %v6302_v11  ;;  %v1200_v8 = vrot.slane %v1029_v38, %v7389_v18  ;;  %v6511_v11 = vpack.c.bf16 %v5266_v3, %v5265_v6 }
 0x331   : > { %v6512_v23 = vpack.c.bf16 %v5268_v4, %v5267_v54 }
 0x333   : > { %5158 = vmatpush1.bf16.msra.mxu1 %v6299_v14  ;;  %5199 = vmatpush1.bf16.msra.mxu0 %v6301_v1  ;;  %v5638_v57 = vrot.slane %v6512_v23, %v7403_v33 }
 0x334   : > { %5159 = vmatprep.subr.bf16.mxu1 %v6236_v15  ;;  %5200 = vmatprep.subr.bf16.mxu0 %v6238_v16  ;;  %v5631_v16 = vrot.slane %v6511_v11, %v7403_v33 }
 0x336   : > { %v5653_v34 = vcombine.low %v5631_v16, %v5638_v57 }
 0x337   : > { %5160 = vmatpush1.bf16.msra.mxu1 %v6235_v21  ;;  %5201 = vmatpush1.bf16.msra.mxu0 %v6237_v61 }
 0x338   : > { %5161 = vmatprep.subr.bf16.mxu1 %v6172_v25  ;;  %5202 = vmatprep.subr.bf16.mxu0 %v6174_v26  ;;  %v5661_v38 = vrot.slane %v5653_v34, %v7403_v33 }
 0x33b   : > { %5162 = vmatpush1.bf16.msra.mxu1 %v6171_v36  ;;  %5203 = vmatpush1.bf16.msra.mxu0 %v6173_v37 }
 0x33c   : > { %5163 = vmatprep.subr.bf16.mxu1 %v6108_v43  ;;  %5204 = vmatprep.subr.bf16.mxu0 %v6110_v44 }
 0x33f   : > { %5164 = vmatpush1.bf16.msra.mxu1 %v6107_v51  ;;  %5205 = vmatpush1.bf16.msra.mxu0 %v6109_v60  ;;  %v1030_v60 = vld [vmem:[%s7348_s24 + $0x28] sm:$0xff] }
 0x340   : > { %5165 = vmatprep.subr.bf16.mxu1 %v6044_v53  ;;  %5206 = vmatprep.subr.bf16.mxu0 %v6046_v29  ;;  %v1208_v52 = vrot.slane %v1030_v60, %v7340_v39  ;;  %v1216_v53 = vrot.slane %v1030_v60, %v7343_v40  ;;  %v1204_v29 = vrot.slane %v1030_v60, %v7346_v42 }
 0x341   : > { %v1212_v55 = vrot.slane %v1030_v60, %v7354_v46  ;;  %v1220_v4 = vrot.slane %v1030_v60, %v7375_v9  ;;  %v1224_v54 = vrot.slane %v1030_v60, %v7386_v17 }
 0x343   : > { %5166 = vmatpush1.bf16.msra.mxu1 %v6043_v59  ;;  %5207 = vmatpush1.bf16.msra.mxu0 %v6045_v62 }
 0x346   : > { %v4693_v10 = vpop.f32.mrf.mxu1  ;;  %v4734_v24 = vpop.f32.mrf.mxu0  ;;  %5184 = vmatmul.mubr.bf16.vlgmr.msra.gmra.mxu1 %v7085_v41  ;;  %5225 = vmatmul.mubr.bf16.vlgmr.msra.gmra.mxu0 %v7085_v41 }
 0x347   : > { %v4694_v13 = vadd.f32 %v4693_v10, %v1188_v5  ;;  %v4735_v28 = vadd.f32 %v4734_v24, %v1196_v27  ;;  %v1228_v5 = vrot.slane %v1030_v60, %v7378_v12 }
 0x348   : > { %v4695_v0 = vpop.f32.mrf.mxu1  ;;  %v4736_v14 = vpop.f32.mrf.mxu0 }
 0x349   : > { %v4696_v1 = vadd.f32 %v4695_v0, %v1192_v7  ;;  %v4737_v15 = vadd.f32 %v4736_v14, %v1200_v8  ;;  %v5269_v20 = vmax.f32 %v4694_v13, 0.0  ;;  %v5271_v21 = vmax.f32 %v4735_v28, 0.0 }
 0x34a   : > { %v4697_v19 = vpop.f32.mrf.mxu1  ;;  %v4738_v58 = vpop.f32.mrf.mxu0  ;;  %v1232_v7 = vrot.slane %v1030_v60, %v7389_v18 }
 0x34b   : > { %v5270_v61 = vmax.f32 %v4696_v1, 0.0  ;;  %v5272_v25 = vmax.f32 %v4737_v15, 0.0 }
 0x34c   : > { %v4698_v26 = vpop.f32.mrf.mxu1  ;;  %v4739_v31 = vpop.f32.mrf.mxu0 }
 0x34d   : > { %v6513_v41 = vpack.c.bf16 %v5270_v61, %v5269_v20  ;;  %v6514_v32 = vpack.c.bf16 %v5272_v25, %v5271_v21 }
 0x34f   : > { %v5645_v35 = vrot.slane %v6513_v41, %v7403_v33  ;;  %v5652_v36 = vrot.slane %v6514_v32, %v7403_v33 }
 0x351   : > { %v5654_v37 = vcombine.low %v5645_v35, %v5652_v36 }
 0x353   : > { %v5668_v43 = vrot.slane %v5654_v37, %v7403_v33 }
 0x355   : > { %v5669_v44 = vcombine.low %v5661_v38, %v5668_v43 }
 0x357   : > { %5829 = vst [vmem:[%s7451_s13 + $0x20] sm:$0xff] %v5669_v44 }
 0x366   : > { %v4775_v47 = vpop.f32.mrf.mxu1  ;;  %v4816_v30 = vpop.f32.mrf.mxu0 }
 0x367   : > { %v4776_v62 = vadd.f32 %v4775_v47, %v1204_v29  ;;  %v4817_v63 = vadd.f32 %v4816_v30, %v1212_v55 }
 0x368   : > { %v4777_v48 = vpop.f32.mrf.mxu1  ;;  %v4818_v49 = vpop.f32.mrf.mxu0 }
 0x369   : > { %v4778_v56 = vadd.f32 %v4777_v48, %v1208_v52  ;;  %v4819_v59 = vadd.f32 %v4818_v49, %v1216_v53  ;;  %v5273_v27 = vmax.f32 %v4776_v62, 0.0  ;;  %v5275_v6 = vmax.f32 %v4817_v63, 0.0 }
 0x36a   : > { %v4779_v50 = vpop.f32.mrf.mxu1  ;;  %v4820_v45 = vpop.f32.mrf.mxu0 }
 0x36b   : > { %v5274_v2 = vmax.f32 %v4778_v56, 0.0  ;;  %v5276_v3 = vmax.f32 %v4819_v59, 0.0 }
 0x36c   : > { %v4780_v22 = vpop.f32.mrf.mxu1  ;;  %v4821_v51 = vpop.f32.mrf.mxu0 }
 0x36d   : > { %v6515_v8 = vpack.c.bf16 %v5274_v2, %v5273_v27  ;;  %v6516_v11 = vpack.c.bf16 %v5276_v3, %v5275_v6  ;;  %v1031_v51 = vld [vmem:[%s7348_s24 + $0x30] sm:$0xff] }
 0x36e   : > { %v1240_v60 = vrot.slane %v1031_v51, %v7340_v39  ;;  %v1248_v52 = vrot.slane %v1031_v51, %v7343_v40  ;;  %v1236_v53 = vrot.slane %v1031_v51, %v7346_v42  ;;  %v1244_v29 = vrot.slane %v1031_v51, %v7354_v46 }
 0x36f   : > { %v5680_v15 = vrot.slane %v6515_v8, %v7403_v33  ;;  %v5687_v16 = vrot.slane %v6516_v11, %v7403_v33  ;;  %v1252_v3 = vrot.slane %v1031_v51, %v7375_v9  ;;  %v1256_v6 = vrot.slane %v1031_v51, %v7386_v17 }
 0x371   : > { %v5702_v32 = vcombine.low %v5680_v15, %v5687_v16 }
 0x373   : > { %v5710_v37 = vrot.slane %v5702_v32, %v7403_v33 }
 0x386   : > { %v4857_v23 = vpop.f32.mrf.mxu1  ;;  %v4898_v10 = vpop.f32.mrf.mxu0 }
 0x387   : > { %v4858_v24 = vadd.f32 %v4857_v23, %v1220_v4  ;;  %v4899_v13 = vadd.f32 %v4898_v10, %v1228_v5  ;;  %v1260_v4 = vrot.slane %v1031_v51, %v7378_v12 }
 0x388   : > { %v4859_v28 = vpop.f32.mrf.mxu1  ;;  %v4900_v0 = vpop.f32.mrf.mxu0 }
 0x389   : > { %v4860_v14 = vadd.f32 %v4859_v28, %v1224_v54  ;;  %v4901_v1 = vadd.f32 %v4900_v0, %v1232_v7  ;;  %v5277_v58 = vmax.f32 %v4858_v24, 0.0  ;;  %v5279_v20 = vmax.f32 %v4899_v13, 0.0 }
 0x38a   : > { %v4861_v57 = vpop.f32.mrf.mxu1  ;;  %v4902_v19 = vpop.f32.mrf.mxu0  ;;  %v1264_v54 = vrot.slane %v1031_v51, %v7389_v18 }
 0x38b   : > { %v5278_v21 = vmax.f32 %v4860_v14, 0.0  ;;  %v5280_v61 = vmax.f32 %v4901_v1, 0.0 }
 0x38c   : > { %v4862_v25 = vpop.f32.mrf.mxu1  ;;  %v4903_v26 = vpop.f32.mrf.mxu0 }
 0x38d   : > { %v6517_v31 = vpack.c.bf16 %v5278_v21, %v5277_v58  ;;  %v6518_v41 = vpack.c.bf16 %v5280_v61, %v5279_v20 }
 0x38f   : > { %v5694_v34 = vrot.slane %v6517_v31, %v7403_v33  ;;  %v5701_v35 = vrot.slane %v6518_v41, %v7403_v33 }
 0x391   : > { %v5703_v36 = vcombine.low %v5694_v34, %v5701_v35 }
 0x393   : > { %v5717_v38 = vrot.slane %v5703_v36, %v7403_v33 }
 0x395   : > { %v5718_v43 = vcombine.low %v5710_v37, %v5717_v38 }
 0x397   : > { %5830 = vst [vmem:[%s7451_s13 + $0x28] sm:$0xff] %v5718_v43 }
 0x3a6   : > { %v4939_v44 = vpop.f32.mrf.mxu1  ;;  %v4980_v47 = vpop.f32.mrf.mxu0 }
 0x3a7   : > { %v4940_v59 = vadd.f32 %v4939_v44, %v1236_v53  ;;  %v4981_v62 = vadd.f32 %v4980_v47, %v1244_v29 }
 0x3a8   : > { %v4941_v30 = vpop.f32.mrf.mxu1  ;;  %v4982_v48 = vpop.f32.mrf.mxu0 }
 0x3a9   : > { %v4942_v55 = vadd.f32 %v4941_v30, %v1240_v60  ;;  %v4983_v56 = vadd.f32 %v4982_v48, %v1248_v52  ;;  %v5281_v5 = vmax.f32 %v4940_v59, 0.0  ;;  %v5283_v27 = vmax.f32 %v4981_v62, 0.0 }
 0x3aa   : > { %v4943_v49 = vpop.f32.mrf.mxu1  ;;  %v4984_v50 = vpop.f32.mrf.mxu0 }
 0x3ab   : > { %v5282_v63 = vmax.f32 %v4942_v55, 0.0  ;;  %v5284_v2 = vmax.f32 %v4983_v56, 0.0 }
 0x3ac   : > { %v4944_v45 = vpop.f32.mrf.mxu1  ;;  %v4985_v22 = vpop.f32.mrf.mxu0 }
 0x3ad   : > { %v6519_v7 = vpack.c.bf16 %v5282_v63, %v5281_v5  ;;  %v6520_v8 = vpack.c.bf16 %v5284_v2, %v5283_v27  ;;  %v1032_v22 = vld [vmem:[%s7348_s24 + $0x38] sm:$0xff] }
 0x3ae   : > { %v1272_v51 = vrot.slane %v1032_v22, %v7340_v39  ;;  %v1280_v60 = vrot.slane %v1032_v22, %v7343_v40  ;;  %v1268_v52 = vrot.slane %v1032_v22, %v7346_v42  ;;  %v1276_v53 = vrot.slane %v1032_v22, %v7354_v46 }
 0x3af   : > { %v5729_v1 = vrot.slane %v6519_v7, %v7403_v33  ;;  %v5736_v15 = vrot.slane %v6520_v8, %v7403_v33  ;;  %v1284_v2 = vrot.slane %v1032_v22, %v7375_v9  ;;  %v1288_v39 = vrot.slane %v1032_v22, %v7386_v17 }
 0x3b0   : > { %v1296_v40 = vrot.slane %v1032_v22, %v7389_v18 }
 0x3b1   : > { %v5751_v41 = vcombine.low %v5729_v1, %v5736_v15 }
 0x3b3   : > { %v5759_v36 = vrot.slane %v5751_v41, %v7403_v33 }
 0x3c6   : > { %v5021_v11 = vpop.f32.mrf.mxu1  ;;  %v5062_v23 = vpop.f32.mrf.mxu0 }
 0x3c7   : > { %v5022_v10 = vadd.f32 %v5021_v11, %v1252_v3  ;;  %v5063_v24 = vadd.f32 %v5062_v23, %v1260_v4  ;;  %v1292_v3 = vrot.slane %v1032_v22, %v7378_v12 }
 0x3c8   : > { %v5023_v13 = vpop.f32.mrf.mxu1  ;;  %v5064_v28 = vpop.f32.mrf.mxu0 }
 0x3c9   : > { %v5024_v0 = vadd.f32 %v5023_v13, %v1256_v6  ;;  %v5065_v14 = vadd.f32 %v5064_v28, %v1264_v54  ;;  %v5285_v19 = vmax.f32 %v5022_v10, 0.0  ;;  %v5287_v58 = vmax.f32 %v5063_v24, 0.0 }
 0x3ca   : > { %v5025_v16 = vpop.f32.mrf.mxu1  ;;  %v5066_v57 = vpop.f32.mrf.mxu0 }
 0x3cb   : > { %v5286_v20 = vmax.f32 %v5024_v0, 0.0  ;;  %v5288_v21 = vmax.f32 %v5065_v14, 0.0 }
 0x3cc   : > { %v5026_v61 = vpop.f32.mrf.mxu1  ;;  %v5067_v25 = vpop.f32.mrf.mxu0 }
 0x3cd   : > { %v6521_v26 = vpack.c.bf16 %v5286_v20, %v5285_v19  ;;  %v6522_v31 = vpack.c.bf16 %v5288_v21, %v5287_v58 }
 0x3cf   : > { %v5743_v32 = vrot.slane %v6521_v26, %v7403_v33  ;;  %v5750_v34 = vrot.slane %v6522_v31, %v7403_v33 }
 0x3d1   : > { %v5752_v35 = vcombine.low %v5743_v32, %v5750_v34 }
 0x3d3   : > { %v5766_v37 = vrot.slane %v5752_v35, %v7403_v33 }
 0x3d5   : > { %v5767_v38 = vcombine.low %v5759_v36, %v5766_v37 }
 0x3d7   : > { %5831 = vst [vmem:[%s7451_s13 + $0x30] sm:$0xff] %v5767_v38 }
 0x3e6   : > { %v5103_v43 = vpop.f32.mrf.mxu1  ;;  %v5144_v44 = vpop.f32.mrf.mxu0 }
 0x3e7   : > { %v5104_v56 = vadd.f32 %v5103_v43, %v1268_v52  ;;  %v5145_v59 = vadd.f32 %v5144_v44, %v1276_v53 }
 0x3e8   : > { %v5105_v47 = vpop.f32.mrf.mxu1  ;;  %v5146_v30 = vpop.f32.mrf.mxu0 }
 0x3e9   : > { %v5106_v29 = vadd.f32 %v5105_v47, %v1272_v51  ;;  %v5147_v55 = vadd.f32 %v5146_v30, %v1280_v60  ;;  %v5289_v4 = vmax.f32 %v5104_v56, 0.0  ;;  %v5291_v5 = vmax.f32 %v5145_v59, 0.0 }
 0x3ea   : > { %v5107_v48 = vpop.f32.mrf.mxu1  ;;  %v5148_v49 = vpop.f32.mrf.mxu0 }
 0x3eb   : > { %v5290_v62 = vmax.f32 %v5106_v29, 0.0  ;;  %v5292_v63 = vmax.f32 %v5147_v55, 0.0 }
 0x3ec   : > { %v5108_v50 = vpop.f32.mrf.mxu1  ;;  %v5149_v45 = vpop.f32.mrf.mxu0 }
 0x3ed   : > { %v6523_v27 = vpack.c.bf16 %v5290_v62, %v5289_v4  ;;  %v6524_v42 = vpack.c.bf16 %v5292_v63, %v5291_v5 }
 0x3ef   : > { %v5778_v9 = vrot.slane %v6523_v27, %v7403_v33  ;;  %v5785_v12 = vrot.slane %v6524_v42, %v7403_v33 }
 0x3f1   : > { %v5800_v57 = vcombine.low %v5778_v9, %v5785_v12 }
 0x3f3   : > { %v5808_v21 = vrot.slane %v5800_v57, %v7403_v33 }
 0x406   : > { %v5185_v6 = vpop.f32.mrf.mxu1  ;;  %v5226_v46 = vpop.f32.mrf.mxu0 }
 0x407   : > { %v5186_v54 = vadd.f32 %v5185_v6, %v1284_v2  ;;  %v5227_v7 = vadd.f32 %v5226_v46, %v1292_v3 }
 0x408   : > { %v5187_v8 = vpop.f32.mrf.mxu1  ;;  %v5228_v11 = vpop.f32.mrf.mxu0 }
 0x409   : > { %v5188_v23 = vadd.f32 %v5187_v8, %v1288_v39  ;;  %v5229_v10 = vadd.f32 %v5228_v11, %v1296_v40  ;;  %v5293_v17 = vmax.f32 %v5186_v54, 0.0  ;;  %v5295_v28 = vmax.f32 %v5227_v7, 0.0 }
 0x40a   : > { %v5189_v24 = vpop.f32.mrf.mxu1  ;;  %v5230_v13 = vpop.f32.mrf.mxu0 }
 0x40b   : > { %v5294_v18 = vmax.f32 %v5188_v23, 0.0  ;;  %v5296_v0 = vmax.f32 %v5229_v10, 0.0 }
 0x40c   : > { %v5190_v14 = vpop.f32.mrf.mxu1  ;;  %v5231_v1 = vpop.f32.mrf.mxu0 }
 0x40d   : > { %v6525_v15 = vpack.c.bf16 %v5294_v18, %v5293_v17  ;;  %v6526_v16 = vpack.c.bf16 %v5296_v0, %v5295_v28 }
 0x40f   : > { %v5792_v19 = vrot.slane %v6525_v15, %v7403_v33  ;;  %v5799_v58 = vrot.slane %v6526_v16, %v7403_v33 }
 0x411   : > { %v5801_v20 = vcombine.low %v5792_v19, %v5799_v58 }
 0x413   : > { %v5815_v61 = vrot.slane %v5801_v20, %v7403_v33 }
 0x415   : > { %v5816_v25 = vcombine.low %v5808_v21, %v5815_v61 }
 0x417   : > { %5832 = vst [vmem:[%s7451_s13 + $0x38] sm:$0xff] %v5816_v25 }
 0x418 PF: > { %s7944_s15 = sld [smem:[#allocation13_spill]]  ;;  %p17_p1 = scmp.ge.s32.totalorder %s6893_s23, 4  }
 0x419   : > { %s7945_s18 = smov %s6819_s19  ;;  %s7946_s19 = smov %s6823_s20 }
 0x41a   : > { %s7948_s21 = smov %s6893_s23  ;;  %19 = sbr.rel (!%p17_p1) target bundleno = 5 (0x5), region = 104 }
 0x41e   : > { %s7947_s20 = smov %s7944_s15 }
 0x41f   :  { %5853 = vsyncpa [#allocation3], 1 }
 0x420   :  { %5855 = vsyncpa [#allocation3 + $0x1], 1 }
 0x421   :  { %5856 = vsyncpa [#allocation5], 1 }
 0x422   :  { %5857 = vsyncpa [#allocation8], 1 }
 0x423   :  { %5859 = vsyncpa [#allocation8 + $0x1], 1 }

</bundles_post_ra>
